<compile_context>
chip_gen: v6e
topology: v6e:2x2x1
jax: 0.10.0
libtpu: 0.0.40
codegen_flags: <defaults>
</compile_context>

<pallas_src>
import functools

import jax
import jax.numpy as jnp
from jax.experimental import pallas as pl
from jax.experimental.pallas import tpu as pltpu

BN_EPS = 1e-5
GEM_P = 3.0
GEM_EPS = 1e-6

CFG = dict(
    in_c=3,
    c0=8,                       # layer0 output channels
    # (inplanes, bottleneck width, out channels, stride) for layer1..layer3
    layers=[(8, 8, 16, 1), (16, 16, 32, 2), (32, 32, 64, 2)],
    groups=4,                   # ResNeXt cardinality (scaled down)
    se_r=4,                     # SE reduction
    d_delf=64,                  # == layer3 out channels (finetune stage requirement)
)


def _ceil_to(x, m):
    return ((x + m - 1) // m) * m


# --------------------------------------------------------------------------
# Pallas kernels
# --------------------------------------------------------------------------

def _mm_affine_kernel(a_ref, b_ref, scale_ref, shift_ref, o_ref, *, relu):
    # (TM,K)@(K,N) on the MXU with bf16 inputs, f32 accumulation, fused per-channel
    # affine (folded BN / bias) + optional ReLU epilogue (kept in f32).
    acc = jnp.dot(a_ref[...], b_ref[...], preferred_element_type=jnp.float32)
    y = acc * scale_ref[...] + shift_ref[...]
    if relu:
        y = jnp.maximum(y, 0.0)
    o_ref[...] = y


def matmul_affine(a, b, scale=None, shift=None, relu=False, tm_max=512):
    """out = (a @ b) * scale + shift (+ relu). scale/shift broadcast over rows."""
    M, K = a.shape
    N = b.shape[1]
    if scale is None:
        scale = jnp.ones((N,), jnp.float32)
    if shift is None:
        shift = jnp.zeros((N,), jnp.float32)
    scale = scale.reshape(1, N).astype(jnp.float32)
    shift = shift.reshape(1, N).astype(jnp.float32)

    # Adaptive row tile: big enough to amortize per-step overhead, rounded to the
    # bf16 sublane quantum (16) so padding stays minimal (usually zero).
    tm = min(tm_max, _ceil_to(M, 16))
    Mp = _ceil_to(M, tm)
    a16 = a.astype(jnp.bfloat16)
    if Mp != M:
        a16 = jnp.pad(a16, ((0, Mp - M), (0, 0)))
    out = pl.pallas_call(
        functools.partial(_mm_affine_kernel, relu=relu),
        grid=(Mp // tm,),
        in_specs=[
            pl.BlockSpec((tm, K), lambda i: (i, 0)),
            pl.BlockSpec((K, N), lambda i: (0, 0)),
            pl.BlockSpec((1, N), lambda i: (0, 0)),
            pl.BlockSpec((1, N), lambda i: (0, 0)),
        ],
        out_specs=pl.BlockSpec((tm, N), lambda i: (i, 0)),
        out_shape=jax.ShapeDtypeStruct((Mp, N), jnp.float32),
        compiler_params=pltpu.CompilerParams(dimension_semantics=("parallel",)),
    )(a16, b.astype(jnp.bfloat16), scale, shift)
    return out[:M] if Mp != M else out


def _max_tree_kernel(*refs):
    # Elementwise max over 9 lane-dense (-1, 128) views (ceil-mode 3x3/2 maxpool).
    o_ref = refs[-1]
    m = refs[0][...]
    for r in refs[1:-1]:
        m = jnp.maximum(m, r[...])
    o_ref[...] = m


def _spatial_mean_kernel(x_ref, o_ref):
    o_ref[...] = jnp.mean(x_ref[...], axis=1)


def _se_fc_kernel(p_ref, w1_ref, b1_ref, w2_ref, b2_ref, o_ref):
    # SE excitation: fc -> ReLU -> fc, fused in a single kernel (pre-sigmoid logits).
    h = jnp.dot(p_ref[...], w1_ref[...], preferred_element_type=jnp.float32) + b1_ref[...]
    h = jnp.maximum(h, 0.0)
    o_ref[...] = jnp.dot(h, w2_ref[...], preferred_element_type=jnp.float32) + b2_ref[...]


def _se_gate_add_relu_kernel(x_ref, s_ref, r_ref, o_ref):
    # Fused bottleneck tail: x * sigmoid(se_logits) + residual, then ReLU.
    o_ref[...] = jnp.maximum(x_ref[...] * jax.nn.sigmoid(s_ref[...]) + r_ref[...], 0.0)


def _gem_kernel(x_ref, o_ref, *, p, eps):
    # F.avg_pool2d(x.clamp(min=eps)**p, (H, W)) ** (1/p); cube done with VPU multiplies.
    xc = jnp.maximum(x_ref[...], eps)
    if p == 3.0:
        xp = xc * xc * xc
    else:
        xp = xc ** p
    o_ref[...] = jnp.mean(xp, axis=1) ** (1.0 / p)


# --------------------------------------------------------------------------
# JAX glue: im2col, block-diagonal grouped weights, conv / pool wrappers
# --------------------------------------------------------------------------

def extract_patches(x, kh, kw, stride, pad):
    """x: (N,H,W,C) -> (N,OH,OW,kh*kw,C). pad: int or ((top,bot),(left,right))."""
    if isinstance(pad, int):
        pad = ((pad, pad), (pad, pad))
    N, H, W, C = x.shape
    xp = jnp.pad(x, ((0, 0), pad[0], pad[1], (0, 0)))
    Hp = H + pad[0][0] + pad[0][1]
    Wp = W + pad[1][0] + pad[1][1]
    OH = (Hp - kh) // stride + 1
    OW = (Wp - kw) // stride + 1
    cols = []
    for i in range(kh):
        for j in range(kw):
            cols.append(xp[:, i:i + stride * (OH - 1) + 1:stride,
                           j:j + stride * (OW - 1) + 1:stride, :])
    # TODO(synk): im2col is still materialized in HBM for kh/kw>1; an in-kernel DMA
    # gather (memory_space=pl.ANY) would remove the KKx traffic blow-up.
    return jnp.stack(cols, axis=3)  # (N, OH, OW, kh*kw, C)


def grouped_block_diag(w, groups):
    """(kh,kw,cin_g,cout) grouped conv weight -> block-diagonal (KK*C, cout) matrix
    so a single matmul implements all groups (matches PyTorch grouped semantics)."""
    kh, kw, cin_g, cout = w.shape
    cout_g = cout // groups
    KK = kh * kw
    w_r = w.reshape(KK, cin_g, groups, cout_g)
    eye = jnp.eye(groups, dtype=w.dtype)
    wbd = jnp.einsum('kcgo,hg->khcgo', w_r, eye)      # zero unless in-group == out-group
    return wbd.reshape(KK * groups * cin_g, groups * cout_g)


def conv_bn(x, w, stride, pad, groups, scale, shift, relu):
    """Conv2d (im2col or direct reshape) + single fused Pallas matmul/BN/ReLU."""
    N, H, W_, C = x.shape
    kh, kw, cin_g, cout = w.shape
    if kh == 1 and kw == 1 and pad == 0 and groups == 1:
        xs = x if stride == 1 else x[:, ::stride, ::stride, :]
        _, OH, OW, _ = xs.shape
        rows = xs.reshape(N * OH * OW, C)
        w_full = w.reshape(C, cout)
    else:
        patches = extract_patches(x, kh, kw, stride, pad)
        _, OH, OW, KK, _ = patches.shape
        rows = patches.reshape(N * OH * OW, KK * C)
        if groups == 1:
            w_full = w.reshape(KK * C, cout)
        else:
            w_full = grouped_block_diag(w, groups)
    y = matmul_affine(rows, w_full, scale=scale, shift=shift, relu=relu)
    return y.reshape(N, OH, OW, cout)


def maxpool_3x3_s2_ceil(x):
    # nn.MaxPool2d(3, stride=2, ceil_mode=True): virtual -inf pad of 1 on right/bottom.
    N, H, W, C = x.shape
    xp = jnp.pad(x, ((0, 0), (0, 1), (0, 1), (0, 0)), constant_values=-jnp.inf)
    OH = (H + 1 - 3) // 2 + 1
    OW = (W + 1 - 3) // 2 + 1
    total = N * OH * OW * C
    Rp = max(_ceil_to(total, 128), 128)
    views = []
    for i in range(3):
        for j in range(3):
            v = xp[:, i:i + 2 * (OH - 1) + 1:2, j:j + 2 * (OW - 1) + 1:2, :]
            v = v.reshape(-1)
            if Rp != total:
                v = jnp.pad(v, (0, Rp - total), constant_values=-jnp.inf)
            views.append(v.reshape(Rp // 128, 128))
    out = pl.pallas_call(
        _max_tree_kernel,
        out_shape=jax.ShapeDtypeStruct((Rp // 128, 128), jnp.float32),
    )(*views)
    return out.reshape(-1)[:total].reshape(N, OH, OW, C)


def gem_pool(x, p=GEM_P, eps=GEM_EPS):
    N, H, W, C = x.shape
    flat = x.reshape(N, H * W, C)
    return pl.pallas_call(
        functools.partial(_gem_kernel, p=p, eps=eps),
        out_shape=jax.ShapeDtypeStruct((N, C), jnp.float32),
    )(flat)


# --------------------------------------------------------------------------
# Model blocks
# --------------------------------------------------------------------------

def bottleneck_forward(x, p, stride, groups):
    """SE-ResNeXt bottleneck: 1x1 -> grouped 3x3 -> 1x1 -> SE -> (+shortcut) -> ReLU."""
    out = conv_bn(x, p['w1'], 1, 0, 1, p['bn1'][0], p['bn1'][1], relu=True)
    out = conv_bn(out, p['w2'], stride, 1, groups, p['bn2'][0], p['bn2'][1], relu=True)
    out = conv_bn(out, p['w3'], 1, 0, 1, p['bn3'][0], p['bn3'][1], relu=False)

    n, oh, ow, c = out.shape
    flat = out.reshape(n, oh * ow, c)

    # SE module: global average pool -> (fc -> relu -> fc) fused -> sigmoid gate (below)
    pooled = pl.pallas_call(
        _spatial_mean_kernel,
        out_shape=jax.ShapeDtypeStruct((n, c), jnp.float32),
    )(flat)
    s = pl.pallas_call(
        _se_fc_kernel,
        out_shape=jax.ShapeDtypeStruct((n, c), jnp.float32),
    )(pooled, p['se_w1'], p['se_b1'].reshape(1, -1),
      p['se_w2'], p['se_b2'].reshape(1, -1))

    if 'wd' in p:
        residual = conv_bn(x, p['wd'], stride, 0, 1, p['bnd'][0], p['bnd'][1], relu=False)
    else:
        residual = x

    # Fused tail: sigmoid gate + residual add + ReLU in one kernel.
    y = pl.pallas_call(
        _se_gate_add_relu_kernel,
        out_shape=jax.ShapeDtypeStruct((n, oh * ow, c), jnp.float32),
    )(flat, s.reshape(n, 1, c), residual.reshape(n, oh * ow, c))
    return y.reshape(n, oh, ow, c)


def delf_se_resnet_forward(params, x_nchw, stage='finetune'):
    # TODO(synk): 'keypoint' stage (SpatialAttention2d / WeightedSum2d) is not defined
    # in the reference snippet; only the 'finetune' path is implemented.
    assert stage == 'finetune'

    x = jnp.transpose(x_nchw.astype(jnp.float32), (0, 2, 3, 1))  # NCHW -> NHWC
    # layer0: Conv 7x7/2 (pad 3, no bias) + BN + ReLU + MaxPool 3x3/2 (ceil_mode)
    x = conv_bn(x, params['l0']['w'], 2, 3, 1,
                params['l0']['bn'][0], params['l0']['bn'][1], relu=True)
    x = maxpool_3x3_s2_ceil(x)
    # layer1 .. layer3
    for name, (_, _, _, stride) in zip(['l1', 'l2', 'l3'], CFG['layers']):
        x = bottleneck_forward(x, params[name], stride, CFG['groups'])

    v = gem_pool(x)                                   # GeM -> (N, d_delf)

    # last_layer: BatchNorm1d -> Dropout (eval: identity) -> Linear -> BatchNorm1d,
    # folded algebraically into a single matmul + bias (BN is per-channel affine).
    # TODO(synk): training-mode Dropout omitted (inference semantics: identity).
    sa, ta = params['last']['bn_a']
    sb, tb = params['last']['bn_b']
    W = params['last']['fc_w']
    b = params['last']['fc_b'].reshape(1, -1)
    w_fold = (sa.reshape(-1, 1) * W) * sb.reshape(1, -1)
    b_fold = (ta.reshape(1, -1) @ W) * sb.reshape(1, -1) + b * sb.reshape(1, -1) + tb.reshape(1, -1)
    v = matmul_affine(v, w_fold, shift=b_fold)
    return v


# --------------------------------------------------------------------------
# Deterministic parameter initialization (synthetic, eval-mode BN folded)
# --------------------------------------------------------------------------

def init_conv(key, kh, kw, cin, cout):
    fan_in = kh * kw * cin
    return (jax.random.normal(key, (kh, kw, cin, cout)) / jnp.sqrt(fan_in)).astype(jnp.float32)


def init_bn(key, c):
    k1, k2, k3, k4 = jax.random.split(key, 4)
    gamma = 1.0 + 0.1 * jax.random.normal(k1, (c,))
    beta = 0.1 * jax.random.normal(k2, (c,))
    mean = 0.1 * jax.random.normal(k3, (c,))
    var = 1.0 + 0.1 * jnp.abs(jax.random.normal(k4, (c,)))
    scale = gamma / jnp.sqrt(var + BN_EPS)
    shift = beta - mean * scale
    return (scale.reshape(1, c).astype(jnp.float32),
            shift.reshape(1, c).astype(jnp.float32))


def init_bottleneck(key, inp, width, out, stride, groups, se_r):
    ks = jax.random.split(key, 8)
    p = {
        'w1': init_conv(ks[0], 1, 1, inp, width),
        'bn1': init_bn(ks[1], width),
        'w2': init_conv(ks[2], 3, 3, width // groups, width),
        'bn2': init_bn(ks[3], width),
        'w3': init_conv(ks[4], 1, 1, width, out),
        'bn3': init_bn(ks[5], out),
    }
    hid = out // se_r
    kse = jax.random.split(ks[6], 4)
    p['se_w1'] = init_conv(kse[0], 1, 1, out, hid).reshape(out, hid)
    p['se_b1'] = (0.1 * jax.random.normal(kse[1], (hid,))).astype(jnp.float32)
    p['se_w2'] = init_conv(kse[2], 1, 1, hid, out).reshape(hid, out)
    p['se_b2'] = (0.1 * jax.random.normal(kse[3], (out,))).astype(jnp.float32)
    if stride != 1 or inp != out:
        kd = jax.random.split(ks[7], 2)
        p['wd'] = init_conv(kd[0], 1, 1, inp, out)
        p['bnd'] = init_bn(kd[1], out)
    return p


def init_params(key):
    keys = jax.random.split(key, 6)
    params = {
        'l0': {'w': init_conv(keys[0], 7, 7, CFG['in_c'], CFG['c0']),
               'bn': init_bn(jax.random.fold_in(keys[0], 1), CFG['c0'])}
    }
    for i, (inp, width, out, stride) in enumerate(CFG['layers']):
        params[f'l{i + 1}'] = init_bottleneck(keys[i + 1], inp, width, out, stride,
                                              CFG['groups'], CFG['se_r'])
    d = CFG['d_delf']
    kl = jax.random.split(keys[4], 4)
    params['last'] = {
        'bn_a': init_bn(kl[0], d),
        'fc_w': init_conv(kl[1], 1, 1, d, d).reshape(d, d),
        'fc_b': (0.1 * jax.random.normal(kl[2], (d,))).astype(jnp.float32),
        'bn_b': init_bn(kl[3], d),
    }
    return params


# --------------------------------------------------------------------------

if __name__ == "__main__":
    key = jax.random.PRNGKey(0)
    kx, kp = jax.random.split(key)
    x = jax.random.normal(kx, (2, 3, 32, 32), dtype=jnp.float32)  # NCHW like PyTorch
    params = init_params(kp)

    fwd = jax.jit(lambda p, xx: delf_se_resnet_forward(p, xx, stage='finetune'))
    y = fwd(params, x)
    y = jax.block_until_ready(y)

    assert y.shape == (2, CFG['d_delf']), y.shape
    assert bool(jnp.all(jnp.isfinite(y)))
    print("KERNEL_OK")
</pallas_src>

<mosaic_0001>
module attributes {stable_mosaic.version = 11 : i64} {
  func.func @_mm_affine_kernel(%arg0: i32, %arg1: memref<512x147xbf16, #tpu.memory_space<vmem>>, %arg2: memref<147x8xbf16, #tpu.memory_space<vmem>>, %arg3: memref<1x8xf32, #tpu.memory_space<vmem>>, %arg4: memref<1x8xf32, #tpu.memory_space<vmem>>, %arg5: memref<512x8xf32, #tpu.memory_space<vmem>>) attributes {dimension_semantics = [#tpu.dimension_semantics<parallel>], iteration_bounds = array<i64: 1>, scalar_prefetch = 0 : i64, scratch_operands = 0 : i64, tpu.core_type = #tpu.core_type<tc>, window_params = [{transform_indices = @transform_0, window_bounds = array<i64: 512, 147>}, {pipeline_mode = #tpu.pipeline_mode<synchronous>, transform_indices = @transform_1, window_bounds = array<i64: 147, 8>}, {pipeline_mode = #tpu.pipeline_mode<synchronous>, transform_indices = @transform_2, window_bounds = array<i64: 1, 8>}, {pipeline_mode = #tpu.pipeline_mode<synchronous>, transform_indices = @transform_3, window_bounds = array<i64: 1, 8>}, {transform_indices = @transform_4, window_bounds = array<i64: 512, 8>}]} {
    %c0 = arith.constant 0 : index
    %c0_0 = arith.constant 0 : index
    %0 = vector.load %arg1[%c0, %c0_0] : memref<512x147xbf16, #tpu.memory_space<vmem>>, vector<512x147xbf16>
    %c0_1 = arith.constant 0 : index
    %c0_2 = arith.constant 0 : index
    %1 = vector.load %arg2[%c0_1, %c0_2] : memref<147x8xbf16, #tpu.memory_space<vmem>>, vector<147x8xbf16>
    %cst = arith.constant dense<0.000000e+00> : vector<512x8xf32>
    %2 = tpu.matmul %0, %1, %cst {dimension_numbers = #tpu.dot_dimension_numbers<[1], [0], [0], [1], [0, 0, 1, 1], [], []>} : vector<512x147xbf16>, vector<147x8xbf16>, vector<512x8xf32> -> vector<512x8xf32>
    %c0_3 = arith.constant 0 : index
    %c0_4 = arith.constant 0 : index
    %3 = vector.load %arg3[%c0_3, %c0_4] : memref<1x8xf32, #tpu.memory_space<vmem>>, vector<1x8xf32>
    %4 = vector.broadcast %3 : vector<1x8xf32> to vector<512x8xf32>
    %5 = arith.mulf %2, %4 : vector<512x8xf32>
    %c0_5 = arith.constant 0 : index
    %c0_6 = arith.constant 0 : index
    %6 = vector.load %arg4[%c0_5, %c0_6] : memref<1x8xf32, #tpu.memory_space<vmem>>, vector<1x8xf32>
    %7 = vector.broadcast %6 : vector<1x8xf32> to vector<512x8xf32>
    %8 = arith.addf %5, %7 : vector<512x8xf32>
    %cst_7 = arith.constant 0.000000e+00 : f32
    %9 = vector.broadcast %cst_7 : f32 to vector<512x8xf32>
    %10 = arith.maximumf %8, %9 : vector<512x8xf32>
    %c0_8 = arith.constant 0 : index
    %c0_9 = arith.constant 0 : index
    %11 = vector.load %arg5[%c0_8, %c0_9] : memref<512x8xf32, #tpu.memory_space<vmem>>, vector<512x8xf32>
    tpu.vector_store %arg5[%c0_8, %c0_9], %10 {strides = array<i32>} : memref<512x8xf32, #tpu.memory_space<vmem>>, vector<512x8xf32>,
    return
  }
  func.func @transform_0(%arg0: i32) -> (i32, i32) {
    %c0_i32 = arith.constant 0 : i32
    %c0_i32_0 = arith.constant 0 : i32
    return %arg0, %c0_i32 : i32, i32
  }
  func.func @transform_1(%arg0: i32) -> (i32, i32) {
    %c0_i32 = arith.constant 0 : i32
    %c0_i32_0 = arith.constant 0 : i32
    %c0_i32_1 = arith.constant 0 : i32
    return %c0_i32, %c0_i32_0 : i32, i32
  }
  func.func @transform_2(%arg0: i32) -> (i32, i32) {
    %c0_i32 = arith.constant 0 : i32
    %c0_i32_0 = arith.constant 0 : i32
    %c0_i32_1 = arith.constant 0 : i32
    return %c0_i32, %c0_i32_0 : i32, i32
  }
  func.func @transform_3(%arg0: i32) -> (i32, i32) {
    %c0_i32 = arith.constant 0 : i32
    %c0_i32_0 = arith.constant 0 : i32
    %c0_i32_1 = arith.constant 0 : i32
    return %c0_i32, %c0_i32_0 : i32, i32
  }
  func.func @transform_4(%arg0: i32) -> (i32, i32) {
    %c0_i32 = arith.constant 0 : i32
    %c0_i32_0 = arith.constant 0 : i32
    return %arg0, %c0_i32 : i32, i32
  }
}

module attributes {stable_mosaic.version = 11 : i64} {
  func.func @_mm_affine_kernel(%arg0: i32, %arg1: memref<128x8xbf16, #tpu.memory_space<vmem>>, %arg2: memref<8x8xbf16, #tpu.memory_space<vmem>>, %arg3: memref<1x8xf32, #tpu.memory_space<vmem>>, %arg4: memref<1x8xf32, #tpu.memory_space<vmem>>, %arg5: memref<128x8xf32, #tpu.memory_space<vmem>>) attributes {dimension_semantics = [#tpu.dimension_semantics<parallel>], iteration_bounds = array<i64: 1>, scalar_prefetch = 0 : i64, scratch_operands = 0 : i64, tpu.core_type = #tpu.core_type<tc>, window_params = [{transform_indices = @transform_0, window_bounds = array<i64: 128, 8>}, {pipeline_mode = #tpu.pipeline_mode<synchronous>, transform_indices = @transform_1, window_bounds = array<i64: 8, 8>}, {pipeline_mode = #tpu.pipeline_mode<synchronous>, transform_indices = @transform_2, window_bounds = array<i64: 1, 8>}, {pipeline_mode = #tpu.pipeline_mode<synchronous>, transform_indices = @transform_3, window_bounds = array<i64: 1, 8>}, {transform_indices = @transform_4, window_bounds = array<i64: 128, 8>}]} {
    %c0 = arith.constant 0 : index
    %c0_0 = arith.constant 0 : index
    %0 = vector.load %arg1[%c0, %c0_0] : memref<128x8xbf16, #tpu.memory_space<vmem>>, vector<128x8xbf16>
    %c0_1 = arith.constant 0 : index
    %c0_2 = arith.constant 0 : index
    %1 = vector.load %arg2[%c0_1, %c0_2] : memref<8x8xbf16, #tpu.memory_space<vmem>>, vector<8x8xbf16>
    %cst = arith.constant dense<0.000000e+00> : vector<128x8xf32>
    %2 = tpu.matmul %0, %1, %cst {dimension_numbers = #tpu.dot_dimension_numbers<[1], [0], [0], [1], [0, 0, 1, 1], [], []>} : vector<128x8xbf16>, vector<8x8xbf16>, vector<128x8xf32> -> vector<128x8xf32>
    %c0_3 = arith.constant 0 : index
    %c0_4 = arith.constant 0 : index
    %3 = vector.load %arg3[%c0_3, %c0_4] : memref<1x8xf32, #tpu.memory_space<vmem>>, vector<1x8xf32>
    %4 = vector.broadcast %3 : vector<1x8xf32> to vector<128x8xf32>
    %5 = arith.mulf %2, %4 : vector<128x8xf32>
    %c0_5 = arith.constant 0 : index
    %c0_6 = arith.constant 0 : index
    %6 = vector.load %arg4[%c0_5, %c0_6] : memref<1x8xf32, #tpu.memory_space<vmem>>, vector<1x8xf32>
    %7 = vector.broadcast %6 : vector<1x8xf32> to vector<128x8xf32>
    %8 = arith.addf %5, %7 : vector<128x8xf32>
    %cst_7 = arith.constant 0.000000e+00 : f32
    %9 = vector.broadcast %cst_7 : f32 to vector<128x8xf32>
    %10 = arith.maximumf %8, %9 : vector<128x8xf32>
    %c0_8 = arith.constant 0 : index
    %c0_9 = arith.constant 0 : index
    %11 = vector.load %arg5[%c0_8, %c0_9] : memref<128x8xf32, #tpu.memory_space<vmem>>, vector<128x8xf32>
    tpu.vector_store %arg5[%c0_8, %c0_9], %10 {strides = array<i32>} : memref<128x8xf32, #tpu.memory_space<vmem>>, vector<128x8xf32>,
    return
  }
  func.func @transform_0(%arg0: i32) -> (i32, i32) {
    %c0_i32 = arith.constant 0 : i32
    %c0_i32_0 = arith.constant 0 : i32
    return %arg0, %c0_i32 : i32, i32
  }
  func.func @transform_1(%arg0: i32) -> (i32, i32) {
    %c0_i32 = arith.constant 0 : i32
    %c0_i32_0 = arith.constant 0 : i32
    %c0_i32_1 = arith.constant 0 : i32
    return %c0_i32, %c0_i32_0 : i32, i32
  }
  func.func @transform_2(%arg0: i32) -> (i32, i32) {
    %c0_i32 = arith.constant 0 : i32
    %c0_i32_0 = arith.constant 0 : i32
    %c0_i32_1 = arith.constant 0 : i32
    return %c0_i32, %c0_i32_0 : i32, i32
  }
  func.func @transform_3(%arg0: i32) -> (i32, i32) {
    %c0_i32 = arith.constant 0 : i32
    %c0_i32_0 = arith.constant 0 : i32
    %c0_i32_1 = arith.constant 0 : i32
    return %c0_i32, %c0_i32_0 : i32, i32
  }
  func.func @transform_4(%arg0: i32) -> (i32, i32) {
    %c0_i32 = arith.constant 0 : i32
    %c0_i32_0 = arith.constant 0 : i32
    return %arg0, %c0_i32 : i32, i32
  }
}

module attributes {stable_mosaic.version = 11 : i64} {
  func.func @_max_tree_kernel(%arg0: memref<8x128xf32, #tpu.memory_space<vmem>>, %arg1: memref<8x128xf32, #tpu.memory_space<vmem>>, %arg2: memref<8x128xf32, #tpu.memory_space<vmem>>, %arg3: memref<8x128xf32, #tpu.memory_space<vmem>>, %arg4: memref<8x128xf32, #tpu.memory_space<vmem>>, %arg5: memref<8x128xf32, #tpu.memory_space<vmem>>, %arg6: memref<8x128xf32, #tpu.memory_space<vmem>>, %arg7: memref<8x128xf32, #tpu.memory_space<vmem>>, %arg8: memref<8x128xf32, #tpu.memory_space<vmem>>, %arg9: memref<8x128xf32, #tpu.memory_space<vmem>>) attributes {dimension_semantics = [], scalar_prefetch = 0 : i64, scratch_operands = 0 : i64, tpu.core_type = #tpu.core_type<tc>} {
    %c0 = arith.constant 0 : index
    %c0_0 = arith.constant 0 : index
    %0 = vector.load %arg0[%c0, %c0_0] : memref<8x128xf32, #tpu.memory_space<vmem>>, vector<8x128xf32>
    %c0_1 = arith.constant 0 : index
    %c0_2 = arith.constant 0 : index
    %1 = vector.load %arg1[%c0_1, %c0_2] : memref<8x128xf32, #tpu.memory_space<vmem>>, vector<8x128xf32>
    %2 = arith.maximumf %0, %1 : vector<8x128xf32>
    %c0_3 = arith.constant 0 : index
    %c0_4 = arith.constant 0 : index
    %3 = vector.load %arg2[%c0_3, %c0_4] : memref<8x128xf32, #tpu.memory_space<vmem>>, vector<8x128xf32>
    %4 = arith.maximumf %2, %3 : vector<8x128xf32>
    %c0_5 = arith.constant 0 : index
    %c0_6 = arith.constant 0 : index
    %5 = vector.load %arg3[%c0_5, %c0_6] : memref<8x128xf32, #tpu.memory_space<vmem>>, vector<8x128xf32>
    %6 = arith.maximumf %4, %5 : vector<8x128xf32>
    %c0_7 = arith.constant 0 : index
    %c0_8 = arith.constant 0 : index
    %7 = vector.load %arg4[%c0_7, %c0_8] : memref<8x128xf32, #tpu.memory_space<vmem>>, vector<8x128xf32>
    %8 = arith.maximumf %6, %7 : vector<8x128xf32>
    %c0_9 = arith.constant 0 : index
    %c0_10 = arith.constant 0 : index
    %9 = vector.load %arg5[%c0_9, %c0_10] : memref<8x128xf32, #tpu.memory_space<vmem>>, vector<8x128xf32>
    %10 = arith.maximumf %8, %9 : vector<8x128xf32>
    %c0_11 = arith.constant 0 : index
    %c0_12 = arith.constant 0 : index
    %11 = vector.load %arg6[%c0_11, %c0_12] : memref<8x128xf32, #tpu.memory_space<vmem>>, vector<8x128xf32>
    %12 = arith.maximumf %10, %11 : vector<8x128xf32>
    %c0_13 = arith.constant 0 : index
    %c0_14 = arith.constant 0 : index
    %13 = vector.load %arg7[%c0_13, %c0_14] : memref<8x128xf32, #tpu.memory_space<vmem>>, vector<8x128xf32>
    %14 = arith.maximumf %12, %13 : vector<8x128xf32>
    %c0_15 = arith.constant 0 : index
    %c0_16 = arith.constant 0 : index
    %15 = vector.load %arg8[%c0_15, %c0_16] : memref<8x128xf32, #tpu.memory_space<vmem>>, vector<8x128xf32>
    %16 = arith.maximumf %14, %15 : vector<8x128xf32>
    %c0_17 = arith.constant 0 : index
    %c0_18 = arith.constant 0 : index
    %17 = vector.load %arg9[%c0_17, %c0_18] : memref<8x128xf32, #tpu.memory_space<vmem>>, vector<8x128xf32>
    tpu.vector_store %arg9[%c0_17, %c0_18], %16 {strides = array<i32>} : memref<8x128xf32, #tpu.memory_space<vmem>>, vector<8x128xf32>,
    return
  }
}

module attributes {stable_mosaic.version = 11 : i64} {
  func.func @_mm_affine_kernel(%arg0: i32, %arg1: memref<128x72xbf16, #tpu.memory_space<vmem>>, %arg2: memref<72x8xbf16, #tpu.memory_space<vmem>>, %arg3: memref<1x8xf32, #tpu.memory_space<vmem>>, %arg4: memref<1x8xf32, #tpu.memory_space<vmem>>, %arg5: memref<128x8xf32, #tpu.memory_space<vmem>>) attributes {dimension_semantics = [#tpu.dimension_semantics<parallel>], iteration_bounds = array<i64: 1>, scalar_prefetch = 0 : i64, scratch_operands = 0 : i64, tpu.core_type = #tpu.core_type<tc>, window_params = [{transform_indices = @transform_0, window_bounds = array<i64: 128, 72>}, {pipeline_mode = #tpu.pipeline_mode<synchronous>, transform_indices = @transform_1, window_bounds = array<i64: 72, 8>}, {pipeline_mode = #tpu.pipeline_mode<synchronous>, transform_indices = @transform_2, window_bounds = array<i64: 1, 8>}, {pipeline_mode = #tpu.pipeline_mode<synchronous>, transform_indices = @transform_3, window_bounds = array<i64: 1, 8>}, {transform_indices = @transform_4, window_bounds = array<i64: 128, 8>}]} {
    %c0 = arith.constant 0 : index
    %c0_0 = arith.constant 0 : index
    %0 = vector.load %arg1[%c0, %c0_0] : memref<128x72xbf16, #tpu.memory_space<vmem>>, vector<128x72xbf16>
    %c0_1 = arith.constant 0 : index
    %c0_2 = arith.constant 0 : index
    %1 = vector.load %arg2[%c0_1, %c0_2] : memref<72x8xbf16, #tpu.memory_space<vmem>>, vector<72x8xbf16>
    %cst = arith.constant dense<0.000000e+00> : vector<128x8xf32>
    %2 = tpu.matmul %0, %1, %cst {dimension_numbers = #tpu.dot_dimension_numbers<[1], [0], [0], [1], [0, 0, 1, 1], [], []>} : vector<128x72xbf16>, vector<72x8xbf16>, vector<128x8xf32> -> vector<128x8xf32>
    %c0_3 = arith.constant 0 : index
    %c0_4 = arith.constant 0 : index
    %3 = vector.load %arg3[%c0_3, %c0_4] : memref<1x8xf32, #tpu.memory_space<vmem>>, vector<1x8xf32>
    %4 = vector.broadcast %3 : vector<1x8xf32> to vector<128x8xf32>
    %5 = arith.mulf %2, %4 : vector<128x8xf32>
    %c0_5 = arith.constant 0 : index
    %c0_6 = arith.constant 0 : index
    %6 = vector.load %arg4[%c0_5, %c0_6] : memref<1x8xf32, #tpu.memory_space<vmem>>, vector<1x8xf32>
    %7 = vector.broadcast %6 : vector<1x8xf32> to vector<128x8xf32>
    %8 = arith.addf %5, %7 : vector<128x8xf32>
    %cst_7 = arith.constant 0.000000e+00 : f32
    %9 = vector.broadcast %cst_7 : f32 to vector<128x8xf32>
    %10 = arith.maximumf %8, %9 : vector<128x8xf32>
    %c0_8 = arith.constant 0 : index
    %c0_9 = arith.constant 0 : index
    %11 = vector.load %arg5[%c0_8, %c0_9] : memref<128x8xf32, #tpu.memory_space<vmem>>, vector<128x8xf32>
    tpu.vector_store %arg5[%c0_8, %c0_9], %10 {strides = array<i32>} : memref<128x8xf32, #tpu.memory_space<vmem>>, vector<128x8xf32>,
    return
  }
  func.func @transform_0(%arg0: i32) -> (i32, i32) {
    %c0_i32 = arith.constant 0 : i32
    %c0_i32_0 = arith.constant 0 : i32
    return %arg0, %c0_i32 : i32, i32
  }
  func.func @transform_1(%arg0: i32) -> (i32, i32) {
    %c0_i32 = arith.constant 0 : i32
    %c0_i32_0 = arith.constant 0 : i32
    %c0_i32_1 = arith.constant 0 : i32
    return %c0_i32, %c0_i32_0 : i32, i32
  }
  func.func @transform_2(%arg0: i32) -> (i32, i32) {
    %c0_i32 = arith.constant 0 : i32
    %c0_i32_0 = arith.constant 0 : i32
    %c0_i32_1 = arith.constant 0 : i32
    return %c0_i32, %c0_i32_0 : i32, i32
  }
  func.func @transform_3(%arg0: i32) -> (i32, i32) {
    %c0_i32 = arith.constant 0 : i32
    %c0_i32_0 = arith.constant 0 : i32
    %c0_i32_1 = arith.constant 0 : i32
    return %c0_i32, %c0_i32_0 : i32, i32
  }
  func.func @transform_4(%arg0: i32) -> (i32, i32) {
    %c0_i32 = arith.constant 0 : i32
    %c0_i32_0 = arith.constant 0 : i32
    return %arg0, %c0_i32 : i32, i32
  }
}

module attributes {stable_mosaic.version = 11 : i64} {
  func.func @_mm_affine_kernel(%arg0: i32, %arg1: memref<128x8xbf16, #tpu.memory_space<vmem>>, %arg2: memref<8x16xbf16, #tpu.memory_space<vmem>>, %arg3: memref<1x16xf32, #tpu.memory_space<vmem>>, %arg4: memref<1x16xf32, #tpu.memory_space<vmem>>, %arg5: memref<128x16xf32, #tpu.memory_space<vmem>>) attributes {dimension_semantics = [#tpu.dimension_semantics<parallel>], iteration_bounds = array<i64: 1>, scalar_prefetch = 0 : i64, scratch_operands = 0 : i64, tpu.core_type = #tpu.core_type<tc>, window_params = [{transform_indices = @transform_0, window_bounds = array<i64: 128, 8>}, {pipeline_mode = #tpu.pipeline_mode<synchronous>, transform_indices = @transform_1, window_bounds = array<i64: 8, 16>}, {pipeline_mode = #tpu.pipeline_mode<synchronous>, transform_indices = @transform_2, window_bounds = array<i64: 1, 16>}, {pipeline_mode = #tpu.pipeline_mode<synchronous>, transform_indices = @transform_3, window_bounds = array<i64: 1, 16>}, {transform_indices = @transform_4, window_bounds = array<i64: 128, 16>}]} {
    %c0 = arith.constant 0 : index
    %c0_0 = arith.constant 0 : index
    %0 = vector.load %arg1[%c0, %c0_0] : memref<128x8xbf16, #tpu.memory_space<vmem>>, vector<128x8xbf16>
    %c0_1 = arith.constant 0 : index
    %c0_2 = arith.constant 0 : index
    %1 = vector.load %arg2[%c0_1, %c0_2] : memref<8x16xbf16, #tpu.memory_space<vmem>>, vector<8x16xbf16>
    %cst = arith.constant dense<0.000000e+00> : vector<128x16xf32>
    %2 = tpu.matmul %0, %1, %cst {dimension_numbers = #tpu.dot_dimension_numbers<[1], [0], [0], [1], [0, 0, 1, 1], [], []>} : vector<128x8xbf16>, vector<8x16xbf16>, vector<128x16xf32> -> vector<128x16xf32>
    %c0_3 = arith.constant 0 : index
    %c0_4 = arith.constant 0 : index
    %3 = vector.load %arg3[%c0_3, %c0_4] : memref<1x16xf32, #tpu.memory_space<vmem>>, vector<1x16xf32>
    %4 = vector.broadcast %3 : vector<1x16xf32> to vector<128x16xf32>
    %5 = arith.mulf %2, %4 : vector<128x16xf32>
    %c0_5 = arith.constant 0 : index
    %c0_6 = arith.constant 0 : index
    %6 = vector.load %arg4[%c0_5, %c0_6] : memref<1x16xf32, #tpu.memory_space<vmem>>, vector<1x16xf32>
    %7 = vector.broadcast %6 : vector<1x16xf32> to vector<128x16xf32>
    %8 = arith.addf %5, %7 : vector<128x16xf32>
    %c0_7 = arith.constant 0 : index
    %c0_8 = arith.constant 0 : index
    %9 = vector.load %arg5[%c0_7, %c0_8] : memref<128x16xf32, #tpu.memory_space<vmem>>, vector<128x16xf32>
    tpu.vector_store %arg5[%c0_7, %c0_8], %8 {strides = array<i32>} : memref<128x16xf32, #tpu.memory_space<vmem>>, vector<128x16xf32>,
    return
  }
  func.func @transform_0(%arg0: i32) -> (i32, i32) {
    %c0_i32 = arith.constant 0 : i32
    %c0_i32_0 = arith.constant 0 : i32
    return %arg0, %c0_i32 : i32, i32
  }
  func.func @transform_1(%arg0: i32) -> (i32, i32) {
    %c0_i32 = arith.constant 0 : i32
    %c0_i32_0 = arith.constant 0 : i32
    %c0_i32_1 = arith.constant 0 : i32
    return %c0_i32, %c0_i32_0 : i32, i32
  }
  func.func @transform_2(%arg0: i32) -> (i32, i32) {
    %c0_i32 = arith.constant 0 : i32
    %c0_i32_0 = arith.constant 0 : i32
    %c0_i32_1 = arith.constant 0 : i32
    return %c0_i32, %c0_i32_0 : i32, i32
  }
  func.func @transform_3(%arg0: i32) -> (i32, i32) {
    %c0_i32 = arith.constant 0 : i32
    %c0_i32_0 = arith.constant 0 : i32
    %c0_i32_1 = arith.constant 0 : i32
    return %c0_i32, %c0_i32_0 : i32, i32
  }
  func.func @transform_4(%arg0: i32) -> (i32, i32) {
    %c0_i32 = arith.constant 0 : i32
    %c0_i32_0 = arith.constant 0 : i32
    return %arg0, %c0_i32 : i32, i32
  }
}

module attributes {stable_mosaic.version = 11 : i64} {
  func.func @_spatial_mean_kernel(%arg0: memref<2x64x16xf32, #tpu.memory_space<vmem>>, %arg1: memref<2x16xf32, #tpu.memory_space<vmem>>) attributes {dimension_semantics = [], scalar_prefetch = 0 : i64, scratch_operands = 0 : i64, tpu.core_type = #tpu.core_type<tc>} {
    %c0 = arith.constant 0 : index
    %c0_0 = arith.constant 0 : index
    %c0_1 = arith.constant 0 : index
    %0 = vector.load %arg0[%c0, %c0_0, %c0_1] : memref<2x64x16xf32, #tpu.memory_space<vmem>>, vector<2x64x16xf32>
    %cst = arith.constant dense<0.000000e+00> : vector<2x16xf32>
    %1 = vector.multi_reduction <add>, %0, %cst [1] : vector<2x64x16xf32> to vector<2x16xf32>
    %cst_2 = arith.constant 6.400000e+01 : f32
    %2 = vector.broadcast %cst_2 : f32 to vector<2x16xf32>
    %3 = arith.divf %1, %2 : vector<2x16xf32>
    %c0_3 = arith.constant 0 : index
    %c0_4 = arith.constant 0 : index
    %4 = vector.load %arg1[%c0_3, %c0_4] : memref<2x16xf32, #tpu.memory_space<vmem>>, vector<2x16xf32>
    tpu.vector_store %arg1[%c0_3, %c0_4], %3 {strides = array<i32>} : memref<2x16xf32, #tpu.memory_space<vmem>>, vector<2x16xf32>,
    return
  }
}

module attributes {stable_mosaic.version = 11 : i64} {
  func.func @_se_fc_kernel(%arg0: memref<2x16xf32, #tpu.memory_space<vmem>>, %arg1: memref<16x4xf32, #tpu.memory_space<vmem>>, %arg2: memref<1x4xf32, #tpu.memory_space<vmem>>, %arg3: memref<4x16xf32, #tpu.memory_space<vmem>>, %arg4: memref<1x16xf32, #tpu.memory_space<vmem>>, %arg5: memref<2x16xf32, #tpu.memory_space<vmem>>) attributes {dimension_semantics = [], scalar_prefetch = 0 : i64, scratch_operands = 0 : i64, tpu.core_type = #tpu.core_type<tc>} {
    %c0 = arith.constant 0 : index
    %c0_0 = arith.constant 0 : index
    %0 = vector.load %arg0[%c0, %c0_0] : memref<2x16xf32, #tpu.memory_space<vmem>>, vector<2x16xf32>
    %c0_1 = arith.constant 0 : index
    %c0_2 = arith.constant 0 : index
    %1 = vector.load %arg1[%c0_1, %c0_2] : memref<16x4xf32, #tpu.memory_space<vmem>>, vector<16x4xf32>
    %cst = arith.constant dense<0.000000e+00> : vector<2x4xf32>
    %2 = tpu.matmul %0, %1, %cst {dimension_numbers = #tpu.dot_dimension_numbers<[1], [0], [0], [1], [0, 0, 1, 1], [], []>} : vector<2x16xf32>, vector<16x4xf32>, vector<2x4xf32> -> vector<2x4xf32>
    %c0_3 = arith.constant 0 : index
    %c0_4 = arith.constant 0 : index
    %3 = vector.load %arg2[%c0_3, %c0_4] : memref<1x4xf32, #tpu.memory_space<vmem>>, vector<1x4xf32>
    %4 = vector.broadcast %3 : vector<1x4xf32> to vector<2x4xf32>
    %5 = arith.addf %2, %4 : vector<2x4xf32>
    %cst_5 = arith.constant 0.000000e+00 : f32
    %6 = vector.broadcast %cst_5 : f32 to vector<2x4xf32>
    %7 = arith.maximumf %5, %6 : vector<2x4xf32>
    %c0_6 = arith.constant 0 : index
    %c0_7 = arith.constant 0 : index
    %8 = vector.load %arg3[%c0_6, %c0_7] : memref<4x16xf32, #tpu.memory_space<vmem>>, vector<4x16xf32>
    %cst_8 = arith.constant dense<0.000000e+00> : vector<2x16xf32>
    %9 = tpu.matmul %7, %8, %cst_8 {dimension_numbers = #tpu.dot_dimension_numbers<[1], [0], [0], [1], [0, 0, 1, 1], [], []>} : vector<2x4xf32>, vector<4x16xf32>, vector<2x16xf32> -> vector<2x16xf32>
    %c0_9 = arith.constant 0 : index
    %c0_10 = arith.constant 0 : index
    %10 = vector.load %arg4[%c0_9, %c0_10] : memref<1x16xf32, #tpu.memory_space<vmem>>, vector<1x16xf32>
    %11 = vector.broadcast %10 : vector<1x16xf32> to vector<2x16xf32>
    %12 = arith.addf %9, %11 : vector<2x16xf32>
    %c0_11 = arith.constant 0 : index
    %c0_12 = arith.constant 0 : index
    %13 = vector.load %arg5[%c0_11, %c0_12] : memref<2x16xf32, #tpu.memory_space<vmem>>, vector<2x16xf32>
    tpu.vector_store %arg5[%c0_11, %c0_12], %12 {strides = array<i32>} : memref<2x16xf32, #tpu.memory_space<vmem>>, vector<2x16xf32>,
    return
  }
}

module attributes {stable_mosaic.version = 11 : i64} {
  func.func @_se_gate_add_relu_kernel(%arg0: memref<2x64x16xf32, #tpu.memory_space<vmem>>, %arg1: memref<2x1x16xf32, #tpu.memory_space<vmem>>, %arg2: memref<2x64x16xf32, #tpu.memory_space<vmem>>, %arg3: memref<2x64x16xf32, #tpu.memory_space<vmem>>) attributes {dimension_semantics = [], scalar_prefetch = 0 : i64, scratch_operands = 0 : i64, tpu.core_type = #tpu.core_type<tc>} {
    %c0 = arith.constant 0 : index
    %c0_0 = arith.constant 0 : index
    %c0_1 = arith.constant 0 : index
    %0 = vector.load %arg0[%c0, %c0_0, %c0_1] : memref<2x64x16xf32, #tpu.memory_space<vmem>>, vector<2x64x16xf32>
    %c0_2 = arith.constant 0 : index
    %c0_3 = arith.constant 0 : index
    %c0_4 = arith.constant 0 : index
    %1 = vector.load %arg1[%c0_2, %c0_3, %c0_4] : memref<2x1x16xf32, #tpu.memory_space<vmem>>, vector<2x1x16xf32>
    %2 = arith.negf %1 : vector<2x1x16xf32>
    %3 = math.exp %2 : vector<2x1x16xf32>
    %cst = arith.constant 1.000000e+00 : f32
    %4 = vector.broadcast %cst : f32 to vector<2x1x16xf32>
    %5 = arith.addf %4, %3 : vector<2x1x16xf32>
    %6 = arith.divf %4, %5 : vector<2x1x16xf32>
    %7 = vector.broadcast %6 : vector<2x1x16xf32> to vector<2x64x16xf32>
    %8 = arith.mulf %0, %7 : vector<2x64x16xf32>
    %c0_5 = arith.constant 0 : index
    %c0_6 = arith.constant 0 : index
    %c0_7 = arith.constant 0 : index
    %9 = vector.load %arg2[%c0_5, %c0_6, %c0_7] : memref<2x64x16xf32, #tpu.memory_space<vmem>>, vector<2x64x16xf32>
    %10 = arith.addf %8, %9 : vector<2x64x16xf32>
    %cst_8 = arith.constant 0.000000e+00 : f32
    %11 = vector.broadcast %cst_8 : f32 to vector<2x64x16xf32>
    %12 = arith.maximumf %10, %11 : vector<2x64x16xf32>
    %c0_9 = arith.constant 0 : index
    %c0_10 = arith.constant 0 : index
    %c0_11 = arith.constant 0 : index
    %13 = vector.load %arg3[%c0_9, %c0_10, %c0_11] : memref<2x64x16xf32, #tpu.memory_space<vmem>>, vector<2x64x16xf32>
    tpu.vector_store %arg3[%c0_9, %c0_10, %c0_11], %12 {strides = array<i32>} : memref<2x64x16xf32, #tpu.memory_space<vmem>>, vector<2x64x16xf32>,
    return
  }
}

module attributes {stable_mosaic.version = 11 : i64} {
  func.func @_mm_affine_kernel(%arg0: i32, %arg1: memref<128x16xbf16, #tpu.memory_space<vmem>>, %arg2: memref<16x16xbf16, #tpu.memory_space<vmem>>, %arg3: memref<1x16xf32, #tpu.memory_space<vmem>>, %arg4: memref<1x16xf32, #tpu.memory_space<vmem>>, %arg5: memref<128x16xf32, #tpu.memory_space<vmem>>) attributes {dimension_semantics = [#tpu.dimension_semantics<parallel>], iteration_bounds = array<i64: 1>, scalar_prefetch = 0 : i64, scratch_operands = 0 : i64, tpu.core_type = #tpu.core_type<tc>, window_params = [{transform_indices = @transform_0, window_bounds = array<i64: 128, 16>}, {pipeline_mode = #tpu.pipeline_mode<synchronous>, transform_indices = @transform_1, window_bounds = array<i64: 16, 16>}, {pipeline_mode = #tpu.pipeline_mode<synchronous>, transform_indices = @transform_2, window_bounds = array<i64: 1, 16>}, {pipeline_mode = #tpu.pipeline_mode<synchronous>, transform_indices = @transform_3, window_bounds = array<i64: 1, 16>}, {transform_indices = @transform_4, window_bounds = array<i64: 128, 16>}]} {
    %c0 = arith.constant 0 : index
    %c0_0 = arith.constant 0 : index
    %0 = vector.load %arg1[%c0, %c0_0] : memref<128x16xbf16, #tpu.memory_space<vmem>>, vector<128x16xbf16>
    %c0_1 = arith.constant 0 : index
    %c0_2 = arith.constant 0 : index
    %1 = vector.load %arg2[%c0_1, %c0_2] : memref<16x16xbf16, #tpu.memory_space<vmem>>, vector<16x16xbf16>
    %cst = arith.constant dense<0.000000e+00> : vector<128x16xf32>
    %2 = tpu.matmul %0, %1, %cst {dimension_numbers = #tpu.dot_dimension_numbers<[1], [0], [0], [1], [0, 0, 1, 1], [], []>} : vector<128x16xbf16>, vector<16x16xbf16>, vector<128x16xf32> -> vector<128x16xf32>
    %c0_3 = arith.constant 0 : index
    %c0_4 = arith.constant 0 : index
    %3 = vector.load %arg3[%c0_3, %c0_4] : memref<1x16xf32, #tpu.memory_space<vmem>>, vector<1x16xf32>
    %4 = vector.broadcast %3 : vector<1x16xf32> to vector<128x16xf32>
    %5 = arith.mulf %2, %4 : vector<128x16xf32>
    %c0_5 = arith.constant 0 : index
    %c0_6 = arith.constant 0 : index
    %6 = vector.load %arg4[%c0_5, %c0_6] : memref<1x16xf32, #tpu.memory_space<vmem>>, vector<1x16xf32>
    %7 = vector.broadcast %6 : vector<1x16xf32> to vector<128x16xf32>
    %8 = arith.addf %5, %7 : vector<128x16xf32>
    %cst_7 = arith.constant 0.000000e+00 : f32
    %9 = vector.broadcast %cst_7 : f32 to vector<128x16xf32>
    %10 = arith.maximumf %8, %9 : vector<128x16xf32>
    %c0_8 = arith.constant 0 : index
    %c0_9 = arith.constant 0 : index
    %11 = vector.load %arg5[%c0_8, %c0_9] : memref<128x16xf32, #tpu.memory_space<vmem>>, vector<128x16xf32>
    tpu.vector_store %arg5[%c0_8, %c0_9], %10 {strides = array<i32>} : memref<128x16xf32, #tpu.memory_space<vmem>>, vector<128x16xf32>,
    return
  }
  func.func @transform_0(%arg0: i32) -> (i32, i32) {
    %c0_i32 = arith.constant 0 : i32
    %c0_i32_0 = arith.constant 0 : i32
    return %arg0, %c0_i32 : i32, i32
  }
  func.func @transform_1(%arg0: i32) -> (i32, i32) {
    %c0_i32 = arith.constant 0 : i32
    %c0_i32_0 = arith.constant 0 : i32
    %c0_i32_1 = arith.constant 0 : i32
    return %c0_i32, %c0_i32_0 : i32, i32
  }
  func.func @transform_2(%arg0: i32) -> (i32, i32) {
    %c0_i32 = arith.constant 0 : i32
    %c0_i32_0 = arith.constant 0 : i32
    %c0_i32_1 = arith.constant 0 : i32
    return %c0_i32, %c0_i32_0 : i32, i32
  }
  func.func @transform_3(%arg0: i32) -> (i32, i32) {
    %c0_i32 = arith.constant 0 : i32
    %c0_i32_0 = arith.constant 0 : i32
    %c0_i32_1 = arith.constant 0 : i32
    return %c0_i32, %c0_i32_0 : i32, i32
  }
  func.func @transform_4(%arg0: i32) -> (i32, i32) {
    %c0_i32 = arith.constant 0 : i32
    %c0_i32_0 = arith.constant 0 : i32
    return %arg0, %c0_i32 : i32, i32
  }
}

module attributes {stable_mosaic.version = 11 : i64} {
  func.func @_mm_affine_kernel(%arg0: i32, %arg1: memref<32x144xbf16, #tpu.memory_space<vmem>>, %arg2: memref<144x16xbf16, #tpu.memory_space<vmem>>, %arg3: memref<1x16xf32, #tpu.memory_space<vmem>>, %arg4: memref<1x16xf32, #tpu.memory_space<vmem>>, %arg5: memref<32x16xf32, #tpu.memory_space<vmem>>) attributes {dimension_semantics = [#tpu.dimension_semantics<parallel>], iteration_bounds = array<i64: 1>, scalar_prefetch = 0 : i64, scratch_operands = 0 : i64, tpu.core_type = #tpu.core_type<tc>, window_params = [{transform_indices = @transform_0, window_bounds = array<i64: 32, 144>}, {pipeline_mode = #tpu.pipeline_mode<synchronous>, transform_indices = @transform_1, window_bounds = array<i64: 144, 16>}, {pipeline_mode = #tpu.pipeline_mode<synchronous>, transform_indices = @transform_2, window_bounds = array<i64: 1, 16>}, {pipeline_mode = #tpu.pipeline_mode<synchronous>, transform_indices = @transform_3, window_bounds = array<i64: 1, 16>}, {transform_indices = @transform_4, window_bounds = array<i64: 32, 16>}]} {
    %c0 = arith.constant 0 : index
    %c0_0 = arith.constant 0 : index
    %0 = vector.load %arg1[%c0, %c0_0] : memref<32x144xbf16, #tpu.memory_space<vmem>>, vector<32x144xbf16>
    %c0_1 = arith.constant 0 : index
    %c0_2 = arith.constant 0 : index
    %1 = vector.load %arg2[%c0_1, %c0_2] : memref<144x16xbf16, #tpu.memory_space<vmem>>, vector<144x16xbf16>
    %cst = arith.constant dense<0.000000e+00> : vector<32x16xf32>
    %2 = tpu.matmul %0, %1, %cst {dimension_numbers = #tpu.dot_dimension_numbers<[1], [0], [0], [1], [0, 0, 1, 1], [], []>} : vector<32x144xbf16>, vector<144x16xbf16>, vector<32x16xf32> -> vector<32x16xf32>
    %c0_3 = arith.constant 0 : index
    %c0_4 = arith.constant 0 : index
    %3 = vector.load %arg3[%c0_3, %c0_4] : memref<1x16xf32, #tpu.memory_space<vmem>>, vector<1x16xf32>
    %4 = vector.broadcast %3 : vector<1x16xf32> to vector<32x16xf32>
    %5 = arith.mulf %2, %4 : vector<32x16xf32>
    %c0_5 = arith.constant 0 : index
    %c0_6 = arith.constant 0 : index
    %6 = vector.load %arg4[%c0_5, %c0_6] : memref<1x16xf32, #tpu.memory_space<vmem>>, vector<1x16xf32>
    %7 = vector.broadcast %6 : vector<1x16xf32> to vector<32x16xf32>
    %8 = arith.addf %5, %7 : vector<32x16xf32>
    %cst_7 = arith.constant 0.000000e+00 : f32
    %9 = vector.broadcast %cst_7 : f32 to vector<32x16xf32>
    %10 = arith.maximumf %8, %9 : vector<32x16xf32>
    %c0_8 = arith.constant 0 : index
    %c0_9 = arith.constant 0 : index
    %11 = vector.load %arg5[%c0_8, %c0_9] : memref<32x16xf32, #tpu.memory_space<vmem>>, vector<32x16xf32>
    tpu.vector_store %arg5[%c0_8, %c0_9], %10 {strides = array<i32>} : memref<32x16xf32, #tpu.memory_space<vmem>>, vector<32x16xf32>,
    return
  }
  func.func @transform_0(%arg0: i32) -> (i32, i32) {
    %c0_i32 = arith.constant 0 : i32
    %c0_i32_0 = arith.constant 0 : i32
    return %arg0, %c0_i32 : i32, i32
  }
  func.func @transform_1(%arg0: i32) -> (i32, i32) {
    %c0_i32 = arith.constant 0 : i32
    %c0_i32_0 = arith.constant 0 : i32
    %c0_i32_1 = arith.constant 0 : i32
    return %c0_i32, %c0_i32_0 : i32, i32
  }
  func.func @transform_2(%arg0: i32) -> (i32, i32) {
    %c0_i32 = arith.constant 0 : i32
    %c0_i32_0 = arith.constant 0 : i32
    %c0_i32_1 = arith.constant 0 : i32
    return %c0_i32, %c0_i32_0 : i32, i32
  }
  func.func @transform_3(%arg0: i32) -> (i32, i32) {
    %c0_i32 = arith.constant 0 : i32
    %c0_i32_0 = arith.constant 0 : i32
    %c0_i32_1 = arith.constant 0 : i32
    return %c0_i32, %c0_i32_0 : i32, i32
  }
  func.func @transform_4(%arg0: i32) -> (i32, i32) {
    %c0_i32 = arith.constant 0 : i32
    %c0_i32_0 = arith.constant 0 : i32
    return %arg0, %c0_i32 : i32, i32
  }
}

module attributes {stable_mosaic.version = 11 : i64} {
  func.func @_mm_affine_kernel(%arg0: i32, %arg1: memref<32x16xbf16, #tpu.memory_space<vmem>>, %arg2: memref<16x32xbf16, #tpu.memory_space<vmem>>, %arg3: memref<1x32xf32, #tpu.memory_space<vmem>>, %arg4: memref<1x32xf32, #tpu.memory_space<vmem>>, %arg5: memref<32x32xf32, #tpu.memory_space<vmem>>) attributes {dimension_semantics = [#tpu.dimension_semantics<parallel>], iteration_bounds = array<i64: 1>, scalar_prefetch = 0 : i64, scratch_operands = 0 : i64, tpu.core_type = #tpu.core_type<tc>, window_params = [{transform_indices = @transform_0, window_bounds = array<i64: 32, 16>}, {pipeline_mode = #tpu.pipeline_mode<synchronous>, transform_indices = @transform_1, window_bounds = array<i64: 16, 32>}, {pipeline_mode = #tpu.pipeline_mode<synchronous>, transform_indices = @transform_2, window_bounds = array<i64: 1, 32>}, {pipeline_mode = #tpu.pipeline_mode<synchronous>, transform_indices = @transform_3, window_bounds = array<i64: 1, 32>}, {transform_indices = @transform_4, window_bounds = array<i64: 32, 32>}]} {
    %c0 = arith.constant 0 : index
    %c0_0 = arith.constant 0 : index
    %0 = vector.load %arg1[%c0, %c0_0] : memref<32x16xbf16, #tpu.memory_space<vmem>>, vector<32x16xbf16>
    %c0_1 = arith.constant 0 : index
    %c0_2 = arith.constant 0 : index
    %1 = vector.load %arg2[%c0_1, %c0_2] : memref<16x32xbf16, #tpu.memory_space<vmem>>, vector<16x32xbf16>
    %cst = arith.constant dense<0.000000e+00> : vector<32x32xf32>
    %2 = tpu.matmul %0, %1, %cst {dimension_numbers = #tpu.dot_dimension_numbers<[1], [0], [0], [1], [0, 0, 1, 1], [], []>} : vector<32x16xbf16>, vector<16x32xbf16>, vector<32x32xf32> -> vector<32x32xf32>
    %c0_3 = arith.constant 0 : index
    %c0_4 = arith.constant 0 : index
    %3 = vector.load %arg3[%c0_3, %c0_4] : memref<1x32xf32, #tpu.memory_space<vmem>>, vector<1x32xf32>
    %4 = vector.broadcast %3 : vector<1x32xf32> to vector<32x32xf32>
    %5 = arith.mulf %2, %4 : vector<32x32xf32>
    %c0_5 = arith.constant 0 : index
    %c0_6 = arith.constant 0 : index
    %6 = vector.load %arg4[%c0_5, %c0_6] : memref<1x32xf32, #tpu.memory_space<vmem>>, vector<1x32xf32>
    %7 = vector.broadcast %6 : vector<1x32xf32> to vector<32x32xf32>
    %8 = arith.addf %5, %7 : vector<32x32xf32>
    %c0_7 = arith.constant 0 : index
    %c0_8 = arith.constant 0 : index
    %9 = vector.load %arg5[%c0_7, %c0_8] : memref<32x32xf32, #tpu.memory_space<vmem>>, vector<32x32xf32>
    tpu.vector_store %arg5[%c0_7, %c0_8], %8 {strides = array<i32>} : memref<32x32xf32, #tpu.memory_space<vmem>>, vector<32x32xf32>,
    return
  }
  func.func @transform_0(%arg0: i32) -> (i32, i32) {
    %c0_i32 = arith.constant 0 : i32
    %c0_i32_0 = arith.constant 0 : i32
    return %arg0, %c0_i32 : i32, i32
  }
  func.func @transform_1(%arg0: i32) -> (i32, i32) {
    %c0_i32 = arith.constant 0 : i32
    %c0_i32_0 = arith.constant 0 : i32
    %c0_i32_1 = arith.constant 0 : i32
    return %c0_i32, %c0_i32_0 : i32, i32
  }
  func.func @transform_2(%arg0: i32) -> (i32, i32) {
    %c0_i32 = arith.constant 0 : i32
    %c0_i32_0 = arith.constant 0 : i32
    %c0_i32_1 = arith.constant 0 : i32
    return %c0_i32, %c0_i32_0 : i32, i32
  }
  func.func @transform_3(%arg0: i32) -> (i32, i32) {
    %c0_i32 = arith.constant 0 : i32
    %c0_i32_0 = arith.constant 0 : i32
    %c0_i32_1 = arith.constant 0 : i32
    return %c0_i32, %c0_i32_0 : i32, i32
  }
  func.func @transform_4(%arg0: i32) -> (i32, i32) {
    %c0_i32 = arith.constant 0 : i32
    %c0_i32_0 = arith.constant 0 : i32
    return %arg0, %c0_i32 : i32, i32
  }
}

module attributes {stable_mosaic.version = 11 : i64} {
  func.func @_spatial_mean_kernel(%arg0: memref<2x16x32xf32, #tpu.memory_space<vmem>>, %arg1: memref<2x32xf32, #tpu.memory_space<vmem>>) attributes {dimension_semantics = [], scalar_prefetch = 0 : i64, scratch_operands = 0 : i64, tpu.core_type = #tpu.core_type<tc>} {
    %c0 = arith.constant 0 : index
    %c0_0 = arith.constant 0 : index
    %c0_1 = arith.constant 0 : index
    %0 = vector.load %arg0[%c0, %c0_0, %c0_1] : memref<2x16x32xf32, #tpu.memory_space<vmem>>, vector<2x16x32xf32>
    %cst = arith.constant dense<0.000000e+00> : vector<2x32xf32>
    %1 = vector.multi_reduction <add>, %0, %cst [1] : vector<2x16x32xf32> to vector<2x32xf32>
    %cst_2 = arith.constant 1.600000e+01 : f32
    %2 = vector.broadcast %cst_2 : f32 to vector<2x32xf32>
    %3 = arith.divf %1, %2 : vector<2x32xf32>
    %c0_3 = arith.constant 0 : index
    %c0_4 = arith.constant 0 : index
    %4 = vector.load %arg1[%c0_3, %c0_4] : memref<2x32xf32, #tpu.memory_space<vmem>>, vector<2x32xf32>
    tpu.vector_store %arg1[%c0_3, %c0_4], %3 {strides = array<i32>} : memref<2x32xf32, #tpu.memory_space<vmem>>, vector<2x32xf32>,
    return
  }
}

module attributes {stable_mosaic.version = 11 : i64} {
  func.func @_se_fc_kernel(%arg0: memref<2x32xf32, #tpu.memory_space<vmem>>, %arg1: memref<32x8xf32, #tpu.memory_space<vmem>>, %arg2: memref<1x8xf32, #tpu.memory_space<vmem>>, %arg3: memref<8x32xf32, #tpu.memory_space<vmem>>, %arg4: memref<1x32xf32, #tpu.memory_space<vmem>>, %arg5: memref<2x32xf32, #tpu.memory_space<vmem>>) attributes {dimension_semantics = [], scalar_prefetch = 0 : i64, scratch_operands = 0 : i64, tpu.core_type = #tpu.core_type<tc>} {
    %c0 = arith.constant 0 : index
    %c0_0 = arith.constant 0 : index
    %0 = vector.load %arg0[%c0, %c0_0] : memref<2x32xf32, #tpu.memory_space<vmem>>, vector<2x32xf32>
    %c0_1 = arith.constant 0 : index
    %c0_2 = arith.constant 0 : index
    %1 = vector.load %arg1[%c0_1, %c0_2] : memref<32x8xf32, #tpu.memory_space<vmem>>, vector<32x8xf32>
    %cst = arith.constant dense<0.000000e+00> : vector<2x8xf32>
    %2 = tpu.matmul %0, %1, %cst {dimension_numbers = #tpu.dot_dimension_numbers<[1], [0], [0], [1], [0, 0, 1, 1], [], []>} : vector<2x32xf32>, vector<32x8xf32>, vector<2x8xf32> -> vector<2x8xf32>
    %c0_3 = arith.constant 0 : index
    %c0_4 = arith.constant 0 : index
    %3 = vector.load %arg2[%c0_3, %c0_4] : memref<1x8xf32, #tpu.memory_space<vmem>>, vector<1x8xf32>
    %4 = vector.broadcast %3 : vector<1x8xf32> to vector<2x8xf32>
    %5 = arith.addf %2, %4 : vector<2x8xf32>
    %cst_5 = arith.constant 0.000000e+00 : f32
    %6 = vector.broadcast %cst_5 : f32 to vector<2x8xf32>
    %7 = arith.maximumf %5, %6 : vector<2x8xf32>
    %c0_6 = arith.constant 0 : index
    %c0_7 = arith.constant 0 : index
    %8 = vector.load %arg3[%c0_6, %c0_7] : memref<8x32xf32, #tpu.memory_space<vmem>>, vector<8x32xf32>
    %cst_8 = arith.constant dense<0.000000e+00> : vector<2x32xf32>
    %9 = tpu.matmul %7, %8, %cst_8 {dimension_numbers = #tpu.dot_dimension_numbers<[1], [0], [0], [1], [0, 0, 1, 1], [], []>} : vector<2x8xf32>, vector<8x32xf32>, vector<2x32xf32> -> vector<2x32xf32>
    %c0_9 = arith.constant 0 : index
    %c0_10 = arith.constant 0 : index
    %10 = vector.load %arg4[%c0_9, %c0_10] : memref<1x32xf32, #tpu.memory_space<vmem>>, vector<1x32xf32>
    %11 = vector.broadcast %10 : vector<1x32xf32> to vector<2x32xf32>
    %12 = arith.addf %9, %11 : vector<2x32xf32>
    %c0_11 = arith.constant 0 : index
    %c0_12 = arith.constant 0 : index
    %13 = vector.load %arg5[%c0_11, %c0_12] : memref<2x32xf32, #tpu.memory_space<vmem>>, vector<2x32xf32>
    tpu.vector_store %arg5[%c0_11, %c0_12], %12 {strides = array<i32>} : memref<2x32xf32, #tpu.memory_space<vmem>>, vector<2x32xf32>,
    return
  }
}

module attributes {stable_mosaic.version = 11 : i64} {
  func.func @_se_gate_add_relu_kernel(%arg0: memref<2x16x32xf32, #tpu.memory_space<vmem>>, %arg1: memref<2x1x32xf32, #tpu.memory_space<vmem>>, %arg2: memref<2x16x32xf32, #tpu.memory_space<vmem>>, %arg3: memref<2x16x32xf32, #tpu.memory_space<vmem>>) attributes {dimension_semantics = [], scalar_prefetch = 0 : i64, scratch_operands = 0 : i64, tpu.core_type = #tpu.core_type<tc>} {
    %c0 = arith.constant 0 : index
    %c0_0 = arith.constant 0 : index
    %c0_1 = arith.constant 0 : index
    %0 = vector.load %arg0[%c0, %c0_0, %c0_1] : memref<2x16x32xf32, #tpu.memory_space<vmem>>, vector<2x16x32xf32>
    %c0_2 = arith.constant 0 : index
    %c0_3 = arith.constant 0 : index
    %c0_4 = arith.constant 0 : index
    %1 = vector.load %arg1[%c0_2, %c0_3, %c0_4] : memref<2x1x32xf32, #tpu.memory_space<vmem>>, vector<2x1x32xf32>
    %2 = arith.negf %1 : vector<2x1x32xf32>
    %3 = math.exp %2 : vector<2x1x32xf32>
    %cst = arith.constant 1.000000e+00 : f32
    %4 = vector.broadcast %cst : f32 to vector<2x1x32xf32>
    %5 = arith.addf %4, %3 : vector<2x1x32xf32>
    %6 = arith.divf %4, %5 : vector<2x1x32xf32>
    %7 = vector.broadcast %6 : vector<2x1x32xf32> to vector<2x16x32xf32>
    %8 = arith.mulf %0, %7 : vector<2x16x32xf32>
    %c0_5 = arith.constant 0 : index
    %c0_6 = arith.constant 0 : index
    %c0_7 = arith.constant 0 : index
    %9 = vector.load %arg2[%c0_5, %c0_6, %c0_7] : memref<2x16x32xf32, #tpu.memory_space<vmem>>, vector<2x16x32xf32>
    %10 = arith.addf %8, %9 : vector<2x16x32xf32>
    %cst_8 = arith.constant 0.000000e+00 : f32
    %11 = vector.broadcast %cst_8 : f32 to vector<2x16x32xf32>
    %12 = arith.maximumf %10, %11 : vector<2x16x32xf32>
    %c0_9 = arith.constant 0 : index
    %c0_10 = arith.constant 0 : index
    %c0_11 = arith.constant 0 : index
    %13 = vector.load %arg3[%c0_9, %c0_10, %c0_11] : memref<2x16x32xf32, #tpu.memory_space<vmem>>, vector<2x16x32xf32>
    tpu.vector_store %arg3[%c0_9, %c0_10, %c0_11], %12 {strides = array<i32>} : memref<2x16x32xf32, #tpu.memory_space<vmem>>, vector<2x16x32xf32>,
    return
  }
}

module attributes {stable_mosaic.version = 11 : i64} {
  func.func @_mm_affine_kernel(%arg0: i32, %arg1: memref<32x32xbf16, #tpu.memory_space<vmem>>, %arg2: memref<32x32xbf16, #tpu.memory_space<vmem>>, %arg3: memref<1x32xf32, #tpu.memory_space<vmem>>, %arg4: memref<1x32xf32, #tpu.memory_space<vmem>>, %arg5: memref<32x32xf32, #tpu.memory_space<vmem>>) attributes {dimension_semantics = [#tpu.dimension_semantics<parallel>], iteration_bounds = array<i64: 1>, scalar_prefetch = 0 : i64, scratch_operands = 0 : i64, tpu.core_type = #tpu.core_type<tc>, window_params = [{transform_indices = @transform_0, window_bounds = array<i64: 32, 32>}, {pipeline_mode = #tpu.pipeline_mode<synchronous>, transform_indices = @transform_1, window_bounds = array<i64: 32, 32>}, {pipeline_mode = #tpu.pipeline_mode<synchronous>, transform_indices = @transform_2, window_bounds = array<i64: 1, 32>}, {pipeline_mode = #tpu.pipeline_mode<synchronous>, transform_indices = @transform_3, window_bounds = array<i64: 1, 32>}, {transform_indices = @transform_4, window_bounds = array<i64: 32, 32>}]} {
    %c0 = arith.constant 0 : index
    %c0_0 = arith.constant 0 : index
    %0 = vector.load %arg1[%c0, %c0_0] : memref<32x32xbf16, #tpu.memory_space<vmem>>, vector<32x32xbf16>
    %c0_1 = arith.constant 0 : index
    %c0_2 = arith.constant 0 : index
    %1 = vector.load %arg2[%c0_1, %c0_2] : memref<32x32xbf16, #tpu.memory_space<vmem>>, vector<32x32xbf16>
    %cst = arith.constant dense<0.000000e+00> : vector<32x32xf32>
    %2 = tpu.matmul %0, %1, %cst {dimension_numbers = #tpu.dot_dimension_numbers<[1], [0], [0], [1], [0, 0, 1, 1], [], []>} : vector<32x32xbf16>, vector<32x32xbf16>, vector<32x32xf32> -> vector<32x32xf32>
    %c0_3 = arith.constant 0 : index
    %c0_4 = arith.constant 0 : index
    %3 = vector.load %arg3[%c0_3, %c0_4] : memref<1x32xf32, #tpu.memory_space<vmem>>, vector<1x32xf32>
    %4 = vector.broadcast %3 : vector<1x32xf32> to vector<32x32xf32>
    %5 = arith.mulf %2, %4 : vector<32x32xf32>
    %c0_5 = arith.constant 0 : index
    %c0_6 = arith.constant 0 : index
    %6 = vector.load %arg4[%c0_5, %c0_6] : memref<1x32xf32, #tpu.memory_space<vmem>>, vector<1x32xf32>
    %7 = vector.broadcast %6 : vector<1x32xf32> to vector<32x32xf32>
    %8 = arith.addf %5, %7 : vector<32x32xf32>
    %cst_7 = arith.constant 0.000000e+00 : f32
    %9 = vector.broadcast %cst_7 : f32 to vector<32x32xf32>
    %10 = arith.maximumf %8, %9 : vector<32x32xf32>
    %c0_8 = arith.constant 0 : index
    %c0_9 = arith.constant 0 : index
    %11 = vector.load %arg5[%c0_8, %c0_9] : memref<32x32xf32, #tpu.memory_space<vmem>>, vector<32x32xf32>
    tpu.vector_store %arg5[%c0_8, %c0_9], %10 {strides = array<i32>} : memref<32x32xf32, #tpu.memory_space<vmem>>, vector<32x32xf32>,
    return
  }
  func.func @transform_0(%arg0: i32) -> (i32, i32) {
    %c0_i32 = arith.constant 0 : i32
    %c0_i32_0 = arith.constant 0 : i32
    return %arg0, %c0_i32 : i32, i32
  }
  func.func @transform_1(%arg0: i32) -> (i32, i32) {
    %c0_i32 = arith.constant 0 : i32
    %c0_i32_0 = arith.constant 0 : i32
    %c0_i32_1 = arith.constant 0 : i32
    return %c0_i32, %c0_i32_0 : i32, i32
  }
  func.func @transform_2(%arg0: i32) -> (i32, i32) {
    %c0_i32 = arith.constant 0 : i32
    %c0_i32_0 = arith.constant 0 : i32
    %c0_i32_1 = arith.constant 0 : i32
    return %c0_i32, %c0_i32_0 : i32, i32
  }
  func.func @transform_3(%arg0: i32) -> (i32, i32) {
    %c0_i32 = arith.constant 0 : i32
    %c0_i32_0 = arith.constant 0 : i32
    %c0_i32_1 = arith.constant 0 : i32
    return %c0_i32, %c0_i32_0 : i32, i32
  }
  func.func @transform_4(%arg0: i32) -> (i32, i32) {
    %c0_i32 = arith.constant 0 : i32
    %c0_i32_0 = arith.constant 0 : i32
    return %arg0, %c0_i32 : i32, i32
  }
}

module attributes {stable_mosaic.version = 11 : i64} {
  func.func @_mm_affine_kernel(%arg0: i32, %arg1: memref<16x288xbf16, #tpu.memory_space<vmem>>, %arg2: memref<288x32xbf16, #tpu.memory_space<vmem>>, %arg3: memref<1x32xf32, #tpu.memory_space<vmem>>, %arg4: memref<1x32xf32, #tpu.memory_space<vmem>>, %arg5: memref<16x32xf32, #tpu.memory_space<vmem>>) attributes {dimension_semantics = [#tpu.dimension_semantics<parallel>], iteration_bounds = array<i64: 1>, scalar_prefetch = 0 : i64, scratch_operands = 0 : i64, tpu.core_type = #tpu.core_type<tc>, window_params = [{transform_indices = @transform_0, window_bounds = array<i64: 16, 288>}, {pipeline_mode = #tpu.pipeline_mode<synchronous>, transform_indices = @transform_1, window_bounds = array<i64: 288, 32>}, {pipeline_mode = #tpu.pipeline_mode<synchronous>, transform_indices = @transform_2, window_bounds = array<i64: 1, 32>}, {pipeline_mode = #tpu.pipeline_mode<synchronous>, transform_indices = @transform_3, window_bounds = array<i64: 1, 32>}, {transform_indices = @transform_4, window_bounds = array<i64: 16, 32>}]} {
    %c0 = arith.constant 0 : index
    %c0_0 = arith.constant 0 : index
    %0 = vector.load %arg1[%c0, %c0_0] : memref<16x288xbf16, #tpu.memory_space<vmem>>, vector<16x288xbf16>
    %c0_1 = arith.constant 0 : index
    %c0_2 = arith.constant 0 : index
    %1 = vector.load %arg2[%c0_1, %c0_2] : memref<288x32xbf16, #tpu.memory_space<vmem>>, vector<288x32xbf16>
    %cst = arith.constant dense<0.000000e+00> : vector<16x32xf32>
    %2 = tpu.matmul %0, %1, %cst {dimension_numbers = #tpu.dot_dimension_numbers<[1], [0], [0], [1], [0, 0, 1, 1], [], []>} : vector<16x288xbf16>, vector<288x32xbf16>, vector<16x32xf32> -> vector<16x32xf32>
    %c0_3 = arith.constant 0 : index
    %c0_4 = arith.constant 0 : index
    %3 = vector.load %arg3[%c0_3, %c0_4] : memref<1x32xf32, #tpu.memory_space<vmem>>, vector<1x32xf32>
    %4 = vector.broadcast %3 : vector<1x32xf32> to vector<16x32xf32>
    %5 = arith.mulf %2, %4 : vector<16x32xf32>
    %c0_5 = arith.constant 0 : index
    %c0_6 = arith.constant 0 : index
    %6 = vector.load %arg4[%c0_5, %c0_6] : memref<1x32xf32, #tpu.memory_space<vmem>>, vector<1x32xf32>
    %7 = vector.broadcast %6 : vector<1x32xf32> to vector<16x32xf32>
    %8 = arith.addf %5, %7 : vector<16x32xf32>
    %cst_7 = arith.constant 0.000000e+00 : f32
    %9 = vector.broadcast %cst_7 : f32 to vector<16x32xf32>
    %10 = arith.maximumf %8, %9 : vector<16x32xf32>
    %c0_8 = arith.constant 0 : index
    %c0_9 = arith.constant 0 : index
    %11 = vector.load %arg5[%c0_8, %c0_9] : memref<16x32xf32, #tpu.memory_space<vmem>>, vector<16x32xf32>
    tpu.vector_store %arg5[%c0_8, %c0_9], %10 {strides = array<i32>} : memref<16x32xf32, #tpu.memory_space<vmem>>, vector<16x32xf32>,
    return
  }
  func.func @transform_0(%arg0: i32) -> (i32, i32) {
    %c0_i32 = arith.constant 0 : i32
    %c0_i32_0 = arith.constant 0 : i32
    return %arg0, %c0_i32 : i32, i32
  }
  func.func @transform_1(%arg0: i32) -> (i32, i32) {
    %c0_i32 = arith.constant 0 : i32
    %c0_i32_0 = arith.constant 0 : i32
    %c0_i32_1 = arith.constant 0 : i32
    return %c0_i32, %c0_i32_0 : i32, i32
  }
  func.func @transform_2(%arg0: i32) -> (i32, i32) {
    %c0_i32 = arith.constant 0 : i32
    %c0_i32_0 = arith.constant 0 : i32
    %c0_i32_1 = arith.constant 0 : i32
    return %c0_i32, %c0_i32_0 : i32, i32
  }
  func.func @transform_3(%arg0: i32) -> (i32, i32) {
    %c0_i32 = arith.constant 0 : i32
    %c0_i32_0 = arith.constant 0 : i32
    %c0_i32_1 = arith.constant 0 : i32
    return %c0_i32, %c0_i32_0 : i32, i32
  }
  func.func @transform_4(%arg0: i32) -> (i32, i32) {
    %c0_i32 = arith.constant 0 : i32
    %c0_i32_0 = arith.constant 0 : i32
    return %arg0, %c0_i32 : i32, i32
  }
}

module attributes {stable_mosaic.version = 11 : i64} {
  func.func @_mm_affine_kernel(%arg0: i32, %arg1: memref<16x32xbf16, #tpu.memory_space<vmem>>, %arg2: memref<32x64xbf16, #tpu.memory_space<vmem>>, %arg3: memref<1x64xf32, #tpu.memory_space<vmem>>, %arg4: memref<1x64xf32, #tpu.memory_space<vmem>>, %arg5: memref<16x64xf32, #tpu.memory_space<vmem>>) attributes {dimension_semantics = [#tpu.dimension_semantics<parallel>], iteration_bounds = array<i64: 1>, scalar_prefetch = 0 : i64, scratch_operands = 0 : i64, tpu.core_type = #tpu.core_type<tc>, window_params = [{transform_indices = @transform_0, window_bounds = array<i64: 16, 32>}, {pipeline_mode = #tpu.pipeline_mode<synchronous>, transform_indices = @transform_1, window_bounds = array<i64: 32, 64>}, {pipeline_mode = #tpu.pipeline_mode<synchronous>, transform_indices = @transform_2, window_bounds = array<i64: 1, 64>}, {pipeline_mode = #tpu.pipeline_mode<synchronous>, transform_indices = @transform_3, window_bounds = array<i64: 1, 64>}, {transform_indices = @transform_4, window_bounds = array<i64: 16, 64>}]} {
    %c0 = arith.constant 0 : index
    %c0_0 = arith.constant 0 : index
    %0 = vector.load %arg1[%c0, %c0_0] : memref<16x32xbf16, #tpu.memory_space<vmem>>, vector<16x32xbf16>
    %c0_1 = arith.constant 0 : index
    %c0_2 = arith.constant 0 : index
    %1 = vector.load %arg2[%c0_1, %c0_2] : memref<32x64xbf16, #tpu.memory_space<vmem>>, vector<32x64xbf16>
    %cst = arith.constant dense<0.000000e+00> : vector<16x64xf32>
    %2 = tpu.matmul %0, %1, %cst {dimension_numbers = #tpu.dot_dimension_numbers<[1], [0], [0], [1], [0, 0, 1, 1], [], []>} : vector<16x32xbf16>, vector<32x64xbf16>, vector<16x64xf32> -> vector<16x64xf32>
    %c0_3 = arith.constant 0 : index
    %c0_4 = arith.constant 0 : index
    %3 = vector.load %arg3[%c0_3, %c0_4] : memref<1x64xf32, #tpu.memory_space<vmem>>, vector<1x64xf32>
    %4 = vector.broadcast %3 : vector<1x64xf32> to vector<16x64xf32>
    %5 = arith.mulf %2, %4 : vector<16x64xf32>
    %c0_5 = arith.constant 0 : index
    %c0_6 = arith.constant 0 : index
    %6 = vector.load %arg4[%c0_5, %c0_6] : memref<1x64xf32, #tpu.memory_space<vmem>>, vector<1x64xf32>
    %7 = vector.broadcast %6 : vector<1x64xf32> to vector<16x64xf32>
    %8 = arith.addf %5, %7 : vector<16x64xf32>
    %c0_7 = arith.constant 0 : index
    %c0_8 = arith.constant 0 : index
    %9 = vector.load %arg5[%c0_7, %c0_8] : memref<16x64xf32, #tpu.memory_space<vmem>>, vector<16x64xf32>
    tpu.vector_store %arg5[%c0_7, %c0_8], %8 {strides = array<i32>} : memref<16x64xf32, #tpu.memory_space<vmem>>, vector<16x64xf32>,
    return
  }
  func.func @transform_0(%arg0: i32) -> (i32, i32) {
    %c0_i32 = arith.constant 0 : i32
    %c0_i32_0 = arith.constant 0 : i32
    return %arg0, %c0_i32 : i32, i32
  }
  func.func @transform_1(%arg0: i32) -> (i32, i32) {
    %c0_i32 = arith.constant 0 : i32
    %c0_i32_0 = arith.constant 0 : i32
    %c0_i32_1 = arith.constant 0 : i32
    return %c0_i32, %c0_i32_0 : i32, i32
  }
  func.func @transform_2(%arg0: i32) -> (i32, i32) {
    %c0_i32 = arith.constant 0 : i32
    %c0_i32_0 = arith.constant 0 : i32
    %c0_i32_1 = arith.constant 0 : i32
    return %c0_i32, %c0_i32_0 : i32, i32
  }
  func.func @transform_3(%arg0: i32) -> (i32, i32) {
    %c0_i32 = arith.constant 0 : i32
    %c0_i32_0 = arith.constant 0 : i32
    %c0_i32_1 = arith.constant 0 : i32
    return %c0_i32, %c0_i32_0 : i32, i32
  }
  func.func @transform_4(%arg0: i32) -> (i32, i32) {
    %c0_i32 = arith.constant 0 : i32
    %c0_i32_0 = arith.constant 0 : i32
    return %arg0, %c0_i32 : i32, i32
  }
}

module attributes {stable_mosaic.version = 11 : i64} {
  func.func @_se_fc_kernel(%arg0: memref<2x64xf32, #tpu.memory_space<vmem>>, %arg1: memref<64x16xf32, #tpu.memory_space<vmem>>, %arg2: memref<1x16xf32, #tpu.memory_space<vmem>>, %arg3: memref<16x64xf32, #tpu.memory_space<vmem>>, %arg4: memref<1x64xf32, #tpu.memory_space<vmem>>, %arg5: memref<2x64xf32, #tpu.memory_space<vmem>>) attributes {dimension_semantics = [], scalar_prefetch = 0 : i64, scratch_operands = 0 : i64, tpu.core_type = #tpu.core_type<tc>} {
    %c0 = arith.constant 0 : index
    %c0_0 = arith.constant 0 : index
    %0 = vector.load %arg0[%c0, %c0_0] : memref<2x64xf32, #tpu.memory_space<vmem>>, vector<2x64xf32>
    %c0_1 = arith.constant 0 : index
    %c0_2 = arith.constant 0 : index
    %1 = vector.load %arg1[%c0_1, %c0_2] : memref<64x16xf32, #tpu.memory_space<vmem>>, vector<64x16xf32>
    %cst = arith.constant dense<0.000000e+00> : vector<2x16xf32>
    %2 = tpu.matmul %0, %1, %cst {dimension_numbers = #tpu.dot_dimension_numbers<[1], [0], [0], [1], [0, 0, 1, 1], [], []>} : vector<2x64xf32>, vector<64x16xf32>, vector<2x16xf32> -> vector<2x16xf32>
    %c0_3 = arith.constant 0 : index
    %c0_4 = arith.constant 0 : index
    %3 = vector.load %arg2[%c0_3, %c0_4] : memref<1x16xf32, #tpu.memory_space<vmem>>, vector<1x16xf32>
    %4 = vector.broadcast %3 : vector<1x16xf32> to vector<2x16xf32>
    %5 = arith.addf %2, %4 : vector<2x16xf32>
    %cst_5 = arith.constant 0.000000e+00 : f32
    %6 = vector.broadcast %cst_5 : f32 to vector<2x16xf32>
    %7 = arith.maximumf %5, %6 : vector<2x16xf32>
    %c0_6 = arith.constant 0 : index
    %c0_7 = arith.constant 0 : index
    %8 = vector.load %arg3[%c0_6, %c0_7] : memref<16x64xf32, #tpu.memory_space<vmem>>, vector<16x64xf32>
    %cst_8 = arith.constant dense<0.000000e+00> : vector<2x64xf32>
    %9 = tpu.matmul %7, %8, %cst_8 {dimension_numbers = #tpu.dot_dimension_numbers<[1], [0], [0], [1], [0, 0, 1, 1], [], []>} : vector<2x16xf32>, vector<16x64xf32>, vector<2x64xf32> -> vector<2x64xf32>
    %c0_9 = arith.constant 0 : index
    %c0_10 = arith.constant 0 : index
    %10 = vector.load %arg4[%c0_9, %c0_10] : memref<1x64xf32, #tpu.memory_space<vmem>>, vector<1x64xf32>
    %11 = vector.broadcast %10 : vector<1x64xf32> to vector<2x64xf32>
    %12 = arith.addf %9, %11 : vector<2x64xf32>
    %c0_11 = arith.constant 0 : index
    %c0_12 = arith.constant 0 : index
    %13 = vector.load %arg5[%c0_11, %c0_12] : memref<2x64xf32, #tpu.memory_space<vmem>>, vector<2x64xf32>
    tpu.vector_store %arg5[%c0_11, %c0_12], %12 {strides = array<i32>} : memref<2x64xf32, #tpu.memory_space<vmem>>, vector<2x64xf32>,
    return
  }
}

module attributes {stable_mosaic.version = 11 : i64} {
  func.func @_se_gate_add_relu_kernel(%arg0: memref<2x4x64xf32, #tpu.memory_space<vmem>>, %arg1: memref<2x1x64xf32, #tpu.memory_space<vmem>>, %arg2: memref<2x4x64xf32, #tpu.memory_space<vmem>>, %arg3: memref<2x4x64xf32, #tpu.memory_space<vmem>>) attributes {dimension_semantics = [], scalar_prefetch = 0 : i64, scratch_operands = 0 : i64, tpu.core_type = #tpu.core_type<tc>} {
    %c0 = arith.constant 0 : index
    %c0_0 = arith.constant 0 : index
    %c0_1 = arith.constant 0 : index
    %0 = vector.load %arg0[%c0, %c0_0, %c0_1] : memref<2x4x64xf32, #tpu.memory_space<vmem>>, vector<2x4x64xf32>
    %c0_2 = arith.constant 0 : index
    %c0_3 = arith.constant 0 : index
    %c0_4 = arith.constant 0 : index
    %1 = vector.load %arg1[%c0_2, %c0_3, %c0_4] : memref<2x1x64xf32, #tpu.memory_space<vmem>>, vector<2x1x64xf32>
    %2 = arith.negf %1 : vector<2x1x64xf32>
    %3 = math.exp %2 : vector<2x1x64xf32>
    %cst = arith.constant 1.000000e+00 : f32
    %4 = vector.broadcast %cst : f32 to vector<2x1x64xf32>
    %5 = arith.addf %4, %3 : vector<2x1x64xf32>
    %6 = arith.divf %4, %5 : vector<2x1x64xf32>
    %7 = vector.broadcast %6 : vector<2x1x64xf32> to vector<2x4x64xf32>
    %8 = arith.mulf %0, %7 : vector<2x4x64xf32>
    %c0_5 = arith.constant 0 : index
    %c0_6 = arith.constant 0 : index
    %c0_7 = arith.constant 0 : index
    %9 = vector.load %arg2[%c0_5, %c0_6, %c0_7] : memref<2x4x64xf32, #tpu.memory_space<vmem>>, vector<2x4x64xf32>
    %10 = arith.addf %8, %9 : vector<2x4x64xf32>
    %cst_8 = arith.constant 0.000000e+00 : f32
    %11 = vector.broadcast %cst_8 : f32 to vector<2x4x64xf32>
    %12 = arith.maximumf %10, %11 : vector<2x4x64xf32>
    %c0_9 = arith.constant 0 : index
    %c0_10 = arith.constant 0 : index
    %c0_11 = arith.constant 0 : index
    %13 = vector.load %arg3[%c0_9, %c0_10, %c0_11] : memref<2x4x64xf32, #tpu.memory_space<vmem>>, vector<2x4x64xf32>
    tpu.vector_store %arg3[%c0_9, %c0_10, %c0_11], %12 {strides = array<i32>} : memref<2x4x64xf32, #tpu.memory_space<vmem>>, vector<2x4x64xf32>,
    return
  }
}

module attributes {stable_mosaic.version = 11 : i64} {
  func.func @_spatial_mean_kernel(%arg0: memref<2x4x64xf32, #tpu.memory_space<vmem>>, %arg1: memref<2x64xf32, #tpu.memory_space<vmem>>) attributes {dimension_semantics = [], scalar_prefetch = 0 : i64, scratch_operands = 0 : i64, tpu.core_type = #tpu.core_type<tc>} {
    %c0 = arith.constant 0 : index
    %c0_0 = arith.constant 0 : index
    %c0_1 = arith.constant 0 : index
    %0 = vector.load %arg0[%c0, %c0_0, %c0_1] : memref<2x4x64xf32, #tpu.memory_space<vmem>>, vector<2x4x64xf32>
    %cst = arith.constant dense<0.000000e+00> : vector<2x64xf32>
    %1 = vector.multi_reduction <add>, %0, %cst [1] : vector<2x4x64xf32> to vector<2x64xf32>
    %cst_2 = arith.constant 4.000000e+00 : f32
    %2 = vector.broadcast %cst_2 : f32 to vector<2x64xf32>
    %3 = arith.divf %1, %2 : vector<2x64xf32>
    %c0_3 = arith.constant 0 : index
    %c0_4 = arith.constant 0 : index
    %4 = vector.load %arg1[%c0_3, %c0_4] : memref<2x64xf32, #tpu.memory_space<vmem>>, vector<2x64xf32>
    tpu.vector_store %arg1[%c0_3, %c0_4], %3 {strides = array<i32>} : memref<2x64xf32, #tpu.memory_space<vmem>>, vector<2x64xf32>,
    return
  }
}

module attributes {stable_mosaic.version = 11 : i64} {
  func.func @_gem_kernel(%arg0: memref<2x4x64xf32, #tpu.memory_space<vmem>>, %arg1: memref<2x64xf32, #tpu.memory_space<vmem>>) attributes {dimension_semantics = [], scalar_prefetch = 0 : i64, scratch_operands = 0 : i64, tpu.core_type = #tpu.core_type<tc>} {
    %c0 = arith.constant 0 : index
    %c0_0 = arith.constant 0 : index
    %c0_1 = arith.constant 0 : index
    %0 = vector.load %arg0[%c0, %c0_0, %c0_1] : memref<2x4x64xf32, #tpu.memory_space<vmem>>, vector<2x4x64xf32>
    %cst = arith.constant 9.99999997E-7 : f32
    %1 = vector.broadcast %cst : f32 to vector<2x4x64xf32>
    %2 = arith.maximumf %0, %1 : vector<2x4x64xf32>
    %3 = arith.mulf %2, %2 : vector<2x4x64xf32>
    %4 = arith.mulf %3, %2 : vector<2x4x64xf32>
    %cst_2 = arith.constant dense<0.000000e+00> : vector<2x64xf32>
    %5 = vector.multi_reduction <add>, %4, %cst_2 [1] : vector<2x4x64xf32> to vector<2x64xf32>
    %cst_3 = arith.constant 4.000000e+00 : f32
    %6 = vector.broadcast %cst_3 : f32 to vector<2x64xf32>
    %7 = arith.divf %5, %6 : vector<2x64xf32>
    %cst_4 = arith.constant 0.333333343 : f32
    %8 = vector.broadcast %cst_4 : f32 to vector<2x64xf32>
    %9 = math.powf %7, %8 : vector<2x64xf32>
    %c0_5 = arith.constant 0 : index
    %c0_6 = arith.constant 0 : index
    %10 = vector.load %arg1[%c0_5, %c0_6] : memref<2x64xf32, #tpu.memory_space<vmem>>, vector<2x64xf32>
    tpu.vector_store %arg1[%c0_5, %c0_6], %9 {strides = array<i32>} : memref<2x64xf32, #tpu.memory_space<vmem>>, vector<2x64xf32>,
    return
  }
}

module attributes {stable_mosaic.version = 11 : i64} {
  func.func @_mm_affine_kernel(%arg0: i32, %arg1: memref<16x64xbf16, #tpu.memory_space<vmem>>, %arg2: memref<64x64xbf16, #tpu.memory_space<vmem>>, %arg3: memref<1x64xf32, #tpu.memory_space<vmem>>, %arg4: memref<1x64xf32, #tpu.memory_space<vmem>>, %arg5: memref<16x64xf32, #tpu.memory_space<vmem>>) attributes {dimension_semantics = [#tpu.dimension_semantics<parallel>], iteration_bounds = array<i64: 1>, scalar_prefetch = 0 : i64, scratch_operands = 0 : i64, tpu.core_type = #tpu.core_type<tc>, window_params = [{transform_indices = @transform_0, window_bounds = array<i64: 16, 64>}, {pipeline_mode = #tpu.pipeline_mode<synchronous>, transform_indices = @transform_1, window_bounds = array<i64: 64, 64>}, {pipeline_mode = #tpu.pipeline_mode<synchronous>, transform_indices = @transform_2, window_bounds = array<i64: 1, 64>}, {pipeline_mode = #tpu.pipeline_mode<synchronous>, transform_indices = @transform_3, window_bounds = array<i64: 1, 64>}, {transform_indices = @transform_4, window_bounds = array<i64: 16, 64>}]} {
    %c0 = arith.constant 0 : index
    %c0_0 = arith.constant 0 : index
    %0 = vector.load %arg1[%c0, %c0_0] : memref<16x64xbf16, #tpu.memory_space<vmem>>, vector<16x64xbf16>
    %c0_1 = arith.constant 0 : index
    %c0_2 = arith.constant 0 : index
    %1 = vector.load %arg2[%c0_1, %c0_2] : memref<64x64xbf16, #tpu.memory_space<vmem>>, vector<64x64xbf16>
    %cst = arith.constant dense<0.000000e+00> : vector<16x64xf32>
    %2 = tpu.matmul %0, %1, %cst {dimension_numbers = #tpu.dot_dimension_numbers<[1], [0], [0], [1], [0, 0, 1, 1], [], []>} : vector<16x64xbf16>, vector<64x64xbf16>, vector<16x64xf32> -> vector<16x64xf32>
    %c0_3 = arith.constant 0 : index
    %c0_4 = arith.constant 0 : index
    %3 = vector.load %arg3[%c0_3, %c0_4] : memref<1x64xf32, #tpu.memory_space<vmem>>, vector<1x64xf32>
    %4 = vector.broadcast %3 : vector<1x64xf32> to vector<16x64xf32>
    %5 = arith.mulf %2, %4 : vector<16x64xf32>
    %c0_5 = arith.constant 0 : index
    %c0_6 = arith.constant 0 : index
    %6 = vector.load %arg4[%c0_5, %c0_6] : memref<1x64xf32, #tpu.memory_space<vmem>>, vector<1x64xf32>
    %7 = vector.broadcast %6 : vector<1x64xf32> to vector<16x64xf32>
    %8 = arith.addf %5, %7 : vector<16x64xf32>
    %c0_7 = arith.constant 0 : index
    %c0_8 = arith.constant 0 : index
    %9 = vector.load %arg5[%c0_7, %c0_8] : memref<16x64xf32, #tpu.memory_space<vmem>>, vector<16x64xf32>
    tpu.vector_store %arg5[%c0_7, %c0_8], %8 {strides = array<i32>} : memref<16x64xf32, #tpu.memory_space<vmem>>, vector<16x64xf32>,
    return
  }
  func.func @transform_0(%arg0: i32) -> (i32, i32) {
    %c0_i32 = arith.constant 0 : i32
    %c0_i32_0 = arith.constant 0 : i32
    return %arg0, %c0_i32 : i32, i32
  }
  func.func @transform_1(%arg0: i32) -> (i32, i32) {
    %c0_i32 = arith.constant 0 : i32
    %c0_i32_0 = arith.constant 0 : i32
    %c0_i32_1 = arith.constant 0 : i32
    return %c0_i32, %c0_i32_0 : i32, i32
  }
  func.func @transform_2(%arg0: i32) -> (i32, i32) {
    %c0_i32 = arith.constant 0 : i32
    %c0_i32_0 = arith.constant 0 : i32
    %c0_i32_1 = arith.constant 0 : i32
    return %c0_i32, %c0_i32_0 : i32, i32
  }
  func.func @transform_3(%arg0: i32) -> (i32, i32) {
    %c0_i32 = arith.constant 0 : i32
    %c0_i32_0 = arith.constant 0 : i32
    %c0_i32_1 = arith.constant 0 : i32
    return %c0_i32, %c0_i32_0 : i32, i32
  }
  func.func @transform_4(%arg0: i32) -> (i32, i32) {
    %c0_i32 = arith.constant 0 : i32
    %c0_i32_0 = arith.constant 0 : i32
    return %arg0, %c0_i32 : i32, i32
  }
}

</mosaic_0001>

<bundles_post_ra>
// kernel: _lambda_.26
= control target key start
LH: loop header
LB: loop body
LE: loop exit
PB: predicated region body
PF: predicated region fallthrough
CT: control target
= control target key end

     0   :  { %s134_s0 = inlined_call_operand.vmem [shape: f32[8,128], index: 0, kind: input, shape index: {}]   ;;  %s135_s1 = inlined_call_operand.vmem [shape: f32[8,128], index: 1, kind: input, shape index: {}]   ;;  %s136_s2 = inlined_call_operand.vmem [shape: f32[8,128], index: 2, kind: input, shape index: {}]   ;;  %s137_s3 = inlined_call_operand.vmem [shape: f32[8,128], index: 3, kind: input, shape index: {}]   ;;  %s138_s4 = inlined_call_operand.vmem [shape: f32[8,128], index: 4, kind: input, shape index: {}]   ;;  %s139_s5 = inlined_call_operand.vmem [shape: f32[8,128], index: 5, kind: input, shape index: {}]   ;;  %s140_s6 = inlined_call_operand.vmem [shape: f32[8,128], index: 6, kind: input, shape index: {}]   ;;  %s141_s7 = inlined_call_operand.vmem [shape: f32[8,128], index: 7, kind: input, shape index: {}]   ;;  %s142_s8 = inlined_call_operand.vmem [shape: f32[8,128], index: 8, kind: input, shape index: {}]   ;;  %s143_s9 = inlined_call_operand.vmem [shape: f32[8,128], index: 9, kind: output, shape index: {}]  }
   0x1   :  { %v32_v0 = vld [vmem:[%s134_s0] sm:$0xff] }
   0x2   :  { %v33_v1 = vld [vmem:[%s135_s1] sm:$0xff] }
   0x3   :  { %v35_v2 = vld [vmem:[%s136_s2] sm:$0xff]  ;;  %v34_v3 = vmax.f32 %v32_v0, %v33_v1 }
   0x4   :  { %v37_v4 = vld [vmem:[%s137_s3] sm:$0xff] }
   0x5   :  { %v36_v5 = vmax.f32 %v34_v3, %v35_v2  ;;  %v39_v6 = vld [vmem:[%s138_s4] sm:$0xff] }
   0x6   :  { %v41_v8 = vld [vmem:[%s139_s5] sm:$0xff] }
   0x7   :  { %v38_v7 = vmax.f32 %v36_v5, %v37_v4  ;;  %v43_v10 = vld [vmem:[%s140_s6] sm:$0xff] }
   0x8   :  { %v45_v12 = vld [vmem:[%s141_s7] sm:$0xff] }
   0x9   :  { %v40_v9 = vmax.f32 %v38_v7, %v39_v6  ;;  %v47_v14 = vld [vmem:[%s142_s8] sm:$0xff] }
   0xb   :  { %v42_v11 = vmax.f32 %v40_v9, %v41_v8 }
   0xd   :  { %v44_v13 = vmax.f32 %v42_v11, %v43_v10 }
   0xf   :  { %v46_v15 = vmax.f32 %v44_v13, %v45_v12 }
  0x11   :  { %v48_v16 = vmax.f32 %v46_v15, %v47_v14 }
  0x13   :  { %49 = vst [vmem:[%s143_s9] sm:$0xff] %v48_v16 }

// kernel: _lambda_.27
= control target key start
LH: loop header
LB: loop body
LE: loop exit
PB: predicated region body
PF: predicated region fallthrough
CT: control target
= control target key end

     0   :  { %vm100_vm0 = vcmask 1043456   ;;  %vm75_vm1 = vcmask 64512   ;;  %s506_s1 = inlined_call_operand.vmem [shape: bf16[8,8], index: 1, kind: input, shape index: {}]   ;;  %s507_s0 = inlined_call_operand.vmem [shape: bf16[128,8], index: 0, kind: input, shape index: {}]   ;;  %s508_s2 = inlined_call_operand.vmem [shape: f32[1,8], index: 2, kind: input, shape index: {}]   ;;  %s509_s3 = inlined_call_operand.vmem [shape: f32[1,8], index: 3, kind: input, shape index: {}]   ;;  %s510_s4 = inlined_call_operand.vmem [shape: f32[128,8], index: 4, kind: output, shape index: {}]  }
   0x1   :  { %v34_v0 = vld [vmem:[%s506_s1] sm:$0xf]  ;;  %v334_v4 = vld [vmem:[%s507_s0 + $0x8] sm:$0xff]   ;;  %v336_v6 = vld [vmem:[%s507_s0 + $0x10] sm:$0xff]  }
   0x2   :  { %330 = vmatprep.subr.msk.bf16.mxu0 %vm100_vm0, %v34_v0  ;;  %331 = vmatprep.subr.msk.bf16.mxu1 %vm100_vm0, %v34_v0  ;;  %v102_v1 = vsel %vm100_vm0, %v34_v0, 0  ;;  %v332_v2 = vld [vmem:[%s507_s0] sm:$0xff]   ;;  %v335_v5 = vld [vmem:[%s507_s0 + $0x28] sm:$0xff]   ;;  %v337_v7 = vld [vmem:[%s507_s0 + $0x30] sm:$0xff]  }
   0x3   :  { %311 = vmatpush3.bf16.msra.mxu0 %v102_v1  ;;  %329 = vmatpush3.bf16.msra.mxu1 %v102_v1  ;;  %v333_v3 = vld [vmem:[%s507_s0 + $0x20] sm:$0xff]   ;;  %v338_v8 = vld [vmem:[%s507_s0 + $0x18] sm:$0xff]  }
   0x4   :  { %312 = vmatprep.mubr.msk.bf16.mxu0 %vm75_vm1, %v332_v2  ;;  %320 = vmatprep.mubr.msk.bf16.mxu1 %vm75_vm1, %v333_v3  ;;  %v339_v9 = vld [vmem:[%s507_s0 + $0x38] sm:$0xff]   ;;  %v403_v10 = vld [vmem:[%s508_s2] ss:$0 sm:$0xff] }
   0x5   :  { %v408_v12 = vld [vmem:[%s509_s3] ss:$0 sm:$0xff] }
   0x6   :  { %313 = vmatmul.mubr.msk.bf16.vlgmr.msra.gmra.mxu0 %vm75_vm1, %v334_v4  ;;  %321 = vmatmul.mubr.msk.bf16.vlgmr.msra.gmra.mxu1 %vm75_vm1, %v335_v5 }
   0x7   :  { %316 = vmatprep.mubr.msk.bf16.mxu0 %vm75_vm1, %v336_v6  ;;  %324 = vmatprep.mubr.msk.bf16.mxu1 %vm75_vm1, %v337_v7 }
   0xe   :  { %317 = vmatmul.mubr.msk.bf16.gmra.mxu0 %vm75_vm1, %v338_v8  ;;  %325 = vmatmul.mubr.msk.bf16.gmra.mxu1 %vm75_vm1, %v339_v9 }
  0xc6   :  { %v314_v11 = vpop.f32.mrf.mxu0  ;;  %v322_v14 = vpop.f32.mrf.mxu1 }
  0xc7   :  { %v210_v13 = vmul.f32 %v314_v11, %v403_v10  ;;  %v218_v15 = vmul.f32 %v322_v14, %v403_v10 }
  0xc8   :  { %v138_v16 = vpop.f32.mrf.mxu0  ;;  %v170_v19 = vpop.f32.mrf.mxu1 }
  0xc9   :  { %v233_v17 = vadd.f32 %v408_v12, %v210_v13  ;;  %v208_v18 = vmul.f32 %v403_v10, %v138_v16  ;;  %v241_v20 = vadd.f32 %v408_v12, %v218_v15  ;;  %v216_v21 = vmul.f32 %v403_v10, %v170_v19 }
  0xca   :  { %v315_v22 = vpop.f32.mrf.mxu0  ;;  %v323_v26 = vpop.f32.mrf.mxu1 }
  0xcb   :  { %v249_v23 = vmax.f32 %v233_v17, 0.0  ;;  %v231_v24 = vadd.f32 %v408_v12, %v208_v18  ;;  %v211_v25 = vmul.f32 %v315_v22, %v403_v10  ;;  %v257_v27 = vmax.f32 %v241_v20, 0.0 }
  0xcc   :  { %v239_v28 = vadd.f32 %v408_v12, %v216_v21  ;;  %v219_v29 = vmul.f32 %v323_v26, %v403_v10  ;;  %v141_v30 = vpop.f32.mrf.mxu0  ;;  %v173_v34 = vpop.f32.mrf.mxu1 }
  0xcd   :  { %265 = vst.msk [vmem:[%s510_s4 + $0x10] sm:$0xff] %vm75_vm1, %v249_v23  ;;  %v247_v31 = vmax.f32 %v231_v24, 0.0  ;;  %v234_v32 = vadd.f32 %v408_v12, %v211_v25  ;;  %v209_v33 = vmul.f32 %v403_v10, %v141_v30  ;;  %273 = vst.msk [vmem:[%s510_s4 + $0x50] sm:$0xff] %vm75_vm1, %v257_v27  ;;  %v217_v37 = vmul.f32 %v403_v10, %v173_v34 }
  0xce   :  { %v255_v35 = vmax.f32 %v239_v28, 0.0  ;;  %v242_v36 = vadd.f32 %v408_v12, %v219_v29  ;;  %v318_v38 = vpop.f32.mrf.mxu0  ;;  %v326_v42 = vpop.f32.mrf.mxu1 }
  0xcf   :  { %263 = vst.msk [vmem:[%s510_s4] sm:$0xff] %vm75_vm1, %v247_v31  ;;  %v250_v39 = vmax.f32 %v234_v32, 0.0  ;;  %v232_v40 = vadd.f32 %v408_v12, %v209_v33  ;;  %v214_v41 = vmul.f32 %v318_v38, %v403_v10  ;;  %v240_v44 = vadd.f32 %v408_v12, %v217_v37 }
  0xd0   :  { %271 = vst.msk [vmem:[%s510_s4 + $0x40] sm:$0xff] %vm75_vm1, %v255_v35  ;;  %v258_v43 = vmax.f32 %v242_v36, 0.0  ;;  %v222_v45 = vmul.f32 %v326_v42, %v403_v10  ;;  %v154_v46 = vpop.f32.mrf.mxu0  ;;  %v186_v50 = vpop.f32.mrf.mxu1 }
  0xd1   :  { %266 = vst.msk [vmem:[%s510_s4 + $0x18] sm:$0xff] %vm75_vm1, %v250_v39  ;;  %v248_v47 = vmax.f32 %v232_v40, 0.0  ;;  %v237_v48 = vadd.f32 %v408_v12, %v214_v41  ;;  %v212_v49 = vmul.f32 %v403_v10, %v154_v46  ;;  %v256_v51 = vmax.f32 %v240_v44, 0.0 }
  0xd2   :  { %274 = vst.msk [vmem:[%s510_s4 + $0x58] sm:$0xff] %vm75_vm1, %v258_v43  ;;  %v245_v52 = vadd.f32 %v408_v12, %v222_v45  ;;  %v220_v53 = vmul.f32 %v403_v10, %v186_v50  ;;  %v319_v54 = vpop.f32.mrf.mxu0  ;;  %v327_v58 = vpop.f32.mrf.mxu1 }
  0xd3   :  { %264 = vst.msk [vmem:[%s510_s4 + $0x8] sm:$0xff] %vm75_vm1, %v248_v47  ;;  %v253_v55 = vmax.f32 %v237_v48, 0.0  ;;  %v235_v56 = vadd.f32 %v408_v12, %v212_v49  ;;  %v215_v57 = vmul.f32 %v319_v54, %v403_v10  ;;  %272 = vst.msk [vmem:[%s510_s4 + $0x48] sm:$0xff] %vm75_vm1, %v256_v51  ;;  %v223_v61 = vmul.f32 %v327_v58, %v403_v10 }
  0xd4   :  { %v261_v59 = vmax.f32 %v245_v52, 0.0  ;;  %v243_v60 = vadd.f32 %v408_v12, %v220_v53  ;;  %v157_v62 = vpop.f32.mrf.mxu0  ;;  %v189_v2 = vpop.f32.mrf.mxu1 }
  0xd5   :  { %269 = vst.msk [vmem:[%s510_s4 + $0x30] sm:$0xff] %vm75_vm1, %v253_v55  ;;  %v251_v63 = vmax.f32 %v235_v56, 0.0  ;;  %v238_v0 = vadd.f32 %v408_v12, %v215_v57  ;;  %v213_v1 = vmul.f32 %v403_v10, %v157_v62  ;;  %v246_v4 = vadd.f32 %v408_v12, %v223_v61 }
  0xd6   :  { %277 = vst.msk [vmem:[%s510_s4 + $0x70] sm:$0xff] %vm75_vm1, %v261_v59  ;;  %v259_v3 = vmax.f32 %v243_v60, 0.0  ;;  %v221_v5 = vmul.f32 %v403_v10, %v189_v2 }
  0xd7   :  { %267 = vst.msk [vmem:[%s510_s4 + $0x20] sm:$0xff] %vm75_vm1, %v251_v63  ;;  %v254_v6 = vmax.f32 %v238_v0, 0.0  ;;  %v236_v7 = vadd.f32 %v408_v12, %v213_v1  ;;  %v262_v8 = vmax.f32 %v246_v4, 0.0 }
  0xd8   :  { %275 = vst.msk [vmem:[%s510_s4 + $0x60] sm:$0xff] %vm75_vm1, %v259_v3  ;;  %v244_v9 = vadd.f32 %v408_v12, %v221_v5 }
  0xd9   :  { %270 = vst.msk [vmem:[%s510_s4 + $0x38] sm:$0xff] %vm75_vm1, %v254_v6  ;;  %v252_v10 = vmax.f32 %v236_v7, 0.0  ;;  %278 = vst.msk [vmem:[%s510_s4 + $0x78] sm:$0xff] %vm75_vm1, %v262_v8 }
  0xda   :  { %v260_v11 = vmax.f32 %v244_v9, 0.0 }
  0xdb   :  { %268 = vst.msk [vmem:[%s510_s4 + $0x28] sm:$0xff] %vm75_vm1, %v252_v10 }
  0xdc   :  { %276 = vst.msk [vmem:[%s510_s4 + $0x68] sm:$0xff] %vm75_vm1, %v260_v11 }

// kernel: _lambda_.25
= control target key start
LH: loop header
LB: loop body
LE: loop exit
PB: predicated region body
PF: predicated region fallthrough
CT: control target
= control target key end

     0   :  { %v1350_v0 = vmov 0   ;;  %vm446_vm0 = vcmask 154624   ;;  %vm543_vm1 = vcmask 1040384   ;;  %vm544_vm2 = vcmask 1041408   ;;  %s2025_s1 = inlined_call_operand.vmem [shape: bf16[147,8], index: 1, kind: input, shape index: {}]   ;;  %s2026_s0 = inlined_call_operand.vmem [shape: bf16[512,147], index: 0, kind: input, shape index: {}]   ;;  %s2027_s2 = inlined_call_operand.vmem [shape: f32[1,8], index: 2, kind: input, shape index: {}]   ;;  %s2028_s3 = inlined_call_operand.vmem [shape: f32[1,8], index: 3, kind: input, shape index: {}]   ;;  %s2029_s4 = inlined_call_operand.vmem [shape: f32[512,8], index: 4, kind: output, shape index: {}]  }
   0x1   :  { %550 = vmatprep.subr.bf16.mxu0 %v1350_v0  ;;  %1222 = vmatprep.subr.bf16.mxu1 %v1350_v0  ;;  %v1244_v1 = vld [vmem:[%s2025_s1 + $0x38] sm:$0xff]   ;;  %v1245_v2 = vld [vmem:[%s2025_s1 + $0x30] sm:$0xff]   ;;  %v1246_v3 = vld [vmem:[%s2025_s1 + $0x28] sm:$0xff]   ;;  %v1351_v10 = vmov 65535   ;;  %vm1045_vm3 = vcmask 64512  }
   0x2   :  { %551 = vmatpush1.bf16.msra.mxu0 %v1244_v1  ;;  %1232 = vmatpush1.bf16.msra.mxu1 %v1244_v1  ;;  %v1247_v4 = vld [vmem:[%s2025_s1 + $0x20] sm:$0xff]   ;;  %v1248_v7 = vld [vmem:[%s2025_s1 + $0x18] sm:$0xff]   ;;  %v1249_v8 = vld [vmem:[%s2025_s1 + $0x10] sm:$0xff]   ;;  %v545_v11 = vsel %vm543_vm1, 4294967295, %v1351_v10 }
   0x3   :  { %552 = vmatprep.subr.bf16.mxu0 %v1350_v0  ;;  %1223 = vmatprep.subr.bf16.mxu1 %v1350_v0  ;;  %v1256_v5 = vld [vmem:[%s2026_s0 + $0x4] ss:$8 sps:$4 sm:$0xff]   ;;  %v1252_v13 = vld [vmem:[%s2025_s1 + $0x48] ss:$0 sps:$4 sm:$0x33]   ;;  %v546_v14 = vsel %vm544_vm2, %v545_v11, 0 }
   0x4   :  { %1188 = vmatprep.mubr.msk.bf16.mxu0 %vm446_vm0, %v1256_v5  ;;  %v1259_v6 = vld [vmem:[%s2026_s0 + $0x104] ss:$8 sps:$4 sm:$0xff]   ;;  %v548_v15 = vand.u32 %v1252_v13, %v546_v14  ;;  %v1254_v17 = vld [vmem:[%s2026_s0] ss:$8 sps:$4 sm:$0xff]   ;;  %v1260_v19 = vld [vmem:[%s2026_s0 + $0x14] ss:$8 sps:$4 sm:$0xff]  }
   0x5   :  { %1204 = vmatprep.mubr.msk.bf16.mxu1 %vm446_vm0, %v1259_v6  ;;  %v1250_v9 = vld [vmem:[%s2025_s1 + $0x8] sm:$0xff]   ;;  %v1251_v12 = vld [vmem:[%s2025_s1] sm:$0xff]   ;;  %v1262_v20 = vld [vmem:[%s2026_s0 + $0x114] ss:$8 sps:$4 sm:$0xff]  }
   0x6   :  { %553 = vmatpush1.bf16.msra.mxu0 %v1245_v2  ;;  %1233 = vmatpush1.bf16.msra.mxu1 %v1245_v2  ;;  %v1253_v16 = vld [vmem:[%s2025_s1 + $0x40] sm:$0xff]   ;;  %v1264_v21 = vld [vmem:[%s2026_s0 + $0x10] ss:$8 sps:$4 sm:$0xff]   ;;  %v1272_v27 = vld [vmem:[%s2026_s0 + $0x34] ss:$8 sps:$4 sm:$0xff]  }
   0x7   :  { %554 = vmatprep.subr.bf16.mxu0 %v1350_v0  ;;  %1224 = vmatprep.subr.bf16.mxu1 %v1350_v0  ;;  %v1257_v18 = vld [vmem:[%s2026_s0 + $0x100] ss:$8 sps:$4 sm:$0xff]   ;;  %v1265_v22 = vld [vmem:[%s2026_s0 + $0x110] ss:$8 sps:$4 sm:$0xff]   ;;  %v1266_v23 = vld [vmem:[%s2026_s0 + $0x24] ss:$8 sps:$4 sm:$0xff]  }
   0x8   :  { %v1268_v24 = vld [vmem:[%s2026_s0 + $0x124] ss:$8 sps:$4 sm:$0xff]   ;;  %v1270_v25 = vld [vmem:[%s2026_s0 + $0x20] ss:$8 sps:$4 sm:$0xff]   ;;  %v1274_v28 = vld [vmem:[%s2026_s0 + $0x134] ss:$8 sps:$4 sm:$0xff]  }
   0x9   :  { %v1271_v26 = vld [vmem:[%s2026_s0 + $0x120] ss:$8 sps:$4 sm:$0xff]   ;;  %v1276_v29 = vld [vmem:[%s2026_s0 + $0x30] ss:$8 sps:$4 sm:$0xff]   ;;  %v1278_v31 = vld [vmem:[%s2026_s0 + $0x44] ss:$8 sps:$4 sm:$0xff]  }
   0xa   :  { %555 = vmatpush1.bf16.msra.mxu0 %v1246_v3  ;;  %1234 = vmatpush1.bf16.msra.mxu1 %v1246_v3  ;;  %v1277_v30 = vld [vmem:[%s2026_s0 + $0x130] ss:$8 sps:$4 sm:$0xff]   ;;  %v1280_v32 = vld [vmem:[%s2026_s0 + $0x144] ss:$8 sps:$4 sm:$0xff]   ;;  %v1282_v33 = vld [vmem:[%s2026_s0 + $0x40] ss:$8 sps:$4 sm:$0xff]  }
   0xb   :  { %556 = vmatprep.subr.bf16.mxu0 %v1350_v0  ;;  %1225 = vmatprep.subr.bf16.mxu1 %v1350_v0  ;;  %v1283_v34 = vld [vmem:[%s2026_s0 + $0x140] ss:$8 sps:$4 sm:$0xff]   ;;  %v1284_v35 = vld [vmem:[%s2026_s0 + $0x54] ss:$8 sps:$4 sm:$0xff]   ;;  %v1288_v37 = vld [vmem:[%s2026_s0 + $0x50] ss:$8 sps:$4 sm:$0xff]  }
   0xc   :  { %v1286_v36 = vld [vmem:[%s2026_s0 + $0x154] ss:$8 sps:$4 sm:$0xff]   ;;  %v1289_v38 = vld [vmem:[%s2026_s0 + $0x150] ss:$8 sps:$4 sm:$0xff]   ;;  %v1290_v39 = vld [vmem:[%s2026_s0 + $0x64] ss:$8 sps:$4 sm:$0xff]  }
   0xd   :  { %v1292_v40 = vld [vmem:[%s2026_s0 + $0x164] ss:$8 sps:$4 sm:$0xff]   ;;  %v1294_v41 = vld [vmem:[%s2026_s0 + $0x60] ss:$8 sps:$4 sm:$0xff]   ;;  %v1296_v43 = vld [vmem:[%s2026_s0 + $0x74] ss:$8 sps:$4 sm:$0xff]  }
   0xe   :  { %557 = vmatpush1.bf16.msra.mxu0 %v1247_v4  ;;  %1235 = vmatpush1.bf16.msra.mxu1 %v1247_v4  ;;  %v1295_v42 = vld [vmem:[%s2026_s0 + $0x160] ss:$8 sps:$4 sm:$0xff]   ;;  %v1298_v44 = vld [vmem:[%s2026_s0 + $0x174] ss:$8 sps:$4 sm:$0xff]   ;;  %v1300_v45 = vld [vmem:[%s2026_s0 + $0x70] ss:$8 sps:$4 sm:$0xff]  }
   0xf   :  { %558 = vmatprep.subr.bf16.mxu0 %v1350_v0  ;;  %1226 = vmatprep.subr.bf16.mxu1 %v1350_v0  ;;  %v1301_v46 = vld [vmem:[%s2026_s0 + $0x170] ss:$8 sps:$4 sm:$0xff]   ;;  %v1302_v47 = vld [vmem:[%s2026_s0 + $0x84] ss:$8 sps:$4 sm:$0xff]   ;;  %v1306_v49 = vld [vmem:[%s2026_s0 + $0x80] ss:$8 sps:$4 sm:$0xff]  }
  0x10   :  { %v1304_v48 = vld [vmem:[%s2026_s0 + $0x184] ss:$8 sps:$4 sm:$0xff]   ;;  %v1307_v50 = vld [vmem:[%s2026_s0 + $0x180] ss:$8 sps:$4 sm:$0xff]   ;;  %v1308_v51 = vld [vmem:[%s2026_s0 + $0x94] ss:$8 sps:$4 sm:$0xff]  }
  0x11   :  { %v1310_v52 = vld [vmem:[%s2026_s0 + $0x194] ss:$8 sps:$4 sm:$0xff]   ;;  %v1312_v53 = vld [vmem:[%s2026_s0 + $0x90] ss:$8 sps:$4 sm:$0xff]   ;;  %v1314_v55 = vld [vmem:[%s2026_s0 + $0xa4] ss:$8 sps:$4 sm:$0xff]  }
  0x12   :  { %559 = vmatpush1.bf16.msra.mxu0 %v1248_v7  ;;  %1236 = vmatpush1.bf16.msra.mxu1 %v1248_v7  ;;  %v1313_v54 = vld [vmem:[%s2026_s0 + $0x190] ss:$8 sps:$4 sm:$0xff]   ;;  %v1316_v56 = vld [vmem:[%s2026_s0 + $0x1a4] ss:$8 sps:$4 sm:$0xff]   ;;  %v1318_v57 = vld [vmem:[%s2026_s0 + $0xa0] ss:$8 sps:$4 sm:$0xff]  }
  0x13   :  { %560 = vmatprep.subr.bf16.mxu0 %v1350_v0  ;;  %1227 = vmatprep.subr.bf16.mxu1 %v1350_v0  ;;  %v1319_v58 = vld [vmem:[%s2026_s0 + $0x1a0] ss:$8 sps:$4 sm:$0xff]   ;;  %v1320_v59 = vld [vmem:[%s2026_s0 + $0xb4] ss:$8 sps:$4 sm:$0xff]   ;;  %v1324_v61 = vld [vmem:[%s2026_s0 + $0xb0] ss:$8 sps:$4 sm:$0xff]  }
  0x14   :  { %v1322_v60 = vld [vmem:[%s2026_s0 + $0x1b4] ss:$8 sps:$4 sm:$0xff]   ;;  %v1325_v62 = vld [vmem:[%s2026_s0 + $0x1b0] ss:$8 sps:$4 sm:$0xff]   ;;  %v1326_v63 = vld [vmem:[%s2026_s0 + $0xc4] ss:$8 sps:$4 sm:$0xff]  }
  0x15   :  { %v1330_v1 = vld [vmem:[%s2026_s0 + $0xc0] ss:$8 sps:$4 sm:$0xff]   ;;  %v1332_v3 = vld [vmem:[%s2026_s0 + $0xd4] ss:$8 sps:$4 sm:$0xff]   ;;  %v1336_v5 = vld [vmem:[%s2026_s0 + $0xd0] ss:$8 sps:$4 sm:$0xff]  }
  0x16   :  { %561 = vmatpush1.bf16.msra.mxu0 %v1249_v8  ;;  %1237 = vmatpush1.bf16.msra.mxu1 %v1249_v8  ;;  %v1331_v2 = vld [vmem:[%s2026_s0 + $0x1c0] ss:$8 sps:$4 sm:$0xff]   ;;  %v1334_v4 = vld [vmem:[%s2026_s0 + $0x1d4] ss:$8 sps:$4 sm:$0xff]   ;;  %v1337_v6 = vld [vmem:[%s2026_s0 + $0x1d0] ss:$8 sps:$4 sm:$0xff]  }
  0x17   :  { %562 = vmatprep.subr.bf16.mxu0 %v1350_v0  ;;  %1228 = vmatprep.subr.bf16.mxu1 %v1350_v0  ;;  %v1338_v7 = vld [vmem:[%s2026_s0 + $0xe4] ss:$8 sps:$4 sm:$0xff]   ;;  %v1343_v10 = vld [vmem:[%s2026_s0 + $0x1e0] ss:$8 sps:$4 sm:$0xff]   ;;  %v1344_v11 = vld [vmem:[%s2026_s0 + $0xf4] ss:$8 sps:$4 sm:$0xff]  }
  0x18   :  { %v1340_v8 = vld [vmem:[%s2026_s0 + $0x1e4] ss:$8 sps:$4 sm:$0xff]   ;;  %v1348_v13 = vld [vmem:[%s2026_s0 + $0xf0] ss:$8 sps:$4 sm:$0xff]  }
  0x19   :  { %v1349_v14 = vld [vmem:[%s2026_s0 + $0x1f0] ss:$8 sps:$4 sm:$0xff]  }
  0x1a   :  { %563 = vmatpush1.bf16.msra.mxu0 %v1250_v9  ;;  %1238 = vmatpush1.bf16.msra.mxu1 %v1250_v9  ;;  %v1342_v9 = vld [vmem:[%s2026_s0 + $0xe0] ss:$8 sps:$4 sm:$0xff]  }
  0x1b   :  { %564 = vmatprep.subr.bf16.mxu0 %v1350_v0  ;;  %1229 = vmatprep.subr.bf16.mxu1 %v1350_v0 }
  0x1e   :  { %565 = vmatpush1.bf16.msra.mxu0 %v1251_v12  ;;  %1239 = vmatpush1.bf16.msra.mxu1 %v1251_v12  ;;  %v1346_v12 = vld [vmem:[%s2026_s0 + $0x1f4] ss:$8 sps:$4 sm:$0xff]  }
  0x1f   :  { %578 = vmatprep.subr.bf16.mxu0 %v1350_v0  ;;  %1230 = vmatprep.subr.bf16.mxu1 %v1350_v0 }
  0x22   :  { %579 = vmatpush2.bf16.msra.mxu0 %v548_v15  ;;  %1240 = vmatpush2.bf16.msra.mxu1 %v548_v15  ;;  %v1634_v15 = vld [vmem:[%s2027_s2] ss:$0 sm:$0xff] }
  0x23   :  { %580 = vmatprep.subr.bf16.mxu0 %v1350_v0  ;;  %1231 = vmatprep.subr.bf16.mxu1 %v1350_v0  ;;  %v1328_v0 = vld [vmem:[%s2026_s0 + $0x1c4] ss:$8 sps:$4 sm:$0xff]  }
  0x26   :  { %581 = vmatpush2.bf16.msra.mxu0 %v1253_v16  ;;  %1241 = vmatpush2.bf16.msra.mxu1 %v1253_v16 }
  0x29   :  { %583 = vmatmul.mubr.bf16.vlgmr.msra.gmra.mxu0 %v1254_v17  ;;  %711 = vmatmul.mubr.bf16.vlgmr.msra.gmra.mxu1 %v1257_v18  ;;  %v1639_v17 = vld [vmem:[%s2028_s3] ss:$0 sm:$0xff] }
  0x2a   :  { %1189 = vmatprep.mubr.msk.bf16.mxu0 %vm446_vm0, %v1260_v19  ;;  %1205 = vmatprep.mubr.msk.bf16.mxu1 %vm446_vm0, %v1262_v20 }
  0x31   :  { %591 = vmatmul.mubr.bf16.gmra.mxu0 %v1264_v21  ;;  %719 = vmatmul.mubr.bf16.gmra.mxu1 %v1265_v22 }
  0x32   :  { %1190 = vmatprep.mubr.msk.bf16.mxu0 %vm446_vm0, %v1266_v23  ;;  %1206 = vmatprep.mubr.msk.bf16.mxu1 %vm446_vm0, %v1268_v24 }
  0x39   :  { %599 = vmatmul.mubr.bf16.gmra.mxu0 %v1270_v25  ;;  %727 = vmatmul.mubr.bf16.gmra.mxu1 %v1271_v26 }
  0x3a   :  { %1191 = vmatprep.mubr.msk.bf16.mxu0 %vm446_vm0, %v1272_v27  ;;  %1207 = vmatprep.mubr.msk.bf16.mxu1 %vm446_vm0, %v1274_v28 }
  0x41   :  { %607 = vmatmul.mubr.bf16.gmra.mxu0 %v1276_v29  ;;  %735 = vmatmul.mubr.bf16.gmra.mxu1 %v1277_v30 }
  0x42   :  { %1192 = vmatprep.mubr.msk.bf16.mxu0 %vm446_vm0, %v1278_v31  ;;  %1208 = vmatprep.mubr.msk.bf16.mxu1 %vm446_vm0, %v1280_v32 }
  0x49   :  { %615 = vmatmul.mubr.bf16.gmra.mxu0 %v1282_v33  ;;  %743 = vmatmul.mubr.bf16.gmra.mxu1 %v1283_v34 }
  0x4a   :  { %1193 = vmatprep.mubr.msk.bf16.mxu0 %vm446_vm0, %v1284_v35  ;;  %1209 = vmatprep.mubr.msk.bf16.mxu1 %vm446_vm0, %v1286_v36 }
  0x51   :  { %623 = vmatmul.mubr.bf16.gmra.mxu0 %v1288_v37  ;;  %751 = vmatmul.mubr.bf16.gmra.mxu1 %v1289_v38 }
  0x52   :  { %1194 = vmatprep.mubr.msk.bf16.mxu0 %vm446_vm0, %v1290_v39  ;;  %1210 = vmatprep.mubr.msk.bf16.mxu1 %vm446_vm0, %v1292_v40 }
  0x59   :  { %631 = vmatmul.mubr.bf16.gmra.mxu0 %v1294_v41  ;;  %759 = vmatmul.mubr.bf16.gmra.mxu1 %v1295_v42 }
  0x5a   :  { %1195 = vmatprep.mubr.msk.bf16.mxu0 %vm446_vm0, %v1296_v43  ;;  %1211 = vmatprep.mubr.msk.bf16.mxu1 %vm446_vm0, %v1298_v44 }
  0x61   :  { %639 = vmatmul.mubr.bf16.gmra.mxu0 %v1300_v45  ;;  %767 = vmatmul.mubr.bf16.gmra.mxu1 %v1301_v46 }
  0x62   :  { %1196 = vmatprep.mubr.msk.bf16.mxu0 %vm446_vm0, %v1302_v47  ;;  %1212 = vmatprep.mubr.msk.bf16.mxu1 %vm446_vm0, %v1304_v48 }
  0x69   :  { %647 = vmatmul.mubr.bf16.gmra.mxu0 %v1306_v49  ;;  %775 = vmatmul.mubr.bf16.gmra.mxu1 %v1307_v50 }
  0x6a   :  { %1197 = vmatprep.mubr.msk.bf16.mxu0 %vm446_vm0, %v1308_v51  ;;  %1213 = vmatprep.mubr.msk.bf16.mxu1 %vm446_vm0, %v1310_v52 }
  0x71   :  { %655 = vmatmul.mubr.bf16.gmra.mxu0 %v1312_v53  ;;  %783 = vmatmul.mubr.bf16.gmra.mxu1 %v1313_v54 }
  0x72   :  { %1198 = vmatprep.mubr.msk.bf16.mxu0 %vm446_vm0, %v1314_v55  ;;  %1214 = vmatprep.mubr.msk.bf16.mxu1 %vm446_vm0, %v1316_v56 }
  0x79   :  { %663 = vmatmul.mubr.bf16.gmra.mxu0 %v1318_v57  ;;  %791 = vmatmul.mubr.bf16.gmra.mxu1 %v1319_v58 }
  0x7a   :  { %1199 = vmatprep.mubr.msk.bf16.mxu0 %vm446_vm0, %v1320_v59  ;;  %1215 = vmatprep.mubr.msk.bf16.mxu1 %vm446_vm0, %v1322_v60 }
  0x81   :  { %671 = vmatmul.mubr.bf16.gmra.mxu0 %v1324_v61  ;;  %799 = vmatmul.mubr.bf16.gmra.mxu1 %v1325_v62 }
  0x82   :  { %1200 = vmatprep.mubr.msk.bf16.mxu0 %vm446_vm0, %v1326_v63  ;;  %1216 = vmatprep.mubr.msk.bf16.mxu1 %vm446_vm0, %v1328_v0 }
  0x89   :  { %679 = vmatmul.mubr.bf16.gmra.mxu0 %v1330_v1  ;;  %807 = vmatmul.mubr.bf16.gmra.mxu1 %v1331_v2 }
  0x8a   :  { %1201 = vmatprep.mubr.msk.bf16.mxu0 %vm446_vm0, %v1332_v3  ;;  %1217 = vmatprep.mubr.msk.bf16.mxu1 %vm446_vm0, %v1334_v4 }
  0x91   :  { %687 = vmatmul.mubr.bf16.gmra.mxu0 %v1336_v5  ;;  %815 = vmatmul.mubr.bf16.gmra.mxu1 %v1337_v6 }
  0x92   :  { %1202 = vmatprep.mubr.msk.bf16.mxu0 %vm446_vm0, %v1338_v7  ;;  %1218 = vmatprep.mubr.msk.bf16.mxu1 %vm446_vm0, %v1340_v8 }
  0x99   :  { %695 = vmatmul.mubr.bf16.gmra.mxu0 %v1342_v9  ;;  %823 = vmatmul.mubr.bf16.gmra.mxu1 %v1343_v10 }
  0x9a   :  { %1203 = vmatprep.mubr.msk.bf16.mxu0 %vm446_vm0, %v1344_v11  ;;  %1219 = vmatprep.mubr.msk.bf16.mxu1 %vm446_vm0, %v1346_v12 }
  0xa1   :  { %703 = vmatmul.mubr.bf16.gmra.mxu0 %v1348_v13  ;;  %831 = vmatmul.mubr.bf16.gmra.mxu1 %v1349_v14 }
  0xe9   :  { %v584_v16 = vpop.f32.mrf.mxu0  ;;  %v712_v18 = vpop.f32.mrf.mxu1 }
  0xea   :  { %v846_v19 = vmul.f32 %v1634_v15, %v584_v16  ;;  %v878_v20 = vmul.f32 %v1634_v15, %v712_v18 }
  0xeb   :  { %v586_v21 = vpop.f32.mrf.mxu0  ;;  %v714_v22 = vpop.f32.mrf.mxu1 }
  0xec   :  { %v917_v23 = vadd.f32 %v1639_v17, %v846_v19  ;;  %v949_v24 = vadd.f32 %v1639_v17, %v878_v20 }
  0xed   :  { %v587_v25 = vpop.f32.mrf.mxu0  ;;  %v715_v26 = vpop.f32.mrf.mxu1 }
  0xee   :  { %v981_v27 = vmax.f32 %v917_v23, 0.0  ;;  %v1013_v28 = vmax.f32 %v949_v24, 0.0  ;;  %v847_v29 = vmul.f32 %v1634_v15, %v587_v25  ;;  %v879_v30 = vmul.f32 %v1634_v15, %v715_v26 }
  0xef   :  { %v589_v31 = vpop.f32.mrf.mxu0  ;;  %v717_v32 = vpop.f32.mrf.mxu1 }
  0xf0   :  { %1046 = vst.msk [vmem:[%s2029_s4] sm:$0xff] %vm1045_vm3, %v981_v27  ;;  %1078 = vst.msk [vmem:[%s2029_s4 + $0x100] sm:$0xff] %vm1045_vm3, %v1013_v28  ;;  %v918_v33 = vadd.f32 %v1639_v17, %v847_v29  ;;  %v950_v34 = vadd.f32 %v1639_v17, %v879_v30 }
  0xf1   :  { %v592_v35 = vpop.f32.mrf.mxu0  ;;  %v720_v36 = vpop.f32.mrf.mxu1 }
  0xf2   :  { %v982_v37 = vmax.f32 %v918_v33, 0.0  ;;  %v1014_v38 = vmax.f32 %v950_v34, 0.0  ;;  %v848_v39 = vmul.f32 %v1634_v15, %v592_v35  ;;  %v880_v40 = vmul.f32 %v1634_v15, %v720_v36 }
  0xf3   :  { %v594_v41 = vpop.f32.mrf.mxu0  ;;  %v722_v42 = vpop.f32.mrf.mxu1 }
  0xf4   :  { %1047 = vst.msk [vmem:[%s2029_s4 + $0x8] sm:$0xff] %vm1045_vm3, %v982_v37  ;;  %1079 = vst.msk [vmem:[%s2029_s4 + $0x108] sm:$0xff] %vm1045_vm3, %v1014_v38  ;;  %v919_v43 = vadd.f32 %v1639_v17, %v848_v39  ;;  %v951_v44 = vadd.f32 %v1639_v17, %v880_v40 }
  0xf5   :  { %v595_v45 = vpop.f32.mrf.mxu0  ;;  %v723_v46 = vpop.f32.mrf.mxu1 }
  0xf6   :  { %v983_v47 = vmax.f32 %v919_v43, 0.0  ;;  %v1015_v48 = vmax.f32 %v951_v44, 0.0  ;;  %v849_v49 = vmul.f32 %v1634_v15, %v595_v45  ;;  %v881_v50 = vmul.f32 %v1634_v15, %v723_v46 }
  0xf7   :  { %v597_v51 = vpop.f32.mrf.mxu0  ;;  %v725_v52 = vpop.f32.mrf.mxu1 }
  0xf8   :  { %1048 = vst.msk [vmem:[%s2029_s4 + $0x10] sm:$0xff] %vm1045_vm3, %v983_v47  ;;  %1080 = vst.msk [vmem:[%s2029_s4 + $0x110] sm:$0xff] %vm1045_vm3, %v1015_v48  ;;  %v920_v53 = vadd.f32 %v1639_v17, %v849_v49  ;;  %v952_v54 = vadd.f32 %v1639_v17, %v881_v50 }
  0xf9   :  { %v600_v55 = vpop.f32.mrf.mxu0  ;;  %v728_v56 = vpop.f32.mrf.mxu1 }
  0xfa   :  { %v984_v57 = vmax.f32 %v920_v53, 0.0  ;;  %v1016_v58 = vmax.f32 %v952_v54, 0.0  ;;  %v850_v59 = vmul.f32 %v1634_v15, %v600_v55  ;;  %v882_v60 = vmul.f32 %v1634_v15, %v728_v56 }
  0xfb   :  { %v602_v61 = vpop.f32.mrf.mxu0  ;;  %v730_v62 = vpop.f32.mrf.mxu1 }
  0xfc   :  { %1049 = vst.msk [vmem:[%s2029_s4 + $0x18] sm:$0xff] %vm1045_vm3, %v984_v57  ;;  %1081 = vst.msk [vmem:[%s2029_s4 + $0x118] sm:$0xff] %vm1045_vm3, %v1016_v58  ;;  %v921_v63 = vadd.f32 %v1639_v17, %v850_v59  ;;  %v953_v0 = vadd.f32 %v1639_v17, %v882_v60 }
  0xfd   :  { %v603_v1 = vpop.f32.mrf.mxu0  ;;  %v731_v2 = vpop.f32.mrf.mxu1 }
  0xfe   :  { %v985_v3 = vmax.f32 %v921_v63, 0.0  ;;  %v1017_v4 = vmax.f32 %v953_v0, 0.0  ;;  %v851_v5 = vmul.f32 %v1634_v15, %v603_v1  ;;  %v883_v6 = vmul.f32 %v1634_v15, %v731_v2 }
  0xff   :  { %v605_v7 = vpop.f32.mrf.mxu0  ;;  %v733_v8 = vpop.f32.mrf.mxu1 }
 0x100   :  { %1050 = vst.msk [vmem:[%s2029_s4 + $0x20] sm:$0xff] %vm1045_vm3, %v985_v3  ;;  %1082 = vst.msk [vmem:[%s2029_s4 + $0x120] sm:$0xff] %vm1045_vm3, %v1017_v4  ;;  %v922_v9 = vadd.f32 %v1639_v17, %v851_v5  ;;  %v954_v10 = vadd.f32 %v1639_v17, %v883_v6 }
 0x101   :  { %v608_v11 = vpop.f32.mrf.mxu0  ;;  %v736_v12 = vpop.f32.mrf.mxu1 }
 0x102   :  { %v986_v13 = vmax.f32 %v922_v9, 0.0  ;;  %v1018_v14 = vmax.f32 %v954_v10, 0.0  ;;  %v852_v16 = vmul.f32 %v1634_v15, %v608_v11  ;;  %v884_v18 = vmul.f32 %v1634_v15, %v736_v12 }
 0x103   :  { %v610_v19 = vpop.f32.mrf.mxu0  ;;  %v738_v20 = vpop.f32.mrf.mxu1 }
 0x104   :  { %1051 = vst.msk [vmem:[%s2029_s4 + $0x28] sm:$0xff] %vm1045_vm3, %v986_v13  ;;  %1083 = vst.msk [vmem:[%s2029_s4 + $0x128] sm:$0xff] %vm1045_vm3, %v1018_v14  ;;  %v923_v21 = vadd.f32 %v1639_v17, %v852_v16  ;;  %v955_v22 = vadd.f32 %v1639_v17, %v884_v18 }
 0x105   :  { %v611_v23 = vpop.f32.mrf.mxu0  ;;  %v739_v24 = vpop.f32.mrf.mxu1 }
 0x106   :  { %v987_v25 = vmax.f32 %v923_v21, 0.0  ;;  %v1019_v26 = vmax.f32 %v955_v22, 0.0  ;;  %v853_v27 = vmul.f32 %v1634_v15, %v611_v23  ;;  %v885_v28 = vmul.f32 %v1634_v15, %v739_v24 }
 0x107   :  { %v613_v29 = vpop.f32.mrf.mxu0  ;;  %v741_v30 = vpop.f32.mrf.mxu1 }
 0x108   :  { %1052 = vst.msk [vmem:[%s2029_s4 + $0x30] sm:$0xff] %vm1045_vm3, %v987_v25  ;;  %1084 = vst.msk [vmem:[%s2029_s4 + $0x130] sm:$0xff] %vm1045_vm3, %v1019_v26  ;;  %v924_v31 = vadd.f32 %v1639_v17, %v853_v27  ;;  %v956_v32 = vadd.f32 %v1639_v17, %v885_v28 }
 0x109   :  { %v616_v33 = vpop.f32.mrf.mxu0  ;;  %v744_v34 = vpop.f32.mrf.mxu1 }
 0x10a   :  { %v988_v35 = vmax.f32 %v924_v31, 0.0  ;;  %v1020_v36 = vmax.f32 %v956_v32, 0.0  ;;  %v854_v37 = vmul.f32 %v1634_v15, %v616_v33  ;;  %v886_v38 = vmul.f32 %v1634_v15, %v744_v34 }
 0x10b   :  { %v618_v39 = vpop.f32.mrf.mxu0  ;;  %v746_v40 = vpop.f32.mrf.mxu1 }
 0x10c   :  { %1053 = vst.msk [vmem:[%s2029_s4 + $0x38] sm:$0xff] %vm1045_vm3, %v988_v35  ;;  %1085 = vst.msk [vmem:[%s2029_s4 + $0x138] sm:$0xff] %vm1045_vm3, %v1020_v36  ;;  %v925_v41 = vadd.f32 %v1639_v17, %v854_v37  ;;  %v957_v42 = vadd.f32 %v1639_v17, %v886_v38 }
 0x10d   :  { %v619_v43 = vpop.f32.mrf.mxu0  ;;  %v747_v44 = vpop.f32.mrf.mxu1 }
 0x10e   :  { %v989_v45 = vmax.f32 %v925_v41, 0.0  ;;  %v1021_v46 = vmax.f32 %v957_v42, 0.0  ;;  %v855_v47 = vmul.f32 %v1634_v15, %v619_v43  ;;  %v887_v48 = vmul.f32 %v1634_v15, %v747_v44 }
 0x10f   :  { %v621_v49 = vpop.f32.mrf.mxu0  ;;  %v749_v50 = vpop.f32.mrf.mxu1 }
 0x110   :  { %1054 = vst.msk [vmem:[%s2029_s4 + $0x40] sm:$0xff] %vm1045_vm3, %v989_v45  ;;  %1086 = vst.msk [vmem:[%s2029_s4 + $0x140] sm:$0xff] %vm1045_vm3, %v1021_v46  ;;  %v926_v51 = vadd.f32 %v1639_v17, %v855_v47  ;;  %v958_v52 = vadd.f32 %v1639_v17, %v887_v48 }
 0x111   :  { %v624_v53 = vpop.f32.mrf.mxu0  ;;  %v752_v54 = vpop.f32.mrf.mxu1 }
 0x112   :  { %v990_v55 = vmax.f32 %v926_v51, 0.0  ;;  %v1022_v56 = vmax.f32 %v958_v52, 0.0  ;;  %v856_v57 = vmul.f32 %v1634_v15, %v624_v53  ;;  %v888_v58 = vmul.f32 %v1634_v15, %v752_v54 }
 0x113   :  { %v626_v59 = vpop.f32.mrf.mxu0  ;;  %v754_v60 = vpop.f32.mrf.mxu1 }
 0x114   :  { %1055 = vst.msk [vmem:[%s2029_s4 + $0x48] sm:$0xff] %vm1045_vm3, %v990_v55  ;;  %1087 = vst.msk [vmem:[%s2029_s4 + $0x148] sm:$0xff] %vm1045_vm3, %v1022_v56  ;;  %v927_v61 = vadd.f32 %v1639_v17, %v856_v57  ;;  %v959_v62 = vadd.f32 %v1639_v17, %v888_v58 }
 0x115   :  { %v627_v63 = vpop.f32.mrf.mxu0  ;;  %v755_v0 = vpop.f32.mrf.mxu1 }
 0x116   :  { %v991_v1 = vmax.f32 %v927_v61, 0.0  ;;  %v1023_v2 = vmax.f32 %v959_v62, 0.0  ;;  %v857_v3 = vmul.f32 %v1634_v15, %v627_v63  ;;  %v889_v4 = vmul.f32 %v1634_v15, %v755_v0 }
 0x117   :  { %v629_v5 = vpop.f32.mrf.mxu0  ;;  %v757_v6 = vpop.f32.mrf.mxu1 }
 0x118   :  { %1056 = vst.msk [vmem:[%s2029_s4 + $0x50] sm:$0xff] %vm1045_vm3, %v991_v1  ;;  %1088 = vst.msk [vmem:[%s2029_s4 + $0x150] sm:$0xff] %vm1045_vm3, %v1023_v2  ;;  %v928_v7 = vadd.f32 %v1639_v17, %v857_v3  ;;  %v960_v8 = vadd.f32 %v1639_v17, %v889_v4 }
 0x119   :  { %v632_v9 = vpop.f32.mrf.mxu0  ;;  %v760_v10 = vpop.f32.mrf.mxu1 }
 0x11a   :  { %v992_v11 = vmax.f32 %v928_v7, 0.0  ;;  %v1024_v12 = vmax.f32 %v960_v8, 0.0  ;;  %v858_v13 = vmul.f32 %v1634_v15, %v632_v9  ;;  %v890_v14 = vmul.f32 %v1634_v15, %v760_v10 }
 0x11b   :  { %v634_v16 = vpop.f32.mrf.mxu0  ;;  %v762_v18 = vpop.f32.mrf.mxu1 }
 0x11c   :  { %1057 = vst.msk [vmem:[%s2029_s4 + $0x58] sm:$0xff] %vm1045_vm3, %v992_v11  ;;  %1089 = vst.msk [vmem:[%s2029_s4 + $0x158] sm:$0xff] %vm1045_vm3, %v1024_v12  ;;  %v929_v19 = vadd.f32 %v1639_v17, %v858_v13  ;;  %v961_v20 = vadd.f32 %v1639_v17, %v890_v14 }
 0x11d   :  { %v635_v21 = vpop.f32.mrf.mxu0  ;;  %v763_v22 = vpop.f32.mrf.mxu1 }
 0x11e   :  { %v993_v23 = vmax.f32 %v929_v19, 0.0  ;;  %v1025_v24 = vmax.f32 %v961_v20, 0.0  ;;  %v859_v25 = vmul.f32 %v1634_v15, %v635_v21  ;;  %v891_v26 = vmul.f32 %v1634_v15, %v763_v22 }
 0x11f   :  { %v637_v27 = vpop.f32.mrf.mxu0  ;;  %v765_v28 = vpop.f32.mrf.mxu1 }
 0x120   :  { %1058 = vst.msk [vmem:[%s2029_s4 + $0x60] sm:$0xff] %vm1045_vm3, %v993_v23  ;;  %1090 = vst.msk [vmem:[%s2029_s4 + $0x160] sm:$0xff] %vm1045_vm3, %v1025_v24  ;;  %v930_v29 = vadd.f32 %v1639_v17, %v859_v25  ;;  %v962_v30 = vadd.f32 %v1639_v17, %v891_v26 }
 0x121   :  { %v640_v31 = vpop.f32.mrf.mxu0  ;;  %v768_v32 = vpop.f32.mrf.mxu1 }
 0x122   :  { %v994_v33 = vmax.f32 %v930_v29, 0.0  ;;  %v1026_v34 = vmax.f32 %v962_v30, 0.0  ;;  %v860_v35 = vmul.f32 %v1634_v15, %v640_v31  ;;  %v892_v36 = vmul.f32 %v1634_v15, %v768_v32 }
 0x123   :  { %v642_v37 = vpop.f32.mrf.mxu0  ;;  %v770_v38 = vpop.f32.mrf.mxu1 }
 0x124   :  { %1059 = vst.msk [vmem:[%s2029_s4 + $0x68] sm:$0xff] %vm1045_vm3, %v994_v33  ;;  %1091 = vst.msk [vmem:[%s2029_s4 + $0x168] sm:$0xff] %vm1045_vm3, %v1026_v34  ;;  %v931_v39 = vadd.f32 %v1639_v17, %v860_v35  ;;  %v963_v40 = vadd.f32 %v1639_v17, %v892_v36 }
 0x125   :  { %v643_v41 = vpop.f32.mrf.mxu0  ;;  %v771_v42 = vpop.f32.mrf.mxu1 }
 0x126   :  { %v995_v43 = vmax.f32 %v931_v39, 0.0  ;;  %v1027_v44 = vmax.f32 %v963_v40, 0.0  ;;  %v861_v45 = vmul.f32 %v1634_v15, %v643_v41  ;;  %v893_v46 = vmul.f32 %v1634_v15, %v771_v42 }
 0x127   :  { %v645_v47 = vpop.f32.mrf.mxu0  ;;  %v773_v48 = vpop.f32.mrf.mxu1 }
 0x128   :  { %1060 = vst.msk [vmem:[%s2029_s4 + $0x70] sm:$0xff] %vm1045_vm3, %v995_v43  ;;  %1092 = vst.msk [vmem:[%s2029_s4 + $0x170] sm:$0xff] %vm1045_vm3, %v1027_v44  ;;  %v932_v49 = vadd.f32 %v1639_v17, %v861_v45  ;;  %v964_v50 = vadd.f32 %v1639_v17, %v893_v46 }
 0x129   :  { %v648_v51 = vpop.f32.mrf.mxu0  ;;  %v776_v52 = vpop.f32.mrf.mxu1 }
 0x12a   :  { %v996_v53 = vmax.f32 %v932_v49, 0.0  ;;  %v1028_v54 = vmax.f32 %v964_v50, 0.0  ;;  %v862_v55 = vmul.f32 %v1634_v15, %v648_v51  ;;  %v894_v56 = vmul.f32 %v1634_v15, %v776_v52 }
 0x12b   :  { %v650_v57 = vpop.f32.mrf.mxu0  ;;  %v778_v58 = vpop.f32.mrf.mxu1 }
 0x12c   :  { %1061 = vst.msk [vmem:[%s2029_s4 + $0x78] sm:$0xff] %vm1045_vm3, %v996_v53  ;;  %1093 = vst.msk [vmem:[%s2029_s4 + $0x178] sm:$0xff] %vm1045_vm3, %v1028_v54  ;;  %v933_v59 = vadd.f32 %v1639_v17, %v862_v55  ;;  %v965_v60 = vadd.f32 %v1639_v17, %v894_v56 }
 0x12d   :  { %v651_v61 = vpop.f32.mrf.mxu0  ;;  %v779_v62 = vpop.f32.mrf.mxu1 }
 0x12e   :  { %v997_v63 = vmax.f32 %v933_v59, 0.0  ;;  %v1029_v0 = vmax.f32 %v965_v60, 0.0  ;;  %v863_v1 = vmul.f32 %v1634_v15, %v651_v61  ;;  %v895_v2 = vmul.f32 %v1634_v15, %v779_v62 }
 0x12f   :  { %v653_v3 = vpop.f32.mrf.mxu0  ;;  %v781_v4 = vpop.f32.mrf.mxu1 }
 0x130   :  { %1062 = vst.msk [vmem:[%s2029_s4 + $0x80] sm:$0xff] %vm1045_vm3, %v997_v63  ;;  %1094 = vst.msk [vmem:[%s2029_s4 + $0x180] sm:$0xff] %vm1045_vm3, %v1029_v0  ;;  %v934_v5 = vadd.f32 %v1639_v17, %v863_v1  ;;  %v966_v6 = vadd.f32 %v1639_v17, %v895_v2 }
 0x131   :  { %v656_v7 = vpop.f32.mrf.mxu0  ;;  %v784_v8 = vpop.f32.mrf.mxu1 }
 0x132   :  { %v998_v9 = vmax.f32 %v934_v5, 0.0  ;;  %v1030_v10 = vmax.f32 %v966_v6, 0.0  ;;  %v864_v11 = vmul.f32 %v1634_v15, %v656_v7  ;;  %v896_v12 = vmul.f32 %v1634_v15, %v784_v8 }
 0x133   :  { %v658_v13 = vpop.f32.mrf.mxu0  ;;  %v786_v14 = vpop.f32.mrf.mxu1 }
 0x134   :  { %1063 = vst.msk [vmem:[%s2029_s4 + $0x88] sm:$0xff] %vm1045_vm3, %v998_v9  ;;  %1095 = vst.msk [vmem:[%s2029_s4 + $0x188] sm:$0xff] %vm1045_vm3, %v1030_v10  ;;  %v935_v16 = vadd.f32 %v1639_v17, %v864_v11  ;;  %v967_v18 = vadd.f32 %v1639_v17, %v896_v12 }
 0x135   :  { %v659_v19 = vpop.f32.mrf.mxu0  ;;  %v787_v20 = vpop.f32.mrf.mxu1 }
 0x136   :  { %v999_v21 = vmax.f32 %v935_v16, 0.0  ;;  %v1031_v22 = vmax.f32 %v967_v18, 0.0  ;;  %v865_v23 = vmul.f32 %v1634_v15, %v659_v19  ;;  %v897_v24 = vmul.f32 %v1634_v15, %v787_v20 }
 0x137   :  { %v661_v25 = vpop.f32.mrf.mxu0  ;;  %v789_v26 = vpop.f32.mrf.mxu1 }
 0x138   :  { %1064 = vst.msk [vmem:[%s2029_s4 + $0x90] sm:$0xff] %vm1045_vm3, %v999_v21  ;;  %1096 = vst.msk [vmem:[%s2029_s4 + $0x190] sm:$0xff] %vm1045_vm3, %v1031_v22  ;;  %v936_v27 = vadd.f32 %v1639_v17, %v865_v23  ;;  %v968_v28 = vadd.f32 %v1639_v17, %v897_v24 }
 0x139   :  { %v664_v29 = vpop.f32.mrf.mxu0  ;;  %v792_v30 = vpop.f32.mrf.mxu1 }
 0x13a   :  { %v1000_v31 = vmax.f32 %v936_v27, 0.0  ;;  %v1032_v32 = vmax.f32 %v968_v28, 0.0  ;;  %v866_v33 = vmul.f32 %v1634_v15, %v664_v29  ;;  %v898_v34 = vmul.f32 %v1634_v15, %v792_v30 }
 0x13b   :  { %v666_v35 = vpop.f32.mrf.mxu0  ;;  %v794_v36 = vpop.f32.mrf.mxu1 }
 0x13c   :  { %1065 = vst.msk [vmem:[%s2029_s4 + $0x98] sm:$0xff] %vm1045_vm3, %v1000_v31  ;;  %1097 = vst.msk [vmem:[%s2029_s4 + $0x198] sm:$0xff] %vm1045_vm3, %v1032_v32  ;;  %v937_v37 = vadd.f32 %v1639_v17, %v866_v33  ;;  %v969_v38 = vadd.f32 %v1639_v17, %v898_v34 }
 0x13d   :  { %v667_v39 = vpop.f32.mrf.mxu0  ;;  %v795_v40 = vpop.f32.mrf.mxu1 }
 0x13e   :  { %v1001_v41 = vmax.f32 %v937_v37, 0.0  ;;  %v1033_v42 = vmax.f32 %v969_v38, 0.0  ;;  %v867_v43 = vmul.f32 %v1634_v15, %v667_v39  ;;  %v899_v44 = vmul.f32 %v1634_v15, %v795_v40 }
 0x13f   :  { %v669_v45 = vpop.f32.mrf.mxu0  ;;  %v797_v46 = vpop.f32.mrf.mxu1 }
 0x140   :  { %1066 = vst.msk [vmem:[%s2029_s4 + $0xa0] sm:$0xff] %vm1045_vm3, %v1001_v41  ;;  %1098 = vst.msk [vmem:[%s2029_s4 + $0x1a0] sm:$0xff] %vm1045_vm3, %v1033_v42  ;;  %v938_v47 = vadd.f32 %v1639_v17, %v867_v43  ;;  %v970_v48 = vadd.f32 %v1639_v17, %v899_v44 }
 0x141   :  { %v672_v49 = vpop.f32.mrf.mxu0  ;;  %v800_v50 = vpop.f32.mrf.mxu1 }
 0x142   :  { %v1002_v51 = vmax.f32 %v938_v47, 0.0  ;;  %v1034_v52 = vmax.f32 %v970_v48, 0.0  ;;  %v868_v53 = vmul.f32 %v1634_v15, %v672_v49  ;;  %v900_v54 = vmul.f32 %v1634_v15, %v800_v50 }
 0x143   :  { %v674_v55 = vpop.f32.mrf.mxu0  ;;  %v802_v56 = vpop.f32.mrf.mxu1 }
 0x144   :  { %1067 = vst.msk [vmem:[%s2029_s4 + $0xa8] sm:$0xff] %vm1045_vm3, %v1002_v51  ;;  %1099 = vst.msk [vmem:[%s2029_s4 + $0x1a8] sm:$0xff] %vm1045_vm3, %v1034_v52  ;;  %v939_v57 = vadd.f32 %v1639_v17, %v868_v53  ;;  %v971_v58 = vadd.f32 %v1639_v17, %v900_v54 }
 0x145   :  { %v675_v59 = vpop.f32.mrf.mxu0  ;;  %v803_v60 = vpop.f32.mrf.mxu1 }
 0x146   :  { %v1003_v61 = vmax.f32 %v939_v57, 0.0  ;;  %v1035_v62 = vmax.f32 %v971_v58, 0.0  ;;  %v869_v63 = vmul.f32 %v1634_v15, %v675_v59  ;;  %v901_v0 = vmul.f32 %v1634_v15, %v803_v60 }
 0x147   :  { %v677_v1 = vpop.f32.mrf.mxu0  ;;  %v805_v2 = vpop.f32.mrf.mxu1 }
 0x148   :  { %1068 = vst.msk [vmem:[%s2029_s4 + $0xb0] sm:$0xff] %vm1045_vm3, %v1003_v61  ;;  %1100 = vst.msk [vmem:[%s2029_s4 + $0x1b0] sm:$0xff] %vm1045_vm3, %v1035_v62  ;;  %v940_v3 = vadd.f32 %v1639_v17, %v869_v63  ;;  %v972_v4 = vadd.f32 %v1639_v17, %v901_v0 }
 0x149   :  { %v680_v5 = vpop.f32.mrf.mxu0  ;;  %v808_v6 = vpop.f32.mrf.mxu1 }
 0x14a   :  { %v1004_v7 = vmax.f32 %v940_v3, 0.0  ;;  %v1036_v8 = vmax.f32 %v972_v4, 0.0  ;;  %v870_v9 = vmul.f32 %v1634_v15, %v680_v5  ;;  %v902_v10 = vmul.f32 %v1634_v15, %v808_v6 }
 0x14b   :  { %v682_v11 = vpop.f32.mrf.mxu0  ;;  %v810_v12 = vpop.f32.mrf.mxu1 }
 0x14c   :  { %1069 = vst.msk [vmem:[%s2029_s4 + $0xb8] sm:$0xff] %vm1045_vm3, %v1004_v7  ;;  %1101 = vst.msk [vmem:[%s2029_s4 + $0x1b8] sm:$0xff] %vm1045_vm3, %v1036_v8  ;;  %v941_v13 = vadd.f32 %v1639_v17, %v870_v9  ;;  %v973_v14 = vadd.f32 %v1639_v17, %v902_v10 }
 0x14d   :  { %v683_v16 = vpop.f32.mrf.mxu0  ;;  %v811_v18 = vpop.f32.mrf.mxu1 }
 0x14e   :  { %v1005_v19 = vmax.f32 %v941_v13, 0.0  ;;  %v1037_v20 = vmax.f32 %v973_v14, 0.0  ;;  %v871_v21 = vmul.f32 %v1634_v15, %v683_v16  ;;  %v903_v22 = vmul.f32 %v1634_v15, %v811_v18 }
 0x14f   :  { %v685_v23 = vpop.f32.mrf.mxu0  ;;  %v813_v24 = vpop.f32.mrf.mxu1 }
 0x150   :  { %1070 = vst.msk [vmem:[%s2029_s4 + $0xc0] sm:$0xff] %vm1045_vm3, %v1005_v19  ;;  %1102 = vst.msk [vmem:[%s2029_s4 + $0x1c0] sm:$0xff] %vm1045_vm3, %v1037_v20  ;;  %v942_v25 = vadd.f32 %v1639_v17, %v871_v21  ;;  %v974_v26 = vadd.f32 %v1639_v17, %v903_v22 }
 0x151   :  { %v688_v27 = vpop.f32.mrf.mxu0  ;;  %v816_v28 = vpop.f32.mrf.mxu1 }
 0x152   :  { %v1006_v29 = vmax.f32 %v942_v25, 0.0  ;;  %v1038_v30 = vmax.f32 %v974_v26, 0.0  ;;  %v872_v31 = vmul.f32 %v1634_v15, %v688_v27  ;;  %v904_v32 = vmul.f32 %v1634_v15, %v816_v28 }
 0x153   :  { %v690_v33 = vpop.f32.mrf.mxu0  ;;  %v818_v34 = vpop.f32.mrf.mxu1 }
 0x154   :  { %1071 = vst.msk [vmem:[%s2029_s4 + $0xc8] sm:$0xff] %vm1045_vm3, %v1006_v29  ;;  %1103 = vst.msk [vmem:[%s2029_s4 + $0x1c8] sm:$0xff] %vm1045_vm3, %v1038_v30  ;;  %v943_v35 = vadd.f32 %v1639_v17, %v872_v31  ;;  %v975_v36 = vadd.f32 %v1639_v17, %v904_v32 }
 0x155   :  { %v691_v37 = vpop.f32.mrf.mxu0  ;;  %v819_v38 = vpop.f32.mrf.mxu1 }
 0x156   :  { %v1007_v39 = vmax.f32 %v943_v35, 0.0  ;;  %v1039_v40 = vmax.f32 %v975_v36, 0.0  ;;  %v873_v41 = vmul.f32 %v1634_v15, %v691_v37  ;;  %v905_v42 = vmul.f32 %v1634_v15, %v819_v38 }
 0x157   :  { %v693_v43 = vpop.f32.mrf.mxu0  ;;  %v821_v44 = vpop.f32.mrf.mxu1 }
 0x158   :  { %1072 = vst.msk [vmem:[%s2029_s4 + $0xd0] sm:$0xff] %vm1045_vm3, %v1007_v39  ;;  %1104 = vst.msk [vmem:[%s2029_s4 + $0x1d0] sm:$0xff] %vm1045_vm3, %v1039_v40  ;;  %v944_v45 = vadd.f32 %v1639_v17, %v873_v41  ;;  %v976_v46 = vadd.f32 %v1639_v17, %v905_v42 }
 0x159   :  { %v696_v47 = vpop.f32.mrf.mxu0  ;;  %v824_v48 = vpop.f32.mrf.mxu1 }
 0x15a   :  { %v1008_v49 = vmax.f32 %v944_v45, 0.0  ;;  %v1040_v50 = vmax.f32 %v976_v46, 0.0  ;;  %v874_v51 = vmul.f32 %v1634_v15, %v696_v47  ;;  %v906_v52 = vmul.f32 %v1634_v15, %v824_v48 }
 0x15b   :  { %v698_v53 = vpop.f32.mrf.mxu0  ;;  %v826_v54 = vpop.f32.mrf.mxu1 }
 0x15c   :  { %1073 = vst.msk [vmem:[%s2029_s4 + $0xd8] sm:$0xff] %vm1045_vm3, %v1008_v49  ;;  %1105 = vst.msk [vmem:[%s2029_s4 + $0x1d8] sm:$0xff] %vm1045_vm3, %v1040_v50  ;;  %v945_v55 = vadd.f32 %v1639_v17, %v874_v51  ;;  %v977_v56 = vadd.f32 %v1639_v17, %v906_v52 }
 0x15d   :  { %v699_v57 = vpop.f32.mrf.mxu0  ;;  %v827_v58 = vpop.f32.mrf.mxu1 }
 0x15e   :  { %v1009_v59 = vmax.f32 %v945_v55, 0.0  ;;  %v1041_v60 = vmax.f32 %v977_v56, 0.0  ;;  %v875_v61 = vmul.f32 %v1634_v15, %v699_v57  ;;  %v907_v62 = vmul.f32 %v1634_v15, %v827_v58 }
 0x15f   :  { %v701_v63 = vpop.f32.mrf.mxu0  ;;  %v829_v0 = vpop.f32.mrf.mxu1 }
 0x160   :  { %1074 = vst.msk [vmem:[%s2029_s4 + $0xe0] sm:$0xff] %vm1045_vm3, %v1009_v59  ;;  %1106 = vst.msk [vmem:[%s2029_s4 + $0x1e0] sm:$0xff] %vm1045_vm3, %v1041_v60  ;;  %v946_v1 = vadd.f32 %v1639_v17, %v875_v61  ;;  %v978_v2 = vadd.f32 %v1639_v17, %v907_v62 }
 0x161   :  { %v704_v3 = vpop.f32.mrf.mxu0  ;;  %v832_v4 = vpop.f32.mrf.mxu1 }
 0x162   :  { %v1010_v5 = vmax.f32 %v946_v1, 0.0  ;;  %v1042_v6 = vmax.f32 %v978_v2, 0.0  ;;  %v876_v7 = vmul.f32 %v1634_v15, %v704_v3  ;;  %v908_v8 = vmul.f32 %v1634_v15, %v832_v4 }
 0x163   :  { %v706_v9 = vpop.f32.mrf.mxu0  ;;  %v834_v10 = vpop.f32.mrf.mxu1 }
 0x164   :  { %1075 = vst.msk [vmem:[%s2029_s4 + $0xe8] sm:$0xff] %vm1045_vm3, %v1010_v5  ;;  %1107 = vst.msk [vmem:[%s2029_s4 + $0x1e8] sm:$0xff] %vm1045_vm3, %v1042_v6  ;;  %v947_v11 = vadd.f32 %v1639_v17, %v876_v7  ;;  %v979_v12 = vadd.f32 %v1639_v17, %v908_v8 }
 0x165   :  { %v707_v13 = vpop.f32.mrf.mxu0  ;;  %v835_v14 = vpop.f32.mrf.mxu1 }
 0x166   :  { %v1011_v16 = vmax.f32 %v947_v11, 0.0  ;;  %v1043_v18 = vmax.f32 %v979_v12, 0.0  ;;  %v877_v19 = vmul.f32 %v1634_v15, %v707_v13  ;;  %v909_v20 = vmul.f32 %v1634_v15, %v835_v14 }
 0x167   :  { %v709_v21 = vpop.f32.mrf.mxu0  ;;  %v837_v22 = vpop.f32.mrf.mxu1 }
 0x168   :  { %1076 = vst.msk [vmem:[%s2029_s4 + $0xf0] sm:$0xff] %vm1045_vm3, %v1011_v16  ;;  %1108 = vst.msk [vmem:[%s2029_s4 + $0x1f0] sm:$0xff] %vm1045_vm3, %v1043_v18  ;;  %v948_v23 = vadd.f32 %v1639_v17, %v877_v19  ;;  %v980_v24 = vadd.f32 %v1639_v17, %v909_v20 }
 0x16a   :  { %v1012_v25 = vmax.f32 %v948_v23, 0.0  ;;  %v1044_v26 = vmax.f32 %v980_v24, 0.0 }
 0x16c   :  { %1077 = vst.msk [vmem:[%s2029_s4 + $0xf8] sm:$0xff] %vm1045_vm3, %v1012_v25  ;;  %1109 = vst.msk [vmem:[%s2029_s4 + $0x1f8] sm:$0xff] %vm1045_vm3, %v1044_v26 }

// kernel: _lambda_.28
= control target key start
LH: loop header
LB: loop body
LE: loop exit
PB: predicated region body
PF: predicated region fallthrough
CT: control target
= control target key end

     0   :  { %vm135_vm0 = vcmask 1043456   ;;  %vm110_vm1 = vcmask 588800   ;;  %vm298_vm2 = vcmask 64512   ;;  %s584_s1 = inlined_call_operand.vmem [shape: bf16[72,8], index: 1, kind: input, shape index: {}]   ;;  %s585_s0 = inlined_call_operand.vmem [shape: bf16[128,72], index: 0, kind: input, shape index: {}]   ;;  %s586_s2 = inlined_call_operand.vmem [shape: f32[1,8], index: 2, kind: input, shape index: {}]   ;;  %s587_s3 = inlined_call_operand.vmem [shape: f32[1,8], index: 3, kind: input, shape index: {}]   ;;  %s588_s4 = inlined_call_operand.vmem [shape: f32[128,8], index: 4, kind: output, shape index: {}]  }
   0x1   :  { %v393_v0 = vld [vmem:[%s584_s1 + $0x20] ss:$0 sps:$4 sm:$0xff]   ;;  %v394_v1 = vld [vmem:[%s584_s1 + $0x18] sm:$0xff]   ;;  %v395_v3 = vld [vmem:[%s584_s1 + $0x10] sm:$0xff]  }
   0x2   :  { %391 = vmatprep.subr.msk.bf16.mxu0 %vm135_vm0, %v393_v0  ;;  %392 = vmatprep.subr.msk.bf16.mxu1 %vm135_vm0, %v393_v0  ;;  %v137_v2 = vsel %vm135_vm0, %v393_v0, 0  ;;  %v398_v4 = vld [vmem:[%s585_s0] sm:$0xff]   ;;  %v396_v6 = vld [vmem:[%s584_s1 + $0x8] sm:$0xff]   ;;  %v402_v10 = vld [vmem:[%s585_s0 + $0x10] sm:$0xff]  }
   0x3   :  { %356 = vmatpush3.bf16.msra.mxu0 %v137_v2  ;;  %386 = vmatpush3.bf16.msra.mxu1 %v137_v2  ;;  %v399_v5 = vld [vmem:[%s585_s0 + $0x20] sm:$0xff]   ;;  %v400_v8 = vld [vmem:[%s585_s0 + $0x8] sm:$0xff]   ;;  %v403_v11 = vld [vmem:[%s585_s0 + $0x30] sm:$0xff]  }
   0x4   :  { %357 = vmatprep.subr.bf16.mxu0 %v394_v1  ;;  %382 = vmatprep.subr.bf16.mxu1 %v394_v1  ;;  %v397_v7 = vld [vmem:[%s584_s1] sm:$0xff]   ;;  %v401_v9 = vld [vmem:[%s585_s0 + $0x28] sm:$0xff]   ;;  %v404_v12 = vld [vmem:[%s585_s0 + $0x18] sm:$0xff]  }
   0x5   :  { %365 = vmatprep.mubr.msk.bf16.mxu0 %vm110_vm1, %v398_v4  ;;  %373 = vmatprep.mubr.msk.bf16.mxu1 %vm110_vm1, %v399_v5  ;;  %v405_v13 = vld [vmem:[%s585_s0 + $0x38] sm:$0xff]   ;;  %v481_v14 = vld [vmem:[%s586_s2] ss:$0 sm:$0xff] }
   0x6   :  { %v486_v16 = vld [vmem:[%s587_s3] ss:$0 sm:$0xff] }
   0x7   :  { %358 = vmatpush3.bf16.msra.mxu0 %v394_v1  ;;  %387 = vmatpush3.bf16.msra.mxu1 %v394_v1 }
   0x8   :  { %359 = vmatprep.subr.bf16.mxu0 %v395_v3  ;;  %383 = vmatprep.subr.bf16.mxu1 %v395_v3 }
   0xb   :  { %360 = vmatpush3.bf16.msra.mxu0 %v395_v3  ;;  %388 = vmatpush3.bf16.msra.mxu1 %v395_v3 }
   0xc   :  { %361 = vmatprep.subr.bf16.mxu0 %v396_v6  ;;  %384 = vmatprep.subr.bf16.mxu1 %v396_v6 }
   0xf   :  { %362 = vmatpush3.bf16.msra.mxu0 %v396_v6  ;;  %389 = vmatpush3.bf16.msra.mxu1 %v396_v6 }
  0x10   :  { %363 = vmatprep.subr.bf16.mxu0 %v397_v7  ;;  %385 = vmatprep.subr.bf16.mxu1 %v397_v7 }
  0x13   :  { %364 = vmatpush3.bf16.msra.mxu0 %v397_v7  ;;  %390 = vmatpush3.bf16.msra.mxu1 %v397_v7 }
  0x16   :  { %366 = vmatmul.mubr.msk.bf16.vlgmr.msra.gmra.mxu0 %vm110_vm1, %v400_v8  ;;  %374 = vmatmul.mubr.msk.bf16.vlgmr.msra.gmra.mxu1 %vm110_vm1, %v401_v9 }
  0x17   :  { %369 = vmatprep.mubr.msk.bf16.mxu0 %vm110_vm1, %v402_v10  ;;  %377 = vmatprep.mubr.msk.bf16.mxu1 %vm110_vm1, %v403_v11 }
  0x1e   :  { %370 = vmatmul.mubr.msk.bf16.gmra.mxu0 %vm110_vm1, %v404_v12  ;;  %378 = vmatmul.mubr.msk.bf16.gmra.mxu1 %vm110_vm1, %v405_v13 }
  0xd6   :  { %v367_v15 = vpop.f32.mrf.mxu0  ;;  %v375_v17 = vpop.f32.mrf.mxu1 }
  0xd7   :  { %v245_v18 = vmul.f32 %v367_v15, %v481_v14  ;;  %v253_v19 = vmul.f32 %v375_v17, %v481_v14 }
  0xd8   :  { %v173_v20 = vpop.f32.mrf.mxu0  ;;  %v205_v21 = vpop.f32.mrf.mxu1 }
  0xd9   :  { %v268_v22 = vadd.f32 %v486_v16, %v245_v18  ;;  %v276_v23 = vadd.f32 %v486_v16, %v253_v19  ;;  %v243_v24 = vmul.f32 %v481_v14, %v173_v20  ;;  %v251_v25 = vmul.f32 %v481_v14, %v205_v21 }
  0xda   :  { %v368_v26 = vpop.f32.mrf.mxu0  ;;  %v376_v27 = vpop.f32.mrf.mxu1 }
  0xdb   :  { %v284_v28 = vmax.f32 %v268_v22, 0.0  ;;  %v292_v29 = vmax.f32 %v276_v23, 0.0  ;;  %v266_v30 = vadd.f32 %v486_v16, %v243_v24  ;;  %v274_v31 = vadd.f32 %v486_v16, %v251_v25 }
  0xdc   :  { %v246_v32 = vmul.f32 %v368_v26, %v481_v14  ;;  %v254_v33 = vmul.f32 %v376_v27, %v481_v14  ;;  %v176_v34 = vpop.f32.mrf.mxu0  ;;  %v208_v35 = vpop.f32.mrf.mxu1 }
  0xdd   :  { %301 = vst.msk [vmem:[%s588_s4 + $0x10] sm:$0xff] %vm298_vm2, %v284_v28  ;;  %309 = vst.msk [vmem:[%s588_s4 + $0x50] sm:$0xff] %vm298_vm2, %v292_v29  ;;  %v282_v36 = vmax.f32 %v266_v30, 0.0  ;;  %v290_v37 = vmax.f32 %v274_v31, 0.0  ;;  %v244_v38 = vmul.f32 %v481_v14, %v176_v34  ;;  %v252_v39 = vmul.f32 %v481_v14, %v208_v35 }
  0xde   :  { %v269_v40 = vadd.f32 %v486_v16, %v246_v32  ;;  %v277_v41 = vadd.f32 %v486_v16, %v254_v33  ;;  %v371_v42 = vpop.f32.mrf.mxu0  ;;  %v379_v43 = vpop.f32.mrf.mxu1 }
  0xdf   :  { %299 = vst.msk [vmem:[%s588_s4] sm:$0xff] %vm298_vm2, %v282_v36  ;;  %307 = vst.msk [vmem:[%s588_s4 + $0x40] sm:$0xff] %vm298_vm2, %v290_v37  ;;  %v267_v44 = vadd.f32 %v486_v16, %v244_v38  ;;  %v275_v45 = vadd.f32 %v486_v16, %v252_v39  ;;  %v249_v46 = vmul.f32 %v371_v42, %v481_v14 }
  0xe0   :  { %v257_v47 = vmul.f32 %v379_v43, %v481_v14  ;;  %v285_v48 = vmax.f32 %v269_v40, 0.0  ;;  %v293_v49 = vmax.f32 %v277_v41, 0.0  ;;  %v189_v50 = vpop.f32.mrf.mxu0  ;;  %v221_v51 = vpop.f32.mrf.mxu1 }
  0xe1   :  { %v283_v52 = vmax.f32 %v267_v44, 0.0  ;;  %v291_v53 = vmax.f32 %v275_v45, 0.0  ;;  %v272_v54 = vadd.f32 %v486_v16, %v249_v46  ;;  %v247_v56 = vmul.f32 %v481_v14, %v189_v50 }
  0xe2   :  { %v280_v55 = vadd.f32 %v486_v16, %v257_v47  ;;  %302 = vst.msk [vmem:[%s588_s4 + $0x18] sm:$0xff] %vm298_vm2, %v285_v48  ;;  %310 = vst.msk [vmem:[%s588_s4 + $0x58] sm:$0xff] %vm298_vm2, %v293_v49  ;;  %v255_v57 = vmul.f32 %v481_v14, %v221_v51  ;;  %v372_v58 = vpop.f32.mrf.mxu0  ;;  %v380_v59 = vpop.f32.mrf.mxu1 }
  0xe3   :  { %300 = vst.msk [vmem:[%s588_s4 + $0x8] sm:$0xff] %vm298_vm2, %v283_v52  ;;  %308 = vst.msk [vmem:[%s588_s4 + $0x48] sm:$0xff] %vm298_vm2, %v291_v53  ;;  %v288_v60 = vmax.f32 %v272_v54, 0.0  ;;  %v250_v62 = vmul.f32 %v372_v58, %v481_v14  ;;  %v258_v63 = vmul.f32 %v380_v59, %v481_v14  ;;  %v270_v0 = vadd.f32 %v486_v16, %v247_v56 }
  0xe4   :  { %v296_v61 = vmax.f32 %v280_v55, 0.0  ;;  %v278_v1 = vadd.f32 %v486_v16, %v255_v57  ;;  %v192_v2 = vpop.f32.mrf.mxu0  ;;  %v224_v3 = vpop.f32.mrf.mxu1 }
  0xe5   :  { %305 = vst.msk [vmem:[%s588_s4 + $0x30] sm:$0xff] %vm298_vm2, %v288_v60  ;;  %v273_v4 = vadd.f32 %v486_v16, %v250_v62  ;;  %v281_v5 = vadd.f32 %v486_v16, %v258_v63  ;;  %v248_v6 = vmul.f32 %v481_v14, %v192_v2  ;;  %v256_v7 = vmul.f32 %v481_v14, %v224_v3 }
  0xe6   :  { %313 = vst.msk [vmem:[%s588_s4 + $0x70] sm:$0xff] %vm298_vm2, %v296_v61  ;;  %v286_v8 = vmax.f32 %v270_v0, 0.0  ;;  %v294_v9 = vmax.f32 %v278_v1, 0.0 }
  0xe7   :  { %v289_v10 = vmax.f32 %v273_v4, 0.0  ;;  %v297_v11 = vmax.f32 %v281_v5, 0.0  ;;  %v271_v12 = vadd.f32 %v486_v16, %v248_v6  ;;  %v279_v13 = vadd.f32 %v486_v16, %v256_v7 }
  0xe8   :  { %303 = vst.msk [vmem:[%s588_s4 + $0x20] sm:$0xff] %vm298_vm2, %v286_v8  ;;  %311 = vst.msk [vmem:[%s588_s4 + $0x60] sm:$0xff] %vm298_vm2, %v294_v9 }
  0xe9   :  { %306 = vst.msk [vmem:[%s588_s4 + $0x38] sm:$0xff] %vm298_vm2, %v289_v10  ;;  %314 = vst.msk [vmem:[%s588_s4 + $0x78] sm:$0xff] %vm298_vm2, %v297_v11  ;;  %v287_v14 = vmax.f32 %v271_v12, 0.0  ;;  %v295_v15 = vmax.f32 %v279_v13, 0.0 }
  0xeb   :  { %304 = vst.msk [vmem:[%s588_s4 + $0x28] sm:$0xff] %vm298_vm2, %v287_v14  ;;  %312 = vst.msk [vmem:[%s588_s4 + $0x68] sm:$0xff] %vm298_vm2, %v295_v15 }

// kernel: _lambda_.29
= control target key start
LH: loop header
LB: loop body
LE: loop exit
PB: predicated region body
PF: predicated region fallthrough
CT: control target
= control target key end

     0   :  { %vm100_vm0 = vcmask 1043456   ;;  %vm75_vm1 = vcmask 64512   ;;  %vm247_vm2 = vcmask 130048   ;;  %s473_s1 = inlined_call_operand.vmem [shape: bf16[8,16], index: 1, kind: input, shape index: {}]   ;;  %s474_s0 = inlined_call_operand.vmem [shape: bf16[128,8], index: 0, kind: input, shape index: {}]   ;;  %s475_s2 = inlined_call_operand.vmem [shape: f32[1,16], index: 2, kind: input, shape index: {}]   ;;  %s476_s3 = inlined_call_operand.vmem [shape: f32[1,16], index: 3, kind: input, shape index: {}]   ;;  %s477_s4 = inlined_call_operand.vmem [shape: f32[128,16], index: 4, kind: output, shape index: {}]  }
   0x1   :  { %v34_v0 = vld [vmem:[%s473_s1] sm:$0xf]  ;;  %v319_v4 = vld [vmem:[%s474_s0 + $0x8] sm:$0xff]   ;;  %v321_v6 = vld [vmem:[%s474_s0 + $0x10] sm:$0xff]  }
   0x2   :  { %315 = vmatprep.subr.msk.bf16.mxu0 %vm100_vm0, %v34_v0  ;;  %316 = vmatprep.subr.msk.bf16.mxu1 %vm100_vm0, %v34_v0  ;;  %v102_v1 = vsel %vm100_vm0, %v34_v0, 0  ;;  %v317_v2 = vld [vmem:[%s474_s0] sm:$0xff]   ;;  %v320_v5 = vld [vmem:[%s474_s0 + $0x28] sm:$0xff]   ;;  %v322_v7 = vld [vmem:[%s474_s0 + $0x30] sm:$0xff]  }
   0x3   :  { %296 = vmatpush3.bf16.msra.mxu0 %v102_v1  ;;  %314 = vmatpush3.bf16.msra.mxu1 %v102_v1  ;;  %v318_v3 = vld [vmem:[%s474_s0 + $0x20] sm:$0xff]   ;;  %v323_v8 = vld [vmem:[%s474_s0 + $0x18] sm:$0xff]  }
   0x4   :  { %297 = vmatprep.mubr.msk.bf16.mxu0 %vm75_vm1, %v317_v2  ;;  %305 = vmatprep.mubr.msk.bf16.mxu1 %vm75_vm1, %v318_v3  ;;  %v324_v9 = vld [vmem:[%s474_s0 + $0x38] sm:$0xff]   ;;  %v284_v10 = vld [vmem:[%s475_s2] ss:$0 sm:$0xff] }
   0x5   :  { %v391_v12 = vld [vmem:[%s476_s3] ss:$0 sm:$0xff] }
   0x6   :  { %298 = vmatmul.mubr.msk.bf16.vlgmr.msra.gmra.mxu0 %vm75_vm1, %v319_v4  ;;  %306 = vmatmul.mubr.msk.bf16.vlgmr.msra.gmra.mxu1 %vm75_vm1, %v320_v5 }
   0x7   :  { %301 = vmatprep.mubr.msk.bf16.mxu0 %vm75_vm1, %v321_v6  ;;  %309 = vmatprep.mubr.msk.bf16.mxu1 %vm75_vm1, %v322_v7 }
   0xe   :  { %302 = vmatmul.mubr.msk.bf16.gmra.mxu0 %vm75_vm1, %v323_v8  ;;  %310 = vmatmul.mubr.msk.bf16.gmra.mxu1 %vm75_vm1, %v324_v9 }
  0xc6   :  { %v299_v11 = vpop.f32.mrf.mxu0  ;;  %v307_v14 = vpop.f32.mrf.mxu1 }
  0xc7   :  { %v210_v13 = vmul.f32 %v299_v11, %v284_v10  ;;  %v218_v15 = vmul.f32 %v307_v14, %v284_v10 }
  0xc8   :  { %v138_v16 = vpop.f32.mrf.mxu0  ;;  %v170_v19 = vpop.f32.mrf.mxu1 }
  0xc9   :  { %v233_v17 = vadd.f32 %v391_v12, %v210_v13  ;;  %v208_v18 = vmul.f32 %v284_v10, %v138_v16  ;;  %v241_v20 = vadd.f32 %v391_v12, %v218_v15  ;;  %v216_v21 = vmul.f32 %v284_v10, %v170_v19 }
  0xca   :  { %v300_v22 = vpop.f32.mrf.mxu0  ;;  %v308_v25 = vpop.f32.mrf.mxu1 }
  0xcb   :  { %250 = vst.msk [vmem:[%s477_s4 + $0x10] sm:$0xff] %vm247_vm2, %v233_v17  ;;  %v231_v23 = vadd.f32 %v391_v12, %v208_v18  ;;  %v211_v24 = vmul.f32 %v300_v22, %v284_v10  ;;  %258 = vst.msk [vmem:[%s477_s4 + $0x50] sm:$0xff] %vm247_vm2, %v241_v20  ;;  %v239_v26 = vadd.f32 %v391_v12, %v216_v21 }
  0xcc   :  { %v219_v27 = vmul.f32 %v308_v25, %v284_v10  ;;  %v141_v28 = vpop.f32.mrf.mxu0  ;;  %v173_v31 = vpop.f32.mrf.mxu1 }
  0xcd   :  { %248 = vst.msk [vmem:[%s477_s4] sm:$0xff] %vm247_vm2, %v231_v23  ;;  %v234_v29 = vadd.f32 %v391_v12, %v211_v24  ;;  %v209_v30 = vmul.f32 %v284_v10, %v141_v28  ;;  %256 = vst.msk [vmem:[%s477_s4 + $0x40] sm:$0xff] %vm247_vm2, %v239_v26  ;;  %v217_v33 = vmul.f32 %v284_v10, %v173_v31 }
  0xce   :  { %v242_v32 = vadd.f32 %v391_v12, %v219_v27  ;;  %v303_v34 = vpop.f32.mrf.mxu0  ;;  %v311_v37 = vpop.f32.mrf.mxu1 }
  0xcf   :  { %251 = vst.msk [vmem:[%s477_s4 + $0x18] sm:$0xff] %vm247_vm2, %v234_v29  ;;  %v232_v35 = vadd.f32 %v391_v12, %v209_v30  ;;  %v214_v36 = vmul.f32 %v303_v34, %v284_v10  ;;  %v240_v38 = vadd.f32 %v391_v12, %v217_v33  ;;  %v222_v39 = vmul.f32 %v311_v37, %v284_v10 }
  0xd0   :  { %259 = vst.msk [vmem:[%s477_s4 + $0x58] sm:$0xff] %vm247_vm2, %v242_v32  ;;  %v154_v40 = vpop.f32.mrf.mxu0  ;;  %v186_v43 = vpop.f32.mrf.mxu1 }
  0xd1   :  { %249 = vst.msk [vmem:[%s477_s4 + $0x8] sm:$0xff] %vm247_vm2, %v232_v35  ;;  %v237_v41 = vadd.f32 %v391_v12, %v214_v36  ;;  %v212_v42 = vmul.f32 %v284_v10, %v154_v40  ;;  %257 = vst.msk [vmem:[%s477_s4 + $0x48] sm:$0xff] %vm247_vm2, %v240_v38  ;;  %v245_v44 = vadd.f32 %v391_v12, %v222_v39 }
  0xd2   :  { %v220_v45 = vmul.f32 %v284_v10, %v186_v43  ;;  %v304_v46 = vpop.f32.mrf.mxu0  ;;  %v312_v49 = vpop.f32.mrf.mxu1 }
  0xd3   :  { %254 = vst.msk [vmem:[%s477_s4 + $0x30] sm:$0xff] %vm247_vm2, %v237_v41  ;;  %v235_v47 = vadd.f32 %v391_v12, %v212_v42  ;;  %v215_v48 = vmul.f32 %v304_v46, %v284_v10  ;;  %262 = vst.msk [vmem:[%s477_s4 + $0x70] sm:$0xff] %vm247_vm2, %v245_v44  ;;  %v223_v51 = vmul.f32 %v312_v49, %v284_v10 }
  0xd4   :  { %v243_v50 = vadd.f32 %v391_v12, %v220_v45  ;;  %v157_v52 = vpop.f32.mrf.mxu0  ;;  %v189_v55 = vpop.f32.mrf.mxu1 }
  0xd5   :  { %252 = vst.msk [vmem:[%s477_s4 + $0x20] sm:$0xff] %vm247_vm2, %v235_v47  ;;  %v238_v53 = vadd.f32 %v391_v12, %v215_v48  ;;  %v213_v54 = vmul.f32 %v284_v10, %v157_v52  ;;  %v246_v56 = vadd.f32 %v391_v12, %v223_v51  ;;  %v221_v57 = vmul.f32 %v284_v10, %v189_v55 }
  0xd6   :  { %260 = vst.msk [vmem:[%s477_s4 + $0x60] sm:$0xff] %vm247_vm2, %v243_v50 }
  0xd7   :  { %255 = vst.msk [vmem:[%s477_s4 + $0x38] sm:$0xff] %vm247_vm2, %v238_v53  ;;  %v236_v58 = vadd.f32 %v391_v12, %v213_v54  ;;  %263 = vst.msk [vmem:[%s477_s4 + $0x78] sm:$0xff] %vm247_vm2, %v246_v56  ;;  %v244_v59 = vadd.f32 %v391_v12, %v221_v57 }
  0xd9   :  { %253 = vst.msk [vmem:[%s477_s4 + $0x28] sm:$0xff] %vm247_vm2, %v236_v58  ;;  %261 = vst.msk [vmem:[%s477_s4 + $0x68] sm:$0xff] %vm247_vm2, %v244_v59 }

// kernel: _lambda_.30
= control target key start
LH: loop header
LB: loop body
LE: loop exit
PB: predicated region body
PF: predicated region fallthrough
CT: control target
= control target key end

     0   :  { %vm24_vm0 = vcmask 130048   ;;  %vm72_vm1 = vcmask 1041409   ;;  %vm75_vm2 = vcmask 123904   ;;  %s158_s0 = inlined_call_operand.vmem [shape: f32[2,64,16], index: 0, kind: input, shape index: {}]   ;;  %s159_s1 = inlined_call_operand.vmem [shape: f32[2,16], index: 1, kind: output, shape index: {}]  }
   0x1   :  { %v8_v0 = vld [vmem:[%s158_s0] sm:$0xff]  ;;  %v9_v1 = vld [vmem:[%s158_s0 + $0x8] sm:$0xff]  ;;  %v10_v2 = vld [vmem:[%s158_s0 + $0x10] sm:$0xff] }
   0x2   :  { %v11_v3 = vld [vmem:[%s158_s0 + $0x18] sm:$0xff]  ;;  %v25_v4 = vsel %vm24_vm0, %v8_v0, 0.0  ;;  %v26_v5 = vsel %vm24_vm0, %v9_v1, 0.0  ;;  %v28_v6 = vsel %vm24_vm0, %v10_v2, 0.0  ;;  %v12_v7 = vld [vmem:[%s158_s0 + $0x20] sm:$0xff]  ;;  %v17_v10 = vld [vmem:[%s158_s0 + $0x48] sm:$0xff] }
   0x3   :  { %v16_v8 = vld [vmem:[%s158_s0 + $0x40] sm:$0xff]  ;;  %v27_v9 = vadd.f32 %v26_v5, %v25_v4  ;;  %v18_v11 = vld [vmem:[%s158_s0 + $0x50] sm:$0xff]  ;;  %v19_v12 = vld [vmem:[%s158_s0 + $0x58] sm:$0xff]  ;;  %v30_v13 = vsel %vm24_vm0, %v11_v3, 0.0  ;;  %v47_v17 = vsel %vm24_vm0, %v17_v10, 0.0  ;;  %v32_v20 = vsel %vm24_vm0, %v12_v7, 0.0 }
   0x4   :  { %v46_v14 = vsel %vm24_vm0, %v16_v8, 0.0  ;;  %v13_v15 = vld [vmem:[%s158_s0 + $0x28] sm:$0xff]  ;;  %v49_v18 = vsel %vm24_vm0, %v18_v11, 0.0  ;;  %v20_v19 = vld [vmem:[%s158_s0 + $0x60] sm:$0xff]  ;;  %v14_v22 = vld [vmem:[%s158_s0 + $0x30] sm:$0xff]  ;;  %v51_v24 = vsel %vm24_vm0, %v19_v12, 0.0 }
   0x5   :  { %v29_v16 = vadd.f32 %v28_v6, %v27_v9  ;;  %v48_v21 = vadd.f32 %v47_v17, %v46_v14  ;;  %v21_v25 = vld [vmem:[%s158_s0 + $0x68] sm:$0xff]  ;;  %v34_v26 = vsel %vm24_vm0, %v13_v15, 0.0  ;;  %v15_v28 = vld [vmem:[%s158_s0 + $0x38] sm:$0xff]  ;;  %v53_v30 = vsel %vm24_vm0, %v20_v19, 0.0  ;;  %v22_v31 = vld [vmem:[%s158_s0 + $0x70] sm:$0xff] }
   0x6   :  { %v36_v32 = vsel %vm24_vm0, %v14_v22, 0.0  ;;  %v55_v35 = vsel %vm24_vm0, %v21_v25, 0.0  ;;  %v23_v36 = vld [vmem:[%s158_s0 + $0x78] sm:$0xff]  ;;  %v38_v37 = vsel %vm24_vm0, %v15_v28, 0.0  ;;  %v57_v40 = vsel %vm24_vm0, %v22_v31, 0.0 }
   0x7   :  { %v31_v23 = vadd.f32 %v30_v13, %v29_v16  ;;  %v50_v27 = vadd.f32 %v49_v18, %v48_v21  ;;  %v59_v43 = vsel %vm24_vm0, %v23_v36, 0.0 }
   0x9   :  { %v33_v29 = vadd.f32 %v32_v20, %v31_v23  ;;  %v52_v33 = vadd.f32 %v51_v24, %v50_v27 }
   0xb   :  { %v35_v34 = vadd.f32 %v34_v26, %v33_v29  ;;  %v54_v38 = vadd.f32 %v53_v30, %v52_v33 }
   0xd   :  { %v37_v39 = vadd.f32 %v36_v32, %v35_v34  ;;  %v56_v41 = vadd.f32 %v55_v35, %v54_v38 }
   0xf   :  { %v39_v42 = vadd.f32 %v38_v37, %v37_v39  ;;  %v58_v44 = vadd.f32 %v57_v40, %v56_v41 }
  0x11   :  { %v40_v45 = vrot.slane %v39_v42, 4  ;;  %v60_v46 = vadd.f32 %v59_v43, %v58_v44 }
  0x13   :  { %v41_v47 = vadd.f32 %v40_v45, %v39_v42  ;;  %v61_v48 = vrot.slane %v60_v46, 4 }
  0x15   :  { %v42_v49 = vrot.slane %v41_v47, 2  ;;  %v62_v50 = vadd.f32 %v61_v48, %v60_v46 }
  0x17   :  { %v43_v51 = vadd.f32 %v42_v49, %v41_v47  ;;  %v63_v52 = vrot.slane %v62_v50, 2 }
  0x19   :  { %v44_v53 = vrot.slane %v43_v51, 1  ;;  %v64_v54 = vadd.f32 %v63_v52, %v62_v50 }
  0x1b   :  { %v45_v55 = vadd.f32 %v44_v53, %v43_v51  ;;  %v65_v56 = vrot.slane %v64_v54, 1 }
  0x1d   :  { %v66_v57 = vadd.f32 %v65_v56, %v64_v54  ;;  %v68_v58 = vmul.f32 0.015625, %v45_v55 }
  0x1f   :  { %v69_v59 = vmul.f32 0.015625, %v66_v57 }
  0x21   :  { %v73_v60 = vsel %vm72_vm1, %v69_v59, %v68_v58 }
  0x22   :  { %76 = vst.msk [vmem:[%s159_s1] sm:$0x3] %vm75_vm2, %v73_v60 }

// kernel: _lambda_.31
= control target key start
LH: loop header
LB: loop body
LE: loop exit
PB: predicated region body
PF: predicated region fallthrough
CT: control target
= control target key end

     0   :  { %v221_v0 = vmov 0.0   ;;  %vm222_vm0 = vmmov 0   ;;  %vm30_vm1 = vcmask 130048   ;;  %vm117_vm2 = vcmask 1043456   ;;  %s274_s1 = inlined_call_operand.vmem [shape: f32[16,4], index: 1, kind: input, shape index: {}]   ;;  %s275_s0 = inlined_call_operand.vmem [shape: f32[2,16], index: 0, kind: input, shape index: {}]   ;;  %s276_s3 = inlined_call_operand.vmem [shape: f32[4,16], index: 3, kind: input, shape index: {}]   ;;  %s277_s2 = inlined_call_operand.vmem [shape: f32[1,4], index: 2, kind: input, shape index: {}]   ;;  %s278_s4 = inlined_call_operand.vmem [shape: f32[1,16], index: 4, kind: input, shape index: {}]   ;;  %s279_s5 = inlined_call_operand.vmem [shape: f32[2,16], index: 5, kind: output, shape index: {}]  }
   0x1   :  { %207 = vmatprep.subr.mxu0 %v221_v0  ;;  %v22_v1 = vld [vmem:[%s274_s1 + $0x8] sm:$0xff]  ;;  %v21_v2 = vld [vmem:[%s274_s1] sm:$0xff]  ;;  %211 = vmatprep.mubr.msk.f32.mxu0 %vm222_vm0, %v221_v0  ;;  %vm113_vm3 = vcmask 31744   ;;  %vm191_vm4 = vcmask 123904  }
   0x2   :  { %208 = vmatpush3.msra.mxu0 %v22_v1  ;;  %v20_v3 = vld [vmem:[%s275_s0] sm:$0x3]  ;;  %214 = vmatprep.subr.mxu1 %v221_v0 }
   0x3   :  { %209 = vmatprep.subr.mxu0 %v221_v0  ;;  %216 = vmatprep.mubr.msk.f32.mxu1 %vm222_vm0, %v221_v0  ;;  %v105_v4 = vld [vmem:[%s276_s3] sm:$0xf] }
   0x4   :  { %210 = vmatpush3.msra.mxu0 %v21_v2  ;;  %215 = vmatpush3.msk.msra.mxu1 %vm117_vm2, %v105_v4  ;;  %v197_v5 = vld [vmem:[%s277_s2] ss:$0 sm:$0xff] }
   0x5   :  { %212 = vmatmul.mubr.msk.f32.vlgmr.msra.gmra.mxu0 %vm30_vm1, %v20_v3  ;;  %v199_v10 = vld [vmem:[%s278_s4] ss:$0 sm:$0xff] }
  0xc5   :  { %v100_v6 = vpop.f32.mrf.mxu0 }
  0xc6   :  { %v101_v7 = vadd.f32 %v197_v5, %v100_v6 }
  0xc7   :  { %v213_v8 = vpop.f32.mrf.mxu0 }
  0xc8   :  { %v104_v9 = vmax.f32 %v101_v7, 0.0 }
  0xca   :  { %217 = vmatmul.mubr.msk.f32.vlgmr.msra.gmra.mxu1 %vm113_vm3, %v104_v9 }
 0x18a   :  { %v187_v11 = vpop.f32.mrf.mxu1 }
 0x18b   :  { %v188_v12 = vadd.f32 %v199_v10, %v187_v11 }
 0x18c   :  { %v218_v13 = vpop.f32.mrf.mxu1 }
 0x18d   :  { %192 = vst.msk [vmem:[%s279_s5] sm:$0x3] %vm191_vm4, %v188_v12 }

// kernel: _lambda_.33
= control target key start
LH: loop header
LB: loop body
LE: loop exit
PB: predicated region body
PF: predicated region fallthrough
CT: control target
= control target key end

     0   :  { %v46_v6 = vlaneseq  ;;  %vm120_vm0 = vcmask 130048   ;;  %s337_s1 = inlined_call_operand.vmem [shape: f32[2,1,16], index: 1, kind: input, shape index: {}]   ;;  %s338_s0 = inlined_call_operand.vmem [shape: f32[2,64,16], index: 0, kind: input, shape index: {}]   ;;  %s339_s2 = inlined_call_operand.vmem [shape: f32[2,64,16], index: 2, kind: input, shape index: {}]   ;;  %s340_s3 = inlined_call_operand.vmem [shape: f32[2,64,16], index: 3, kind: output, shape index: {}]  }
   0x1   :  { %v30_v0 = vld [vmem:[%s337_s1] sm:$0x1]  ;;  %v31_v2 = vld [vmem:[%s337_s1 + $0x1] sm:$0x1]  ;;  %v15_v12 = vld [vmem:[%s338_s0 + $0x8] sm:$0xff] }
   0x2   :  { %v141_v1 = vmul.f32 -1.442695, %v30_v0  ;;  %v142_v3 = vmul.f32 -1.442695, %v31_v2  ;;  %v47_v9 = vshrl.u32 %v46_v6, 7  ;;  %v14_v11 = vld [vmem:[%s338_s0] sm:$0xff] }
   0x3   :  { %v72_v14 = vld [vmem:[%s339_s2] sm:$0xff]  ;;  %v73_v15 = vld [vmem:[%s339_s2 + $0x8] sm:$0xff]  ;;  %v16_v16 = vld [vmem:[%s338_s0 + $0x10] sm:$0xff] }
   0x4   :  { %143 = vpow2.f32 %v141_v1  ;;  %v48_v10 = vsub.s32 0, %v47_v9  ;;  %v17_v17 = vld [vmem:[%s338_s0 + $0x18] sm:$0xff]  ;;  %v18_v18 = vld [vmem:[%s338_s0 + $0x20] sm:$0xff]  ;;  %v19_v20 = vld [vmem:[%s338_s0 + $0x28] sm:$0xff] }
   0x5   :  { %145 = vpow2.f32 %v142_v3  ;;  %v20_v21 = vld [vmem:[%s338_s0 + $0x30] sm:$0xff]  ;;  %v21_v22 = vld [vmem:[%s338_s0 + $0x38] sm:$0xff]  ;;  %v76_v25 = vld [vmem:[%s339_s2 + $0x20] sm:$0xff] }
   0x6   :  { %v74_v23 = vld [vmem:[%s339_s2 + $0x10] sm:$0xff]  ;;  %v75_v24 = vld [vmem:[%s339_s2 + $0x18] sm:$0xff]  ;;  %v77_v30 = vld [vmem:[%s339_s2 + $0x28] sm:$0xff] }
   0x7   :  { %v78_v31 = vld [vmem:[%s339_s2 + $0x30] sm:$0xff]  ;;  %v79_v32 = vld [vmem:[%s339_s2 + $0x38] sm:$0xff]  ;;  %v22_v46 = vld [vmem:[%s338_s0 + $0x40] sm:$0xff] }
   0x8   :  { %v23_v51 = vld [vmem:[%s338_s0 + $0x48] sm:$0xff]  ;;  %v24_v52 = vld [vmem:[%s338_s0 + $0x50] sm:$0xff]  ;;  %v80_v57 = vld [vmem:[%s339_s2 + $0x40] sm:$0xff] }
   0x9   :  { %v81_v58 = vld [vmem:[%s339_s2 + $0x48] sm:$0xff]  ;;  %v25_v59 = vld [vmem:[%s338_s0 + $0x58] sm:$0xff]  ;;  %v26_v60 = vld [vmem:[%s338_s0 + $0x60] sm:$0xff] }
   0xa   :  { %v27_v62 = vld [vmem:[%s338_s0 + $0x68] sm:$0xff]  ;;  %v28_v63 = vld [vmem:[%s338_s0 + $0x70] sm:$0xff]  ;;  %v29_v0 = vld [vmem:[%s338_s0 + $0x78] sm:$0xff] }
   0xb   :  { %v82_v1 = vld [vmem:[%s339_s2 + $0x50] sm:$0xff]  ;;  %v83_v2 = vld [vmem:[%s339_s2 + $0x58] sm:$0xff]  ;;  %v84_v3 = vld [vmem:[%s339_s2 + $0x60] sm:$0xff] }
   0xc   :  { %v86_v9 = vld [vmem:[%s339_s2 + $0x70] sm:$0xff] }
  0x11   :  { %v144_v4 = vpop.eup %143 }
  0x12   :  { %v38_v5 = vadd.f32 1.0, %v144_v4  ;;  %v146_v7 = vpop.eup %145 }
  0x13   :  { %v39_v8 = vadd.f32 1.0, %v146_v7 }
  0x14   :  { %147 = vrcp.f32 %v38_v5 }
  0x15   :  { %149 = vrcp.f32 %v39_v8  ;;  %v85_v8 = vld [vmem:[%s339_s2 + $0x68] sm:$0xff] }
  0x21   :  { %v148_v13 = vpop.eup %147 }
  0x22   :  { %v49_v19 = vrot.slane %v148_v13, %v48_v10  ;;  %v150_v41 = vpop.eup %149 }
  0x23   :  { %v53_v61 = vrot.slane %v150_v41, %v48_v10  ;;  %v87_v10 = vld [vmem:[%s339_s2 + $0x78] sm:$0xff] }
  0x24   :  { %v56_v26 = vmul.f32 %v49_v19, %v14_v11  ;;  %v57_v27 = vmul.f32 %v49_v19, %v15_v12  ;;  %v58_v28 = vmul.f32 %v49_v19, %v16_v16  ;;  %v59_v29 = vmul.f32 %v49_v19, %v17_v17 }
  0x25   :  { %v60_v33 = vmul.f32 %v49_v19, %v18_v18  ;;  %v61_v34 = vmul.f32 %v49_v19, %v19_v20  ;;  %v62_v35 = vmul.f32 %v49_v19, %v20_v21  ;;  %v63_v36 = vmul.f32 %v49_v19, %v21_v22 }
  0x26   :  { %v88_v37 = vadd.f32 %v72_v14, %v56_v26  ;;  %v89_v38 = vadd.f32 %v73_v15, %v57_v27  ;;  %v90_v39 = vadd.f32 %v74_v23, %v58_v28  ;;  %v91_v40 = vadd.f32 %v75_v24, %v59_v29 }
  0x27   :  { %v92_v42 = vadd.f32 %v76_v25, %v60_v33  ;;  %v93_v43 = vadd.f32 %v77_v30, %v61_v34  ;;  %v94_v44 = vadd.f32 %v78_v31, %v62_v35  ;;  %v95_v45 = vadd.f32 %v79_v32, %v63_v36 }
  0x28   :  { %v104_v47 = vmax.f32 %v88_v37, 0.0  ;;  %v105_v48 = vmax.f32 %v89_v38, 0.0  ;;  %v106_v49 = vmax.f32 %v90_v39, 0.0  ;;  %v107_v50 = vmax.f32 %v91_v40, 0.0 }
  0x29   :  { %v108_v53 = vmax.f32 %v92_v42, 0.0  ;;  %v109_v54 = vmax.f32 %v93_v43, 0.0  ;;  %v110_v55 = vmax.f32 %v94_v44, 0.0  ;;  %v111_v56 = vmax.f32 %v95_v45, 0.0 }
  0x2a   :  { %121 = vst.msk [vmem:[%s340_s3] sm:$0xff] %vm120_vm0, %v104_v47  ;;  %122 = vst.msk [vmem:[%s340_s3 + $0x8] sm:$0xff] %vm120_vm0, %v105_v48  ;;  %v64_v4 = vmul.f32 %v53_v61, %v22_v46  ;;  %v65_v5 = vmul.f32 %v53_v61, %v23_v51  ;;  %v66_v6 = vmul.f32 %v53_v61, %v24_v52 }
  0x2b   :  { %123 = vst.msk [vmem:[%s340_s3 + $0x10] sm:$0xff] %vm120_vm0, %v106_v49  ;;  %124 = vst.msk [vmem:[%s340_s3 + $0x18] sm:$0xff] %vm120_vm0, %v107_v50  ;;  %v67_v7 = vmul.f32 %v53_v61, %v25_v59  ;;  %v68_v11 = vmul.f32 %v53_v61, %v26_v60  ;;  %v69_v12 = vmul.f32 %v53_v61, %v27_v62 }
  0x2c   :  { %125 = vst.msk [vmem:[%s340_s3 + $0x20] sm:$0xff] %vm120_vm0, %v108_v53  ;;  %126 = vst.msk [vmem:[%s340_s3 + $0x28] sm:$0xff] %vm120_vm0, %v109_v54  ;;  %v70_v13 = vmul.f32 %v53_v61, %v28_v63  ;;  %v71_v14 = vmul.f32 %v53_v61, %v29_v0  ;;  %v96_v15 = vadd.f32 %v80_v57, %v64_v4 }
  0x2d   :  { %127 = vst.msk [vmem:[%s340_s3 + $0x30] sm:$0xff] %vm120_vm0, %v110_v55  ;;  %128 = vst.msk [vmem:[%s340_s3 + $0x38] sm:$0xff] %vm120_vm0, %v111_v56  ;;  %v97_v16 = vadd.f32 %v81_v58, %v65_v5  ;;  %v98_v17 = vadd.f32 %v82_v1, %v66_v6  ;;  %v99_v18 = vadd.f32 %v83_v2, %v67_v7 }
  0x2e   :  { %v100_v19 = vadd.f32 %v84_v3, %v68_v11  ;;  %v101_v20 = vadd.f32 %v85_v8, %v69_v12  ;;  %v102_v21 = vadd.f32 %v86_v9, %v70_v13  ;;  %v103_v22 = vadd.f32 %v87_v10, %v71_v14 }
  0x2f   :  { %v112_v23 = vmax.f32 %v96_v15, 0.0  ;;  %v113_v24 = vmax.f32 %v97_v16, 0.0  ;;  %v114_v25 = vmax.f32 %v98_v17, 0.0  ;;  %v115_v26 = vmax.f32 %v99_v18, 0.0 }
  0x30   :  { %v116_v27 = vmax.f32 %v100_v19, 0.0  ;;  %v117_v28 = vmax.f32 %v101_v20, 0.0  ;;  %v118_v29 = vmax.f32 %v102_v21, 0.0  ;;  %v119_v30 = vmax.f32 %v103_v22, 0.0 }
  0x31   :  { %129 = vst.msk [vmem:[%s340_s3 + $0x40] sm:$0xff] %vm120_vm0, %v112_v23  ;;  %130 = vst.msk [vmem:[%s340_s3 + $0x48] sm:$0xff] %vm120_vm0, %v113_v24 }
  0x32   :  { %131 = vst.msk [vmem:[%s340_s3 + $0x50] sm:$0xff] %vm120_vm0, %v114_v25  ;;  %132 = vst.msk [vmem:[%s340_s3 + $0x58] sm:$0xff] %vm120_vm0, %v115_v26 }
  0x33   :  { %133 = vst.msk [vmem:[%s340_s3 + $0x60] sm:$0xff] %vm120_vm0, %v116_v27  ;;  %134 = vst.msk [vmem:[%s340_s3 + $0x68] sm:$0xff] %vm120_vm0, %v117_v28 }
  0x34   :  { %135 = vst.msk [vmem:[%s340_s3 + $0x70] sm:$0xff] %vm120_vm0, %v118_v29  ;;  %136 = vst.msk [vmem:[%s340_s3 + $0x78] sm:$0xff] %vm120_vm0, %v119_v30 }

// kernel: _lambda_.34
= control target key start
LH: loop header
LB: loop body
LE: loop exit
PB: predicated region body
PF: predicated region fallthrough
CT: control target
= control target key end

     0   :  { %vm82_vm0 = vcmask 130048   ;;  %s509_s1 = inlined_call_operand.vmem [shape: bf16[16,16], index: 1, kind: input, shape index: {}]   ;;  %s510_s0 = inlined_call_operand.vmem [shape: bf16[128,16], index: 0, kind: input, shape index: {}]   ;;  %s511_s2 = inlined_call_operand.vmem [shape: f32[1,16], index: 2, kind: input, shape index: {}]   ;;  %s512_s3 = inlined_call_operand.vmem [shape: f32[1,16], index: 3, kind: input, shape index: {}]   ;;  %s513_s4 = inlined_call_operand.vmem [shape: f32[128,16], index: 4, kind: output, shape index: {}]  }
   0x1   :  { %v334_v0 = vld [vmem:[%s509_s1] sm:$0xff]   ;;  %v337_v3 = vld [vmem:[%s510_s0 + $0x8] sm:$0xff]   ;;  %v339_v5 = vld [vmem:[%s510_s0 + $0x10] sm:$0xff]  }
   0x2   :  { %v335_v1 = vld [vmem:[%s510_s0] sm:$0xff]   ;;  %314 = vmatprep.subr.bf16.mxu0 %v334_v0  ;;  %332 = vmatprep.subr.bf16.mxu1 %v334_v0  ;;  %v338_v4 = vld [vmem:[%s510_s0 + $0x28] sm:$0xff]   ;;  %v340_v6 = vld [vmem:[%s510_s0 + $0x30] sm:$0xff]  }
   0x3   :  { %v336_v2 = vld [vmem:[%s510_s0 + $0x20] sm:$0xff]   ;;  %315 = vmatpush3.bf16.msra.mxu0 %v334_v0  ;;  %333 = vmatpush3.bf16.msra.mxu1 %v334_v0  ;;  %v341_v7 = vld [vmem:[%s510_s0 + $0x18] sm:$0xff]  }
   0x4   :  { %316 = vmatprep.mubr.msk.bf16.mxu0 %vm82_vm0, %v335_v1  ;;  %324 = vmatprep.mubr.msk.bf16.mxu1 %vm82_vm0, %v336_v2  ;;  %v342_v8 = vld [vmem:[%s510_s0 + $0x38] sm:$0xff]   ;;  %v406_v9 = vld [vmem:[%s511_s2] ss:$0 sm:$0xff] }
   0x5   :  { %v411_v11 = vld [vmem:[%s512_s3] ss:$0 sm:$0xff] }
   0x6   :  { %317 = vmatmul.mubr.msk.bf16.vlgmr.msra.gmra.mxu0 %vm82_vm0, %v337_v3  ;;  %325 = vmatmul.mubr.msk.bf16.vlgmr.msra.gmra.mxu1 %vm82_vm0, %v338_v4 }
   0x7   :  { %320 = vmatprep.mubr.msk.bf16.mxu0 %vm82_vm0, %v339_v5  ;;  %328 = vmatprep.mubr.msk.bf16.mxu1 %vm82_vm0, %v340_v6 }
   0xe   :  { %321 = vmatmul.mubr.msk.bf16.gmra.mxu0 %vm82_vm0, %v341_v7  ;;  %329 = vmatmul.mubr.msk.bf16.gmra.mxu1 %vm82_vm0, %v342_v8 }
  0xc6   :  { %v318_v10 = vpop.f32.mrf.mxu0  ;;  %v326_v12 = vpop.f32.mrf.mxu1 }
  0xc7   :  { %v213_v13 = vmul.f32 %v318_v10, %v406_v9  ;;  %v221_v14 = vmul.f32 %v326_v12, %v406_v9 }
  0xc8   :  { %v141_v15 = vpop.f32.mrf.mxu0  ;;  %v173_v16 = vpop.f32.mrf.mxu1 }
  0xc9   :  { %v236_v17 = vadd.f32 %v411_v11, %v213_v13  ;;  %v244_v18 = vadd.f32 %v411_v11, %v221_v14  ;;  %v211_v19 = vmul.f32 %v406_v9, %v141_v15  ;;  %v219_v20 = vmul.f32 %v406_v9, %v173_v16 }
  0xca   :  { %v319_v21 = vpop.f32.mrf.mxu0  ;;  %v327_v22 = vpop.f32.mrf.mxu1 }
  0xcb   :  { %v252_v23 = vmax.f32 %v236_v17, 0.0  ;;  %v260_v24 = vmax.f32 %v244_v18, 0.0  ;;  %v234_v25 = vadd.f32 %v411_v11, %v211_v19  ;;  %v242_v26 = vadd.f32 %v411_v11, %v219_v20 }
  0xcc   :  { %v214_v27 = vmul.f32 %v319_v21, %v406_v9  ;;  %v222_v28 = vmul.f32 %v327_v22, %v406_v9  ;;  %v144_v29 = vpop.f32.mrf.mxu0  ;;  %v176_v30 = vpop.f32.mrf.mxu1 }
  0xcd   :  { %268 = vst.msk [vmem:[%s513_s4 + $0x10] sm:$0xff] %vm82_vm0, %v252_v23  ;;  %276 = vst.msk [vmem:[%s513_s4 + $0x50] sm:$0xff] %vm82_vm0, %v260_v24  ;;  %v250_v31 = vmax.f32 %v234_v25, 0.0  ;;  %v258_v32 = vmax.f32 %v242_v26, 0.0  ;;  %v212_v33 = vmul.f32 %v406_v9, %v144_v29  ;;  %v220_v34 = vmul.f32 %v406_v9, %v176_v30 }
  0xce   :  { %v237_v35 = vadd.f32 %v411_v11, %v214_v27  ;;  %v245_v36 = vadd.f32 %v411_v11, %v222_v28  ;;  %v322_v37 = vpop.f32.mrf.mxu0  ;;  %v330_v38 = vpop.f32.mrf.mxu1 }
  0xcf   :  { %266 = vst.msk [vmem:[%s513_s4] sm:$0xff] %vm82_vm0, %v250_v31  ;;  %274 = vst.msk [vmem:[%s513_s4 + $0x40] sm:$0xff] %vm82_vm0, %v258_v32  ;;  %v235_v39 = vadd.f32 %v411_v11, %v212_v33  ;;  %v243_v40 = vadd.f32 %v411_v11, %v220_v34  ;;  %v217_v41 = vmul.f32 %v322_v37, %v406_v9 }
  0xd0   :  { %v225_v42 = vmul.f32 %v330_v38, %v406_v9  ;;  %v253_v43 = vmax.f32 %v237_v35, 0.0  ;;  %v261_v44 = vmax.f32 %v245_v36, 0.0  ;;  %v157_v45 = vpop.f32.mrf.mxu0  ;;  %v189_v46 = vpop.f32.mrf.mxu1 }
  0xd1   :  { %v251_v47 = vmax.f32 %v235_v39, 0.0  ;;  %v259_v48 = vmax.f32 %v243_v40, 0.0  ;;  %v240_v49 = vadd.f32 %v411_v11, %v217_v41  ;;  %v215_v51 = vmul.f32 %v406_v9, %v157_v45 }
  0xd2   :  { %v248_v50 = vadd.f32 %v411_v11, %v225_v42  ;;  %269 = vst.msk [vmem:[%s513_s4 + $0x18] sm:$0xff] %vm82_vm0, %v253_v43  ;;  %277 = vst.msk [vmem:[%s513_s4 + $0x58] sm:$0xff] %vm82_vm0, %v261_v44  ;;  %v223_v52 = vmul.f32 %v406_v9, %v189_v46  ;;  %v323_v53 = vpop.f32.mrf.mxu0  ;;  %v331_v54 = vpop.f32.mrf.mxu1 }
  0xd3   :  { %267 = vst.msk [vmem:[%s513_s4 + $0x8] sm:$0xff] %vm82_vm0, %v251_v47  ;;  %275 = vst.msk [vmem:[%s513_s4 + $0x48] sm:$0xff] %vm82_vm0, %v259_v48  ;;  %v256_v55 = vmax.f32 %v240_v49, 0.0  ;;  %v218_v57 = vmul.f32 %v323_v53, %v406_v9  ;;  %v226_v58 = vmul.f32 %v331_v54, %v406_v9  ;;  %v238_v59 = vadd.f32 %v411_v11, %v215_v51 }
  0xd4   :  { %v264_v56 = vmax.f32 %v248_v50, 0.0  ;;  %v246_v60 = vadd.f32 %v411_v11, %v223_v52  ;;  %v160_v61 = vpop.f32.mrf.mxu0  ;;  %v192_v62 = vpop.f32.mrf.mxu1 }
  0xd5   :  { %272 = vst.msk [vmem:[%s513_s4 + $0x30] sm:$0xff] %vm82_vm0, %v256_v55  ;;  %v241_v63 = vadd.f32 %v411_v11, %v218_v57  ;;  %v249_v0 = vadd.f32 %v411_v11, %v226_v58  ;;  %v216_v1 = vmul.f32 %v406_v9, %v160_v61  ;;  %v224_v2 = vmul.f32 %v406_v9, %v192_v62 }
  0xd6   :  { %280 = vst.msk [vmem:[%s513_s4 + $0x70] sm:$0xff] %vm82_vm0, %v264_v56  ;;  %v254_v3 = vmax.f32 %v238_v59, 0.0  ;;  %v262_v4 = vmax.f32 %v246_v60, 0.0 }
  0xd7   :  { %v257_v5 = vmax.f32 %v241_v63, 0.0  ;;  %v265_v6 = vmax.f32 %v249_v0, 0.0  ;;  %v239_v7 = vadd.f32 %v411_v11, %v216_v1  ;;  %v247_v8 = vadd.f32 %v411_v11, %v224_v2 }
  0xd8   :  { %270 = vst.msk [vmem:[%s513_s4 + $0x20] sm:$0xff] %vm82_vm0, %v254_v3  ;;  %278 = vst.msk [vmem:[%s513_s4 + $0x60] sm:$0xff] %vm82_vm0, %v262_v4 }
  0xd9   :  { %273 = vst.msk [vmem:[%s513_s4 + $0x38] sm:$0xff] %vm82_vm0, %v257_v5  ;;  %281 = vst.msk [vmem:[%s513_s4 + $0x78] sm:$0xff] %vm82_vm0, %v265_v6  ;;  %v255_v9 = vmax.f32 %v239_v7, 0.0  ;;  %v263_v10 = vmax.f32 %v247_v8, 0.0 }
  0xdb   :  { %271 = vst.msk [vmem:[%s513_s4 + $0x28] sm:$0xff] %vm82_vm0, %v255_v9  ;;  %279 = vst.msk [vmem:[%s513_s4 + $0x68] sm:$0xff] %vm82_vm0, %v263_v10 }

// kernel: _lambda_.35
= control target key start
LH: loop header
LB: loop body
LE: loop exit
PB: predicated region body
PF: predicated region fallthrough
CT: control target
= control target key end

     0   :  { %v253_v0 = vmov 0   ;;  %vm112_vm0 = vcmask 130048   ;;  %s342_s1 = inlined_call_operand.vmem [shape: bf16[144,16], index: 1, kind: input, shape index: {}]   ;;  %s343_s0 = inlined_call_operand.vmem [shape: bf16[32,144], index: 0, kind: input, shape index: {}]   ;;  %s344_s2 = inlined_call_operand.vmem [shape: f32[1,16], index: 2, kind: input, shape index: {}]   ;;  %s345_s3 = inlined_call_operand.vmem [shape: f32[1,16], index: 3, kind: input, shape index: {}]   ;;  %s346_s4 = inlined_call_operand.vmem [shape: f32[32,16], index: 4, kind: output, shape index: {}]  }
   0x1   :  { %119 = vmatprep.subr.bf16.mxu0 %v253_v0  ;;  %219 = vmatprep.subr.bf16.mxu1 %v253_v0  ;;  %v238_v1 = vld [vmem:[%s342_s1 + $0x38] sm:$0xff]   ;;  %v239_v2 = vld [vmem:[%s342_s1 + $0x30] sm:$0xff]   ;;  %v240_v3 = vld [vmem:[%s342_s1 + $0x28] sm:$0xff]  }
   0x2   :  { %120 = vmatpush1.bf16.msra.mxu0 %v238_v1  ;;  %228 = vmatpush1.bf16.msra.mxu1 %v238_v1  ;;  %v241_v4 = vld [vmem:[%s342_s1 + $0x20] sm:$0xff]   ;;  %v252_v6 = vld [vmem:[%s343_s0 + $0x14] ss:$8 sps:$4 sm:$0xff]   ;;  %v244_v9 = vld [vmem:[%s342_s1 + $0x8] sm:$0xff]  }
   0x3   :  { %121 = vmatprep.subr.bf16.mxu0 %v253_v0  ;;  %220 = vmatprep.subr.bf16.mxu1 %v253_v0  ;;  %v249_v5 = vld [vmem:[%s343_s0 + $0x4] ss:$8 sps:$4 sm:$0xff]   ;;  %v242_v7 = vld [vmem:[%s342_s1 + $0x18] sm:$0xff]   ;;  %v243_v8 = vld [vmem:[%s342_s1 + $0x10] sm:$0xff]  }
   0x4   :  { %215 = vmatprep.mubr.msk.bf16.mxu0 %vm112_vm0, %v249_v5  ;;  %216 = vmatprep.mubr.msk.bf16.mxu1 %vm112_vm0, %v252_v6  ;;  %v245_v10 = vld [vmem:[%s342_s1] sm:$0xff]   ;;  %v250_v13 = vld [vmem:[%s343_s0 + $0x10] ss:$8 sps:$4 sm:$0xff]  }
   0x5   :  { %v246_v11 = vld [vmem:[%s342_s1 + $0x40] sm:$0xff]  }
   0x6   :  { %122 = vmatpush1.bf16.msra.mxu0 %v239_v2  ;;  %229 = vmatpush1.bf16.msra.mxu1 %v239_v2  ;;  %v247_v12 = vld [vmem:[%s343_s0] ss:$8 sps:$4 sm:$0xff]  }
   0x7   :  { %123 = vmatprep.subr.bf16.mxu0 %v253_v0  ;;  %221 = vmatprep.subr.bf16.mxu1 %v253_v0  ;;  %v217_v14 = vld [vmem:[%s344_s2] ss:$0 sm:$0xff] }
   0x8   :  { %v218_v16 = vld [vmem:[%s345_s3] ss:$0 sm:$0xff] }
   0xa   :  { %124 = vmatpush1.bf16.msra.mxu0 %v240_v3  ;;  %230 = vmatpush1.bf16.msra.mxu1 %v240_v3 }
   0xb   :  { %125 = vmatprep.subr.bf16.mxu0 %v253_v0  ;;  %222 = vmatprep.subr.bf16.mxu1 %v253_v0 }
   0xe   :  { %126 = vmatpush1.bf16.msra.mxu0 %v241_v4  ;;  %231 = vmatpush1.bf16.msra.mxu1 %v241_v4 }
   0xf   :  { %127 = vmatprep.subr.bf16.mxu0 %v253_v0  ;;  %223 = vmatprep.subr.bf16.mxu1 %v253_v0 }
  0x12   :  { %128 = vmatpush1.bf16.msra.mxu0 %v242_v7  ;;  %232 = vmatpush1.bf16.msra.mxu1 %v242_v7 }
  0x13   :  { %129 = vmatprep.subr.bf16.mxu0 %v253_v0  ;;  %224 = vmatprep.subr.bf16.mxu1 %v253_v0 }
  0x16   :  { %130 = vmatpush1.bf16.msra.mxu0 %v243_v8  ;;  %233 = vmatpush1.bf16.msra.mxu1 %v243_v8 }
  0x17   :  { %131 = vmatprep.subr.bf16.mxu0 %v253_v0  ;;  %225 = vmatprep.subr.bf16.mxu1 %v253_v0 }
  0x1a   :  { %132 = vmatpush1.bf16.msra.mxu0 %v244_v9  ;;  %234 = vmatpush1.bf16.msra.mxu1 %v244_v9 }
  0x1b   :  { %133 = vmatprep.subr.bf16.mxu0 %v253_v0  ;;  %226 = vmatprep.subr.bf16.mxu1 %v253_v0 }
  0x1e   :  { %134 = vmatpush1.bf16.msra.mxu0 %v245_v10  ;;  %235 = vmatpush1.bf16.msra.mxu1 %v245_v10 }
  0x1f   :  { %149 = vmatprep.subr.bf16.mxu0 %v253_v0  ;;  %227 = vmatprep.subr.bf16.mxu1 %v253_v0 }
  0x22   :  { %150 = vmatpush2.bf16.msra.mxu0 %v246_v11  ;;  %236 = vmatpush2.bf16.msra.mxu1 %v246_v11 }
  0x25   :  { %152 = vmatmul.mubr.bf16.vlgmr.msra.gmra.mxu0 %v247_v12  ;;  %160 = vmatmul.mubr.bf16.vlgmr.msra.gmra.mxu1 %v250_v13 }
  0xe5   :  { %v153_v15 = vpop.f32.mrf.mxu0  ;;  %v161_v17 = vpop.f32.mrf.mxu1 }
  0xe6   :  { %v175_v18 = vmul.f32 %v217_v14, %v153_v15  ;;  %v177_v19 = vmul.f32 %v217_v14, %v161_v17 }
  0xe7   :  { %v155_v20 = vpop.f32.mrf.mxu0  ;;  %v163_v21 = vpop.f32.mrf.mxu1 }
  0xe8   :  { %v186_v22 = vadd.f32 %v218_v16, %v175_v18  ;;  %v188_v23 = vadd.f32 %v218_v16, %v177_v19 }
  0xe9   :  { %v156_v24 = vpop.f32.mrf.mxu0  ;;  %v164_v25 = vpop.f32.mrf.mxu1 }
  0xea   :  { %v190_v26 = vmax.f32 %v186_v22, 0.0  ;;  %v192_v27 = vmax.f32 %v188_v23, 0.0  ;;  %v176_v28 = vmul.f32 %v217_v14, %v156_v24  ;;  %v178_v29 = vmul.f32 %v217_v14, %v164_v25 }
  0xeb   :  { %v158_v30 = vpop.f32.mrf.mxu0  ;;  %v166_v31 = vpop.f32.mrf.mxu1 }
  0xec   :  { %194 = vst.msk [vmem:[%s346_s4] sm:$0xff] %vm112_vm0, %v190_v26  ;;  %196 = vst.msk [vmem:[%s346_s4 + $0x10] sm:$0xff] %vm112_vm0, %v192_v27  ;;  %v187_v32 = vadd.f32 %v218_v16, %v176_v28  ;;  %v189_v33 = vadd.f32 %v218_v16, %v178_v29 }
  0xee   :  { %v191_v34 = vmax.f32 %v187_v32, 0.0  ;;  %v193_v35 = vmax.f32 %v189_v33, 0.0 }
  0xf0   :  { %195 = vst.msk [vmem:[%s346_s4 + $0x8] sm:$0xff] %vm112_vm0, %v191_v34  ;;  %197 = vst.msk [vmem:[%s346_s4 + $0x18] sm:$0xff] %vm112_vm0, %v193_v35 }

// kernel: _lambda_.36
= control target key start
LH: loop header
LB: loop body
LE: loop exit
PB: predicated region body
PF: predicated region fallthrough
CT: control target
= control target key end

     0   :  { %vm40_vm0 = vcmask 130048   ;;  %vm118_vm1 = vcmask 261120   ;;  %s198_s1 = inlined_call_operand.vmem [shape: bf16[16,32], index: 1, kind: input, shape index: {}]   ;;  %s199_s0 = inlined_call_operand.vmem [shape: bf16[32,16], index: 0, kind: input, shape index: {}]   ;;  %s200_s2 = inlined_call_operand.vmem [shape: f32[1,32], index: 2, kind: input, shape index: {}]   ;;  %s201_s3 = inlined_call_operand.vmem [shape: f32[1,32], index: 3, kind: input, shape index: {}]   ;;  %s202_s4 = inlined_call_operand.vmem [shape: f32[32,32], index: 4, kind: output, shape index: {}]  }
   0x1   :  { %v143_v0 = vld [vmem:[%s198_s1] sm:$0xff]   ;;  %v145_v2 = vld [vmem:[%s199_s0 + $0x8] sm:$0xff]  }
   0x2   :  { %v144_v1 = vld [vmem:[%s199_s0] sm:$0xff]   ;;  %137 = vmatprep.subr.bf16.mxu0 %v143_v0 }
   0x3   :  { %138 = vmatpush3.bf16.msra.mxu0 %v143_v0  ;;  %139 = vmatprep.mubr.msk.bf16.mxu0 %vm40_vm0, %v144_v1  ;;  %v132_v3 = vld [vmem:[%s200_s2] ss:$0 sm:$0xff] }
   0x4   :  { %v133_v5 = vld [vmem:[%s201_s3] ss:$0 sm:$0xff] }
   0x6   :  { %140 = vmatmul.mubr.msk.bf16.vlgmr.msra.gmra.mxu0 %vm40_vm0, %v145_v2 }
  0xc6   :  { %v141_v4 = vpop.f32.mrf.mxu0 }
  0xc7   :  { %v105_v6 = vmul.f32 %v141_v4, %v132_v3 }
  0xc8   :  { %v81_v7 = vpop.f32.mrf.mxu0 }
  0xc9   :  { %v116_v8 = vadd.f32 %v133_v5, %v105_v6  ;;  %v103_v9 = vmul.f32 %v132_v3, %v81_v7 }
  0xca   :  { %v142_v10 = vpop.f32.mrf.mxu0 }
  0xcb   :  { %121 = vst.msk [vmem:[%s202_s4 + $0x10] sm:$0xff] %vm118_vm1, %v116_v8  ;;  %v114_v11 = vadd.f32 %v133_v5, %v103_v9  ;;  %v106_v12 = vmul.f32 %v142_v10, %v132_v3 }
  0xcc   :  { %v84_v13 = vpop.f32.mrf.mxu0 }
  0xcd   :  { %119 = vst.msk [vmem:[%s202_s4] sm:$0xff] %vm118_vm1, %v114_v11  ;;  %v117_v14 = vadd.f32 %v133_v5, %v106_v12  ;;  %v104_v15 = vmul.f32 %v132_v3, %v84_v13 }
  0xcf   :  { %122 = vst.msk [vmem:[%s202_s4 + $0x18] sm:$0xff] %vm118_vm1, %v117_v14  ;;  %v115_v16 = vadd.f32 %v133_v5, %v104_v15 }
  0xd1   :  { %120 = vst.msk [vmem:[%s202_s4 + $0x8] sm:$0xff] %vm118_vm1, %v115_v16 }

// kernel: _lambda_.37
= control target key start
LH: loop header
LB: loop body
LE: loop exit
PB: predicated region body
PF: predicated region fallthrough
CT: control target
= control target key end

     0   :  { %vm12_vm0 = vcmask 261120   ;;  %vm36_vm1 = vcmask 1041409   ;;  %vm39_vm2 = vcmask 254976   ;;  %s70_s0 = inlined_call_operand.vmem [shape: f32[2,16,32], index: 0, kind: input, shape index: {}]   ;;  %s71_s1 = inlined_call_operand.vmem [shape: f32[2,32], index: 1, kind: output, shape index: {}]  }
   0x1   :  { %v8_v0 = vld [vmem:[%s70_s0] sm:$0xff]  ;;  %v9_v1 = vld [vmem:[%s70_s0 + $0x8] sm:$0xff]  ;;  %v10_v2 = vld [vmem:[%s70_s0 + $0x10] sm:$0xff] }
   0x2   :  { %v11_v3 = vld [vmem:[%s70_s0 + $0x18] sm:$0xff]  ;;  %v13_v4 = vsel %vm12_vm0, %v8_v0, 0.0  ;;  %v14_v5 = vsel %vm12_vm0, %v9_v1, 0.0  ;;  %v22_v6 = vsel %vm12_vm0, %v10_v2, 0.0 }
   0x3   :  { %v15_v7 = vadd.f32 %v14_v5, %v13_v4  ;;  %v23_v8 = vsel %vm12_vm0, %v11_v3, 0.0 }
   0x4   :  { %v24_v9 = vadd.f32 %v23_v8, %v22_v6 }
   0x5   :  { %v16_v10 = vrot.slane %v15_v7, 4 }
   0x6   :  { %v25_v11 = vrot.slane %v24_v9, 4 }
   0x7   :  { %v17_v12 = vadd.f32 %v16_v10, %v15_v7 }
   0x8   :  { %v26_v13 = vadd.f32 %v25_v11, %v24_v9 }
   0x9   :  { %v18_v14 = vrot.slane %v17_v12, 2 }
   0xa   :  { %v27_v15 = vrot.slane %v26_v13, 2 }
   0xb   :  { %v19_v16 = vadd.f32 %v18_v14, %v17_v12 }
   0xc   :  { %v28_v17 = vadd.f32 %v27_v15, %v26_v13 }
   0xd   :  { %v20_v18 = vrot.slane %v19_v16, 1 }
   0xe   :  { %v29_v19 = vrot.slane %v28_v17, 1 }
   0xf   :  { %v21_v20 = vadd.f32 %v20_v18, %v19_v16 }
  0x10   :  { %v30_v21 = vadd.f32 %v29_v19, %v28_v17 }
  0x11   :  { %v32_v22 = vmul.f32 0.0625, %v21_v20 }
  0x12   :  { %v33_v23 = vmul.f32 0.0625, %v30_v21 }
  0x14   :  { %v37_v24 = vsel %vm36_vm1, %v33_v23, %v32_v22 }
  0x15   :  { %40 = vst.msk [vmem:[%s71_s1] sm:$0x3] %vm39_vm2, %v37_v24 }

// kernel: _lambda_.38
= control target key start
LH: loop header
LB: loop body
LE: loop exit
PB: predicated region body
PF: predicated region fallthrough
CT: control target
= control target key end

     0   :  { %v224_v0 = vmov 0.0   ;;  %vm225_vm0 = vmmov 0   ;;  %vm32_vm1 = vcmask 261120   ;;  %vm115_vm2 = vcmask 64512   ;;  %s283_s1 = inlined_call_operand.vmem [shape: f32[32,8], index: 1, kind: input, shape index: {}]   ;;  %s284_s0 = inlined_call_operand.vmem [shape: f32[2,32], index: 0, kind: input, shape index: {}]   ;;  %s285_s3 = inlined_call_operand.vmem [shape: f32[8,32], index: 3, kind: input, shape index: {}]   ;;  %s286_s2 = inlined_call_operand.vmem [shape: f32[1,8], index: 2, kind: input, shape index: {}]   ;;  %s287_s4 = inlined_call_operand.vmem [shape: f32[1,32], index: 4, kind: input, shape index: {}]   ;;  %s288_s5 = inlined_call_operand.vmem [shape: f32[2,32], index: 5, kind: output, shape index: {}]  }
   0x1   :  { %206 = vmatprep.subr.mxu0 %v224_v0  ;;  %v24_v1 = vld [vmem:[%s283_s1 + $0x18] sm:$0xff]  ;;  %v23_v2 = vld [vmem:[%s283_s1 + $0x10] sm:$0xff]  ;;  %214 = vmatprep.mubr.msk.f32.mxu0 %vm225_vm0, %v224_v0  ;;  %v22_v3 = vld [vmem:[%s283_s1 + $0x8] sm:$0xff]  ;;  %vm189_vm3 = vcmask 254976  }
   0x2   :  { %207 = vmatpush3.msra.mxu0 %v24_v1  ;;  %217 = vmatprep.subr.mxu1 %v224_v0  ;;  %v21_v4 = vld [vmem:[%s283_s1] sm:$0xff] }
   0x3   :  { %208 = vmatprep.subr.mxu0 %v224_v0  ;;  %219 = vmatprep.mubr.msk.f32.mxu1 %vm225_vm0, %v224_v0  ;;  %v20_v5 = vld [vmem:[%s284_s0] sm:$0x3] }
   0x4   :  { %209 = vmatpush3.msra.mxu0 %v23_v2  ;;  %v107_v6 = vld [vmem:[%s285_s3] sm:$0xff] }
   0x5   :  { %210 = vmatprep.subr.mxu0 %v224_v0  ;;  %218 = vmatpush3.msra.mxu1 %v107_v6  ;;  %v195_v7 = vld [vmem:[%s286_s2] ss:$0 sm:$0xff] }
   0x6   :  { %211 = vmatpush3.msra.mxu0 %v22_v3  ;;  %v197_v12 = vld [vmem:[%s287_s4] ss:$0 sm:$0xff] }
   0x7   :  { %212 = vmatprep.subr.mxu0 %v224_v0 }
   0x8   :  { %213 = vmatpush3.msra.mxu0 %v21_v4 }
   0x9   :  { %215 = vmatmul.mubr.msk.f32.vlgmr.msra.gmra.mxu0 %vm32_vm1, %v20_v5 }
  0xc9   :  { %v102_v8 = vpop.f32.mrf.mxu0 }
  0xca   :  { %v103_v9 = vadd.f32 %v195_v7, %v102_v8 }
  0xcb   :  { %v216_v10 = vpop.f32.mrf.mxu0 }
  0xcc   :  { %v106_v11 = vmax.f32 %v103_v9, 0.0 }
  0xce   :  { %220 = vmatmul.mubr.msk.f32.vlgmr.msra.gmra.mxu1 %vm115_vm2, %v106_v11 }
 0x18e   :  { %v185_v13 = vpop.f32.mrf.mxu1 }
 0x18f   :  { %v186_v14 = vadd.f32 %v197_v12, %v185_v13 }
 0x190   :  { %v221_v15 = vpop.f32.mrf.mxu1 }
 0x191   :  { %190 = vst.msk [vmem:[%s288_s5] sm:$0x3] %vm189_vm3, %v186_v14 }

// kernel: _lambda_.40
= control target key start
LH: loop header
LB: loop body
LE: loop exit
PB: predicated region body
PF: predicated region fallthrough
CT: control target
= control target key end

     0   :  { %v34_v8 = vlaneseq  ;;  %vm60_vm0 = vcmask 261120   ;;  %s141_s1 = inlined_call_operand.vmem [shape: f32[2,1,32], index: 1, kind: input, shape index: {}]   ;;  %s142_s0 = inlined_call_operand.vmem [shape: f32[2,16,32], index: 0, kind: input, shape index: {}]   ;;  %s143_s2 = inlined_call_operand.vmem [shape: f32[2,16,32], index: 2, kind: input, shape index: {}]   ;;  %s144_s3 = inlined_call_operand.vmem [shape: f32[2,16,32], index: 3, kind: output, shape index: {}]  }
   0x1   :  { %v18_v0 = vld [vmem:[%s141_s1] sm:$0x1]  ;;  %v19_v2 = vld [vmem:[%s141_s1 + $0x1] sm:$0x1]  ;;  %v15_v13 = vld [vmem:[%s142_s0 + $0x8] sm:$0xff] }
   0x2   :  { %v69_v1 = vmul.f32 -1.442695, %v18_v0  ;;  %v70_v3 = vmul.f32 -1.442695, %v19_v2  ;;  %v35_v9 = vshrl.u32 %v34_v8, 7  ;;  %v14_v12 = vld [vmem:[%s142_s0] sm:$0xff] }
   0x3   :  { %v48_v15 = vld [vmem:[%s143_s2] sm:$0xff]  ;;  %v49_v17 = vld [vmem:[%s143_s2 + $0x8] sm:$0xff]  ;;  %v16_v18 = vld [vmem:[%s142_s0 + $0x10] sm:$0xff] }
   0x4   :  { %71 = vpow2.f32 %v69_v1  ;;  %v36_v10 = vsub.s32 0, %v35_v9  ;;  %v17_v19 = vld [vmem:[%s142_s0 + $0x18] sm:$0xff]  ;;  %v50_v23 = vld [vmem:[%s143_s2 + $0x10] sm:$0xff] }
   0x5   :  { %73 = vpow2.f32 %v70_v3  ;;  %v51_v24 = vld [vmem:[%s143_s2 + $0x18] sm:$0xff] }
  0x11   :  { %v72_v4 = vpop.eup %71 }
  0x12   :  { %v26_v5 = vadd.f32 1.0, %v72_v4  ;;  %v74_v6 = vpop.eup %73 }
  0x13   :  { %v27_v7 = vadd.f32 1.0, %v74_v6 }
  0x14   :  { %75 = vrcp.f32 %v26_v5 }
  0x15   :  { %77 = vrcp.f32 %v27_v7 }
  0x21   :  { %v76_v11 = vpop.eup %75 }
  0x22   :  { %v37_v14 = vrot.slane %v76_v11, %v36_v10  ;;  %v78_v16 = vpop.eup %77 }
  0x23   :  { %v41_v22 = vrot.slane %v78_v16, %v36_v10 }
  0x24   :  { %v44_v20 = vmul.f32 %v37_v14, %v14_v12  ;;  %v45_v21 = vmul.f32 %v37_v14, %v15_v13 }
  0x25   :  { %v46_v27 = vmul.f32 %v41_v22, %v16_v18  ;;  %v47_v28 = vmul.f32 %v41_v22, %v17_v19 }
  0x26   :  { %v52_v25 = vadd.f32 %v48_v15, %v44_v20  ;;  %v53_v26 = vadd.f32 %v49_v17, %v45_v21 }
  0x27   :  { %v54_v31 = vadd.f32 %v50_v23, %v46_v27  ;;  %v55_v32 = vadd.f32 %v51_v24, %v47_v28 }
  0x28   :  { %v56_v29 = vmax.f32 %v52_v25, 0.0  ;;  %v57_v30 = vmax.f32 %v53_v26, 0.0 }
  0x29   :  { %v58_v33 = vmax.f32 %v54_v31, 0.0  ;;  %v59_v34 = vmax.f32 %v55_v32, 0.0 }
  0x2a   :  { %61 = vst.msk [vmem:[%s144_s3] sm:$0xff] %vm60_vm0, %v56_v29  ;;  %62 = vst.msk [vmem:[%s144_s3 + $0x8] sm:$0xff] %vm60_vm0, %v57_v30 }
  0x2b   :  { %63 = vst.msk [vmem:[%s144_s3 + $0x10] sm:$0xff] %vm60_vm0, %v58_v33  ;;  %64 = vst.msk [vmem:[%s144_s3 + $0x18] sm:$0xff] %vm60_vm0, %v59_v34 }

// kernel: _lambda_.41
= control target key start
LH: loop header
LB: loop body
LE: loop exit
PB: predicated region body
PF: predicated region fallthrough
CT: control target
= control target key end

     0   :  { %vm48_vm0 = vcmask 261120   ;;  %s223_s1 = inlined_call_operand.vmem [shape: bf16[32,32], index: 1, kind: input, shape index: {}]   ;;  %s224_s0 = inlined_call_operand.vmem [shape: bf16[32,32], index: 0, kind: input, shape index: {}]   ;;  %s225_s2 = inlined_call_operand.vmem [shape: f32[1,32], index: 2, kind: input, shape index: {}]   ;;  %s226_s3 = inlined_call_operand.vmem [shape: f32[1,32], index: 3, kind: input, shape index: {}]   ;;  %s227_s4 = inlined_call_operand.vmem [shape: f32[32,32], index: 4, kind: output, shape index: {}]  }
   0x1   :  { %v158_v0 = vld [vmem:[%s223_s1 + $0x8] sm:$0xff]   ;;  %v159_v1 = vld [vmem:[%s223_s1] sm:$0xff]  }
   0x2   :  { %150 = vmatprep.subr.bf16.mxu0 %v158_v0  ;;  %v160_v2 = vld [vmem:[%s224_s0] sm:$0xff]   ;;  %v161_v3 = vld [vmem:[%s224_s0 + $0x8] sm:$0xff]  }
   0x3   :  { %151 = vmatpush3.bf16.msra.mxu0 %v158_v0  ;;  %154 = vmatprep.mubr.msk.bf16.mxu0 %vm48_vm0, %v160_v2  ;;  %v144_v4 = vld [vmem:[%s225_s2] ss:$0 sm:$0xff] }
   0x4   :  { %152 = vmatprep.subr.bf16.mxu0 %v159_v1  ;;  %v145_v6 = vld [vmem:[%s226_s3] ss:$0 sm:$0xff] }
   0x7   :  { %153 = vmatpush3.bf16.msra.mxu0 %v159_v1 }
   0xa   :  { %155 = vmatmul.mubr.msk.bf16.vlgmr.msra.gmra.mxu0 %vm48_vm0, %v161_v3 }
  0xca   :  { %v156_v5 = vpop.f32.mrf.mxu0 }
  0xcb   :  { %v113_v7 = vmul.f32 %v156_v5, %v144_v4 }
  0xcc   :  { %v89_v8 = vpop.f32.mrf.mxu0 }
  0xcd   :  { %v124_v9 = vadd.f32 %v145_v6, %v113_v7  ;;  %v111_v10 = vmul.f32 %v144_v4, %v89_v8 }
  0xce   :  { %v157_v11 = vpop.f32.mrf.mxu0 }
  0xcf   :  { %v128_v12 = vmax.f32 %v124_v9, 0.0  ;;  %v122_v13 = vadd.f32 %v145_v6, %v111_v10  ;;  %v114_v14 = vmul.f32 %v157_v11, %v144_v4 }
  0xd0   :  { %v92_v15 = vpop.f32.mrf.mxu0 }
  0xd1   :  { %132 = vst.msk [vmem:[%s227_s4 + $0x10] sm:$0xff] %vm48_vm0, %v128_v12  ;;  %v126_v16 = vmax.f32 %v122_v13, 0.0  ;;  %v125_v17 = vadd.f32 %v145_v6, %v114_v14  ;;  %v112_v18 = vmul.f32 %v144_v4, %v92_v15 }
  0xd3   :  { %130 = vst.msk [vmem:[%s227_s4] sm:$0xff] %vm48_vm0, %v126_v16  ;;  %v129_v19 = vmax.f32 %v125_v17, 0.0  ;;  %v123_v20 = vadd.f32 %v145_v6, %v112_v18 }
  0xd5   :  { %133 = vst.msk [vmem:[%s227_s4 + $0x18] sm:$0xff] %vm48_vm0, %v129_v19  ;;  %v127_v21 = vmax.f32 %v123_v20, 0.0 }
  0xd7   :  { %131 = vst.msk [vmem:[%s227_s4 + $0x8] sm:$0xff] %vm48_vm0, %v127_v21 }

// kernel: _lambda_.43
= control target key start
LH: loop header
LB: loop body
LE: loop exit
PB: predicated region body
PF: predicated region fallthrough
CT: control target
= control target key end

     0   :  { %v133_v0 = vmov 0.0   ;;  %vm134_vm0 = vmmov 0   ;;  %vm41_vm1 = vcmask 261120   ;;  %vm104_vm2 = vcmask 523264   ;;  %s181_s1 = inlined_call_operand.vmem [shape: bf16[32,64], index: 1, kind: input, shape index: {}]   ;;  %s182_s0 = inlined_call_operand.vmem [shape: bf16[16,32], index: 0, kind: input, shape index: {}]   ;;  %s183_s2 = inlined_call_operand.vmem [shape: f32[1,64], index: 2, kind: input, shape index: {}]   ;;  %s184_s3 = inlined_call_operand.vmem [shape: f32[1,64], index: 3, kind: input, shape index: {}]   ;;  %s185_s4 = inlined_call_operand.vmem [shape: f32[16,64], index: 4, kind: output, shape index: {}]  }
   0x1   :  { %120 = vmatprep.subr.bf16.mxu0 %v133_v0  ;;  %v130_v1 = vld [vmem:[%s181_s1 + $0x8] sm:$0xff]   ;;  %124 = vmatprep.mubr.msk.bf16.mxu0 %vm134_vm0, %v133_v0  ;;  %v131_v2 = vld [vmem:[%s181_s1] sm:$0xff]  }
   0x2   :  { %121 = vmatpush3.bf16.msra.mxu0 %v130_v1  ;;  %v132_v3 = vld [vmem:[%s182_s0] sm:$0xff]  }
   0x3   :  { %122 = vmatprep.subr.bf16.mxu0 %v133_v0  ;;  %v115_v4 = vld [vmem:[%s183_s2] ss:$0 sm:$0xff] }
   0x4   :  { %v116_v6 = vld [vmem:[%s184_s3] ss:$0 sm:$0xff] }
   0x6   :  { %123 = vmatpush3.bf16.msra.mxu0 %v131_v2 }
   0x9   :  { %125 = vmatmul.mubr.msk.bf16.vlgmr.msra.gmra.mxu0 %vm41_vm1, %v132_v3 }
  0xc9   :  { %v79_v5 = vpop.f32.mrf.mxu0 }
  0xca   :  { %v93_v7 = vmul.f32 %v115_v4, %v79_v5 }
  0xcb   :  { %v126_v8 = vpop.f32.mrf.mxu0 }
  0xcc   :  { %v102_v9 = vadd.f32 %v116_v6, %v93_v7 }
  0xcd   :  { %v82_v10 = vpop.f32.mrf.mxu0 }
  0xce   :  { %105 = vst.msk [vmem:[%s185_s4] sm:$0xff] %vm104_vm2, %v102_v9  ;;  %v94_v11 = vmul.f32 %v115_v4, %v82_v10 }
  0xcf   :  { %v127_v12 = vpop.f32.mrf.mxu0 }
  0xd0   :  { %v103_v13 = vadd.f32 %v116_v6, %v94_v11 }
  0xd2   :  { %106 = vst.msk [vmem:[%s185_s4 + $0x8] sm:$0xff] %vm104_vm2, %v103_v13 }

// kernel: _lambda_.42
= control target key start
LH: loop header
LB: loop body
LE: loop exit
PB: predicated region body
PF: predicated region fallthrough
CT: control target
= control target key end

     0   :  { %v374_v1 = vmov 0.0   ;;  %vm375_vm0 = vmmov 0   ;;  %vm181_vm1 = vcmask 261120   ;;  %s479_s1 = inlined_call_operand.vmem [shape: bf16[288,32], index: 1, kind: input, shape index: {}]   ;;  %s480_s0 = inlined_call_operand.vmem [shape: bf16[16,288], index: 0, kind: input, shape index: {}]   ;;  %s481_s2 = inlined_call_operand.vmem [shape: f32[1,32], index: 2, kind: input, shape index: {}]   ;;  %s482_s3 = inlined_call_operand.vmem [shape: f32[1,32], index: 3, kind: input, shape index: {}]   ;;  %s483_s4 = inlined_call_operand.vmem [shape: f32[16,32], index: 4, kind: output, shape index: {}]  }
   0x1   :  { %v352_v0 = vld [vmem:[%s479_s1 + $0x78] sm:$0xff]   ;;  %342 = vmatprep.subr.bf16.mxu1 %v374_v1  ;;  %346 = vmatprep.mubr.msk.bf16.mxu1 %vm375_vm0, %v374_v1  ;;  %v354_v3 = vld [vmem:[%s479_s1 + $0x70] sm:$0xff]   ;;  %v356_v5 = vld [vmem:[%s479_s1 + $0x68] sm:$0xff]  }
   0x2   :  { %v353_v2 = vld [vmem:[%s479_s1 + $0x38] sm:$0xff]   ;;  %317 = vmatprep.subr.bf16.mxu0 %v352_v0  ;;  %v355_v4 = vld [vmem:[%s479_s1 + $0x30] sm:$0xff]   ;;  %v357_v6 = vld [vmem:[%s479_s1 + $0x28] sm:$0xff]  }
   0x3   :  { %318 = vmatpush3.bf16.msra.mxu0 %v353_v2  ;;  %v358_v7 = vld [vmem:[%s479_s1 + $0x60] sm:$0xff]   ;;  %v360_v9 = vld [vmem:[%s479_s1 + $0x58] sm:$0xff]   ;;  %v364_v10 = vld [vmem:[%s479_s1 + $0x88] sm:$0xff]  }
   0x4   :  { %319 = vmatprep.subr.bf16.mxu0 %v354_v3  ;;  %v359_v8 = vld [vmem:[%s479_s1 + $0x20] sm:$0xff]   ;;  %v361_v11 = vld [vmem:[%s479_s1 + $0x18] sm:$0xff]   ;;  %343 = vmatpush3.bf16.msra.mxu1 %v364_v10  ;;  %v362_v13 = vld [vmem:[%s479_s1 + $0x50] sm:$0xff]  }
   0x5   :  { %344 = vmatprep.subr.bf16.mxu1 %v374_v1  ;;  %v367_v12 = vld [vmem:[%s479_s1 + $0x80] sm:$0xff]   ;;  %v370_v14 = vld [vmem:[%s480_s0 + $0x8] ss:$12 sps:$4 sm:$0xff]  }
   0x6   :  { %v363_v15 = vld [vmem:[%s479_s1 + $0x10] sm:$0xff]   ;;  %v365_v16 = vld [vmem:[%s479_s1 + $0x48] sm:$0xff]   ;;  %v368_v19 = vld [vmem:[%s479_s1 + $0x40] sm:$0xff]  }
   0x7   :  { %320 = vmatpush3.bf16.msra.mxu0 %v355_v4  ;;  %v373_v17 = vld [vmem:[%s480_s0 + $0x4] ss:$12 sps:$4 sm:$0xff]   ;;  %v366_v18 = vld [vmem:[%s479_s1 + $0x8] sm:$0xff]   ;;  %v315_v29 = vld [vmem:[%s481_s2] ss:$0 sm:$0xff] }
   0x8   :  { %321 = vmatprep.subr.bf16.mxu0 %v356_v5  ;;  %345 = vmatpush3.bf16.msra.mxu1 %v367_v12  ;;  %v369_v20 = vld [vmem:[%s479_s1] sm:$0xff]  }
   0x9   :  { %217 = vmatprep.mubr.bf16.mxu0 %v373_v17  ;;  %v371_v21 = vld [vmem:[%s480_s0] ss:$12 sps:$4 sm:$0xff]  }
   0xa   :  { %v316_v32 = vld [vmem:[%s482_s3] ss:$0 sm:$0xff] }
   0xb   :  { %322 = vmatpush3.bf16.msra.mxu0 %v357_v6  ;;  %347 = vmatmul.mubr.msk.bf16.vlgmr.msra.gmra.mxu1 %vm181_vm1, %v370_v14 }
   0xc   :  { %323 = vmatprep.subr.bf16.mxu0 %v358_v7 }
   0xf   :  { %324 = vmatpush3.bf16.msra.mxu0 %v359_v8 }
  0x10   :  { %325 = vmatprep.subr.bf16.mxu0 %v360_v9 }
  0x13   :  { %326 = vmatpush3.bf16.msra.mxu0 %v361_v11 }
  0x14   :  { %327 = vmatprep.subr.bf16.mxu0 %v362_v13 }
  0x17   :  { %328 = vmatpush3.bf16.msra.mxu0 %v363_v15 }
  0x18   :  { %329 = vmatprep.subr.bf16.mxu0 %v365_v16 }
  0x1b   :  { %330 = vmatpush3.bf16.msra.mxu0 %v366_v18 }
  0x1c   :  { %331 = vmatprep.subr.bf16.mxu0 %v368_v19 }
  0x1f   :  { %332 = vmatpush3.bf16.msra.mxu0 %v369_v20 }
  0x22   :  { %218 = vmatmul.mubr.bf16.vlgmr.msra.gmra.mxu0 %v371_v21 }
  0xcb   :  { %v260_v22 = vpop.f32.mrf.mxu1 }
  0xcd   :  { %v348_v23 = vpop.f32.mrf.mxu1 }
  0xcf   :  { %v263_v24 = vpop.f32.mrf.mxu1 }
  0xd1   :  { %v349_v25 = vpop.f32.mrf.mxu1 }
  0xe2   :  { %v333_v26 = vpop.f32.mrf.mxu0 }
  0xe4   :  { %v334_v27 = vpop.f32.mrf.mxu0 }
  0xe5   :  { %v335_v28 = vadd.f32 %v334_v27, %v333_v26 }
  0xe6   :  { %v336_v30 = vpop.f32.mrf.mxu0 }
  0xe7   :  { %v261_v31 = vadd.f32 %v335_v28, %v260_v22 }
  0xe8   :  { %v337_v33 = vpop.f32.mrf.mxu0 }
  0xe9   :  { %v274_v34 = vmul.f32 %v315_v29, %v261_v31  ;;  %v338_v35 = vadd.f32 %v337_v33, %v336_v30 }
  0xeb   :  { %v283_v36 = vadd.f32 %v316_v32, %v274_v34  ;;  %v264_v37 = vadd.f32 %v338_v35, %v263_v24 }
  0xed   :  { %v285_v38 = vmax.f32 %v283_v36, 0.0  ;;  %v275_v39 = vmul.f32 %v315_v29, %v264_v37 }
  0xef   :  { %287 = vst.msk [vmem:[%s483_s4] sm:$0xff] %vm181_vm1, %v285_v38  ;;  %v284_v40 = vadd.f32 %v316_v32, %v275_v39 }
  0xf1   :  { %v286_v41 = vmax.f32 %v284_v40, 0.0 }
  0xf3   :  { %288 = vst.msk [vmem:[%s483_s4 + $0x8] sm:$0xff] %vm181_vm1, %v286_v41 }

// kernel: _lambda_.44
= control target key start
LH: loop header
LB: loop body
LE: loop exit
PB: predicated region body
PF: predicated region fallthrough
CT: control target
= control target key end

     0   :  { %vm10_vm0 = vcmask 519168   ;;  %vm30_vm1 = vcmask 1041409   ;;  %vm33_vm2 = vcmask 517120   ;;  %s58_s0 = inlined_call_operand.vmem [shape: f32[2,4,64], index: 0, kind: input, shape index: {}]   ;;  %s59_s1 = inlined_call_operand.vmem [shape: f32[2,64], index: 1, kind: output, shape index: {}]  }
   0x1   :  { %v8_v0 = vld [vmem:[%s58_s0] sm:$0xf]  ;;  %v9_v1 = vld [vmem:[%s58_s0 + $0x4] sm:$0xf] }
   0x2   :  { %v11_v2 = vsel %vm10_vm0, %v8_v0, 0.0  ;;  %v18_v3 = vsel %vm10_vm0, %v9_v1, 0.0 }
   0x3   :  { %v12_v4 = vrot.slane %v11_v2, 4  ;;  %v19_v5 = vrot.slane %v18_v3, 4 }
   0x5   :  { %v13_v6 = vadd.f32 %v12_v4, %v11_v2  ;;  %v20_v7 = vadd.f32 %v19_v5, %v18_v3 }
   0x7   :  { %v14_v8 = vrot.slane %v13_v6, 2  ;;  %v21_v9 = vrot.slane %v20_v7, 2 }
   0x9   :  { %v15_v10 = vadd.f32 %v14_v8, %v13_v6  ;;  %v22_v11 = vadd.f32 %v21_v9, %v20_v7 }
   0xb   :  { %v16_v12 = vrot.slane %v15_v10, 1  ;;  %v23_v13 = vrot.slane %v22_v11, 1 }
   0xd   :  { %v17_v14 = vadd.f32 %v16_v12, %v15_v10  ;;  %v24_v15 = vadd.f32 %v23_v13, %v22_v11 }
   0xf   :  { %v26_v16 = vmul.f32 0.25, %v17_v14  ;;  %v27_v17 = vmul.f32 0.25, %v24_v15 }
  0x11   :  { %v31_v18 = vsel %vm30_vm1, %v27_v17, %v26_v16 }
  0x12   :  { %34 = vst.msk [vmem:[%s59_s1] sm:$0x3] %vm33_vm2, %v31_v18 }

// kernel: _lambda_.47
= control target key start
LH: loop header
LB: loop body
LE: loop exit
PB: predicated region body
PF: predicated region fallthrough
CT: control target
= control target key end

     0   :  { %v32_v8 = vlaneseq  ;;  %vm50_vm0 = vcmask 519168   ;;  %s111_s1 = inlined_call_operand.vmem [shape: f32[2,1,64], index: 1, kind: input, shape index: {}]   ;;  %s112_s0 = inlined_call_operand.vmem [shape: f32[2,4,64], index: 0, kind: input, shape index: {}]   ;;  %s113_s2 = inlined_call_operand.vmem [shape: f32[2,4,64], index: 2, kind: input, shape index: {}]   ;;  %s114_s3 = inlined_call_operand.vmem [shape: f32[2,4,64], index: 3, kind: output, shape index: {}]  }
   0x1   :  { %v16_v0 = vld [vmem:[%s111_s1] sm:$0x1]  ;;  %v17_v2 = vld [vmem:[%s111_s1 + $0x1] sm:$0x1]  ;;  %v15_v16 = vld [vmem:[%s112_s0 + $0x4] sm:$0xf] }
   0x2   :  { %v57_v1 = vmul.f32 -1.442695, %v16_v0  ;;  %v58_v3 = vmul.f32 -1.442695, %v17_v2  ;;  %v33_v9 = vshrl.u32 %v32_v8, 7 }
   0x3   :  { %v14_v12 = vld [vmem:[%s112_s0] sm:$0xf]  ;;  %v45_v19 = vld [vmem:[%s113_s2 + $0x4] sm:$0xf] }
   0x4   :  { %59 = vpow2.f32 %v57_v1  ;;  %v34_v10 = vsub.s32 0, %v33_v9  ;;  %v44_v15 = vld [vmem:[%s113_s2] sm:$0xf] }
   0x5   :  { %61 = vpow2.f32 %v58_v3 }
  0x11   :  { %v60_v4 = vpop.eup %59 }
  0x12   :  { %v24_v5 = vadd.f32 1.0, %v60_v4  ;;  %v62_v6 = vpop.eup %61 }
  0x13   :  { %v25_v7 = vadd.f32 1.0, %v62_v6 }
  0x14   :  { %63 = vrcp.f32 %v24_v5 }
  0x15   :  { %65 = vrcp.f32 %v25_v7 }
  0x21   :  { %v64_v11 = vpop.eup %63 }
  0x22   :  { %v35_v13 = vrot.slane %v64_v11, %v34_v10  ;;  %v66_v14 = vpop.eup %65 }
  0x23   :  { %v39_v18 = vrot.slane %v66_v14, %v34_v10 }
  0x24   :  { %v42_v17 = vmul.f32 %v35_v13, %v14_v12 }
  0x25   :  { %v43_v21 = vmul.f32 %v39_v18, %v15_v16 }
  0x26   :  { %v46_v20 = vadd.f32 %v44_v15, %v42_v17 }
  0x27   :  { %v47_v23 = vadd.f32 %v45_v19, %v43_v21 }
  0x28   :  { %v48_v22 = vmax.f32 %v46_v20, 0.0 }
  0x29   :  { %v49_v24 = vmax.f32 %v47_v23, 0.0 }
  0x2a   :  { %51 = vst.msk [vmem:[%s114_s3] sm:$0xf] %vm50_vm0, %v48_v22 }
  0x2b   :  { %52 = vst.msk [vmem:[%s114_s3 + $0x4] sm:$0xf] %vm50_vm0, %v49_v24 }

// kernel: _lambda_.45
= control target key start
LH: loop header
LB: loop body
LE: loop exit
PB: predicated region body
PF: predicated region fallthrough
CT: control target
= control target key end

     0   :  { %v244_v0 = vmov 0.0   ;;  %vm245_vm0 = vmmov 0   ;;  %vm36_vm1 = vcmask 523264   ;;  %vm120_vm2 = vcmask 130048   ;;  %s318_s1 = inlined_call_operand.vmem [shape: f32[64,16], index: 1, kind: input, shape index: {}]   ;;  %s319_s0 = inlined_call_operand.vmem [shape: f32[2,64], index: 0, kind: input, shape index: {}]   ;;  %s320_s3 = inlined_call_operand.vmem [shape: f32[16,64], index: 3, kind: input, shape index: {}]   ;;  %s321_s2 = inlined_call_operand.vmem [shape: f32[1,16], index: 2, kind: input, shape index: {}]   ;;  %s322_s4 = inlined_call_operand.vmem [shape: f32[1,64], index: 4, kind: input, shape index: {}]   ;;  %s323_s5 = inlined_call_operand.vmem [shape: f32[2,64], index: 5, kind: output, shape index: {}]  }
   0x1   :  { %216 = vmatprep.subr.mxu0 %v244_v0  ;;  %v28_v1 = vld [vmem:[%s318_s1 + $0x38] sm:$0xff]  ;;  %v27_v2 = vld [vmem:[%s318_s1 + $0x30] sm:$0xff]  ;;  %232 = vmatprep.mubr.msk.f32.mxu0 %vm245_vm0, %v244_v0  ;;  %v26_v3 = vld [vmem:[%s318_s1 + $0x28] sm:$0xff]  ;;  %vm194_vm3 = vcmask 517120  }
   0x2   :  { %217 = vmatpush3.msra.mxu0 %v28_v1  ;;  %235 = vmatprep.subr.mxu1 %v244_v0  ;;  %v25_v4 = vld [vmem:[%s318_s1 + $0x20] sm:$0xff]  ;;  %v24_v5 = vld [vmem:[%s318_s1 + $0x18] sm:$0xff]  ;;  %v23_v6 = vld [vmem:[%s318_s1 + $0x10] sm:$0xff] }
   0x3   :  { %218 = vmatprep.subr.mxu0 %v244_v0  ;;  %239 = vmatprep.mubr.msk.f32.mxu1 %vm245_vm0, %v244_v0  ;;  %v22_v7 = vld [vmem:[%s318_s1 + $0x8] sm:$0xff]  ;;  %v21_v8 = vld [vmem:[%s318_s1] sm:$0xff] }
   0x4   :  { %219 = vmatpush3.msra.mxu0 %v27_v2  ;;  %v20_v9 = vld [vmem:[%s319_s0] sm:$0x3]  ;;  %v112_v10 = vld [vmem:[%s320_s3 + $0x8] sm:$0xff] }
   0x5   :  { %220 = vmatprep.subr.mxu0 %v244_v0  ;;  %236 = vmatpush3.msra.mxu1 %v112_v10  ;;  %v111_v11 = vld [vmem:[%s320_s3] sm:$0xff] }
   0x6   :  { %221 = vmatpush3.msra.mxu0 %v26_v3  ;;  %237 = vmatprep.subr.mxu1 %v244_v0  ;;  %v200_v12 = vld [vmem:[%s321_s2] ss:$0 sm:$0xff] }
   0x7   :  { %222 = vmatprep.subr.mxu0 %v244_v0  ;;  %238 = vmatpush3.msra.mxu1 %v111_v11  ;;  %v202_v17 = vld [vmem:[%s322_s4] ss:$0 sm:$0xff] }
   0x8   :  { %223 = vmatpush3.msra.mxu0 %v25_v4 }
   0x9   :  { %224 = vmatprep.subr.mxu0 %v244_v0 }
   0xa   :  { %225 = vmatpush3.msra.mxu0 %v24_v5 }
   0xb   :  { %226 = vmatprep.subr.mxu0 %v244_v0 }
   0xc   :  { %227 = vmatpush3.msra.mxu0 %v23_v6 }
   0xd   :  { %228 = vmatprep.subr.mxu0 %v244_v0 }
   0xe   :  { %229 = vmatpush3.msra.mxu0 %v22_v7 }
   0xf   :  { %230 = vmatprep.subr.mxu0 %v244_v0 }
  0x10   :  { %231 = vmatpush3.msra.mxu0 %v21_v8 }
  0x11   :  { %233 = vmatmul.mubr.msk.f32.vlgmr.msra.gmra.mxu0 %vm36_vm1, %v20_v9 }
  0xd1   :  { %v106_v13 = vpop.f32.mrf.mxu0 }
  0xd2   :  { %v107_v14 = vadd.f32 %v200_v12, %v106_v13 }
  0xd3   :  { %v234_v15 = vpop.f32.mrf.mxu0 }
  0xd4   :  { %v110_v16 = vmax.f32 %v107_v14, 0.0 }
  0xd6   :  { %240 = vmatmul.mubr.msk.f32.vlgmr.msra.gmra.mxu1 %vm120_vm2, %v110_v16 }
 0x196   :  { %v190_v18 = vpop.f32.mrf.mxu1 }
 0x197   :  { %v191_v19 = vadd.f32 %v202_v17, %v190_v18 }
 0x198   :  { %v241_v20 = vpop.f32.mrf.mxu1 }
 0x199   :  { %195 = vst.msk [vmem:[%s323_s5] sm:$0x3] %vm194_vm3, %v191_v19 }

// kernel: _lambda_.48
= control target key start
LH: loop header
LB: loop body
LE: loop exit
PB: predicated region body
PF: predicated region fallthrough
CT: control target
= control target key end

     0   :  { %vm16_vm0 = vcmask 519168   ;;  %vm38_vm11 = vcmask 1041409   ;;  %vm41_vm12 = vcmask 517120   ;;  %s110_s0 = inlined_call_operand.vmem [shape: f32[2,4,64], index: 0, kind: input, shape index: {}]   ;;  %s111_s1 = inlined_call_operand.vmem [shape: f32[2,64], index: 1, kind: output, shape index: {}]  }
   0x1   :  { %v8_v0 = vld [vmem:[%s110_s0] sm:$0xf]  ;;  %v9_v1 = vld [vmem:[%s110_s0 + $0x4] sm:$0xf] }
   0x2   :  { %v10_v2 = vmax.f32 %v8_v0, 1e-06  ;;  %v11_v3 = vmax.f32 %v9_v1, 1e-06 }
   0x4   :  { %v12_v4 = vmul.f32 %v10_v2, %v10_v2  ;;  %v13_v5 = vmul.f32 %v11_v3, %v11_v3 }
   0x6   :  { %v14_v6 = vmul.f32 %v12_v4, %v10_v2  ;;  %v15_v7 = vmul.f32 %v13_v5, %v11_v3 }
   0x8   :  { %v17_v8 = vsel %vm16_vm0, %v14_v6, 0.0  ;;  %v24_v9 = vsel %vm16_vm0, %v15_v7, 0.0 }
   0x9   :  { %v18_v10 = vrot.slane %v17_v8, 4  ;;  %v25_v11 = vrot.slane %v24_v9, 4 }
   0xb   :  { %v19_v12 = vadd.f32 %v18_v10, %v17_v8  ;;  %v26_v13 = vadd.f32 %v25_v11, %v24_v9 }
   0xd   :  { %v20_v14 = vrot.slane %v19_v12, 2  ;;  %v27_v15 = vrot.slane %v26_v13, 2 }
   0xf   :  { %v21_v16 = vadd.f32 %v20_v14, %v19_v12  ;;  %v28_v17 = vadd.f32 %v27_v15, %v26_v13 }
  0x11   :  { %v22_v18 = vrot.slane %v21_v16, 1  ;;  %v29_v19 = vrot.slane %v28_v17, 1 }
  0x13   :  { %v23_v20 = vadd.f32 %v22_v18, %v21_v16  ;;  %v30_v21 = vadd.f32 %v29_v19, %v28_v17 }
  0x15   :  { %v32_v22 = vmul.f32 0.25, %v23_v20  ;;  %v33_v23 = vmul.f32 0.25, %v30_v21 }
  0x17   :  { %v49_v24 = vand.u32 2147483647, %v32_v22  ;;  %v67_v25 = vand.u32 2147483647, %v33_v23  ;;  %v53_v30 = vand.u32 2147483648, %v32_v22  ;;  %v71_v31 = vand.u32 2147483648, %v33_v23 }
  0x18   :  { %vm48_vm4 = vcmp.lt.f32.partialorder %v32_v22, 0.0  ;;  %vm47_vm6 = vcmp.eq.f32.partialorder %v32_v22, 0.0  ;;  %vm66_vm7 = vcmp.lt.f32.partialorder %v33_v23, 0.0  ;;  %vm65_vm9 = vcmp.eq.f32.partialorder %v33_v23, 0.0 }
  0x19   :  { %83 = vlog2.f32 %v49_v24  ;;  %vm57_vm1 = vweird.f32 %v49_v24  ;;  %vm59_vm2 = vcmp.eq.f32.partialorder %v49_v24, 0.0  ;;  %vm75_vm3 = vweird.f32 %v67_v25 }
  0x1a   :  { %85 = vlog2.f32 %v67_v25  ;;  %vm77_vm5 = vcmp.eq.f32.partialorder %v67_v25, 0.0  ;;  %vm50_vm8 = vcmp.eq.f32.partialorder %v49_v24, inf  ;;  %vm68_vm10 = vcmp.eq.f32.partialorder %v67_v25, inf }
  0x26   :  { %v84_v26 = vpop.eup %83 }
  0x27   :  { %v86_v27 = vpop.eup %85  ;;  %v54_v28 = vmul.f32 0.33333334, %v84_v26 }
  0x28   :  { %v72_v29 = vmul.f32 0.33333334, %v86_v27 }
  0x29   :  { %87 = vpow2.f32 %v54_v28 }
  0x2a   :  { %89 = vpow2.f32 %v72_v29 }
  0x36   :  { %v88_v32 = vpop.eup %87 }
  0x37   :  { %v90_v33 = vpop.eup %89  ;;  %v56_v34 = vor.u32 %v88_v32, %v53_v30 }
  0x38   :  { %v74_v35 = vor.u32 %v90_v33, %v71_v31 }
  0x39   :  { %v58_v36 = vsel %vm57_vm1, %v32_v22, %v56_v34 }
  0x3a   :  { %v61_v37 = vsel %vm59_vm2, %v53_v30, %v58_v36  ;;  %v76_v38 = vsel %vm75_vm3, %v33_v23, %v74_v35 }
  0x3b   :  { %v62_v39 = vsel %vm48_vm4, nan, %v61_v37  ;;  %v79_v40 = vsel %vm77_vm5, %v71_v31, %v76_v38 }
  0x3c   :  { %v63_v41 = vsel %vm47_vm6, 0.0, %v62_v39  ;;  %v80_v42 = vsel %vm66_vm7, nan, %v79_v40 }
  0x3d   :  { %v64_v43 = vsel %vm50_vm8, inf, %v63_v41  ;;  %v81_v44 = vsel %vm65_vm9, 0.0, %v80_v42 }
  0x3e   :  { %v82_v45 = vsel %vm68_vm10, inf, %v81_v44 }
  0x3f   :  { %v39_v46 = vsel %vm38_vm11, %v82_v45, %v64_v43 }
  0x40   :  { %42 = vst.msk [vmem:[%s111_s1] sm:$0x3] %vm41_vm12, %v39_v46 }

// kernel: _lambda_.49
= control target key start
LH: loop header
LB: loop body
LE: loop exit
PB: predicated region body
PF: predicated region fallthrough
CT: control target
= control target key end

     0   :  { %v158_v0 = vmov 0.0   ;;  %vm159_vm0 = vmmov 0   ;;  %vm57_vm1 = vcmask 523264   ;;  %s215_s1 = inlined_call_operand.vmem [shape: bf16[64,64], index: 1, kind: input, shape index: {}]   ;;  %s216_s0 = inlined_call_operand.vmem [shape: bf16[16,64], index: 0, kind: input, shape index: {}]   ;;  %s217_s2 = inlined_call_operand.vmem [shape: f32[1,64], index: 2, kind: input, shape index: {}]   ;;  %s218_s3 = inlined_call_operand.vmem [shape: f32[1,64], index: 3, kind: input, shape index: {}]   ;;  %s219_s4 = inlined_call_operand.vmem [shape: f32[16,64], index: 4, kind: output, shape index: {}]  }
   0x1   :  { %139 = vmatprep.subr.bf16.mxu0 %v158_v0  ;;  %v153_v1 = vld [vmem:[%s215_s1 + $0x18] sm:$0xff]   ;;  %147 = vmatprep.mubr.msk.bf16.mxu0 %vm159_vm0, %v158_v0  ;;  %v154_v2 = vld [vmem:[%s215_s1 + $0x10] sm:$0xff]   ;;  %v155_v3 = vld [vmem:[%s215_s1 + $0x8] sm:$0xff]  }
   0x2   :  { %140 = vmatpush3.bf16.msra.mxu0 %v153_v1  ;;  %v156_v4 = vld [vmem:[%s215_s1] sm:$0xff]  }
   0x3   :  { %141 = vmatprep.subr.bf16.mxu0 %v158_v0  ;;  %v157_v5 = vld [vmem:[%s216_s0] sm:$0xff]  }
   0x4   :  { %v132_v6 = vld [vmem:[%s217_s2] ss:$0 sm:$0xff] }
   0x5   :  { %v133_v8 = vld [vmem:[%s218_s3] ss:$0 sm:$0xff] }
   0x6   :  { %142 = vmatpush3.bf16.msra.mxu0 %v154_v2 }
   0x7   :  { %143 = vmatprep.subr.bf16.mxu0 %v158_v0 }
   0xa   :  { %144 = vmatpush3.bf16.msra.mxu0 %v155_v3 }
   0xb   :  { %145 = vmatprep.subr.bf16.mxu0 %v158_v0 }
   0xe   :  { %146 = vmatpush3.bf16.msra.mxu0 %v156_v4 }
  0x11   :  { %148 = vmatmul.mubr.msk.bf16.vlgmr.msra.gmra.mxu0 %vm57_vm1, %v157_v5 }
  0xd1   :  { %v95_v7 = vpop.f32.mrf.mxu0 }
  0xd2   :  { %v109_v9 = vmul.f32 %v132_v6, %v95_v7 }
  0xd3   :  { %v149_v10 = vpop.f32.mrf.mxu0 }
  0xd4   :  { %v118_v11 = vadd.f32 %v133_v8, %v109_v9 }
  0xd5   :  { %v98_v12 = vpop.f32.mrf.mxu0 }
  0xd6   :  { %120 = vst.msk [vmem:[%s219_s4] sm:$0xff] %vm57_vm1, %v118_v11  ;;  %v110_v13 = vmul.f32 %v132_v6, %v98_v12 }
  0xd7   :  { %v150_v14 = vpop.f32.mrf.mxu0 }
  0xd8   :  { %v119_v15 = vadd.f32 %v133_v8, %v110_v13 }
  0xda   :  { %121 = vst.msk [vmem:[%s219_s4 + $0x8] sm:$0xff] %vm57_vm1, %v119_v15 }

</bundles_post_ra>
